<compile_context>
chip_gen: v7x
topology: tpu7x:2x2x1
jax: 0.10.0
libtpu: 0.0.40
codegen_flags: <defaults>
</compile_context>

<pallas_src>
import functools

import jax
import jax.numpy as jnp
from jax import lax
from jax.experimental import pallas as pl
from jax.experimental.pallas import tpu as pltpu

HIGHEST = lax.Precision.HIGHEST


def _round_up(a, b):
    return (a + b - 1) // b * b


def _vmem_budget_bytes():
    """Generation-aware scoped-VMEM budget (~half of physical VMEM).

    v5e/v6e (128 MiB physical) -> 64 MiB, v7x (64 MiB) -> 32 MiB, unknown -> 32 MiB."""
    try:
        cap = int(pltpu.get_tpu_info().vmem_capacity_bytes)
    except Exception:  # conservative fallback if the query is unavailable
        cap = 64 * 1024 * 1024
    return max(16 * 1024 * 1024, min(cap // 2, 96 * 1024 * 1024))


# -----------------------------------------------------------------------------
# Kernel 1a: streaming global average pool (channel-parallel, H*W reduction).
# -----------------------------------------------------------------------------
def _pool_kernel(x_ref, o_ref, acc_ref, *, inv_hw, n_strips):
    hi = pl.program_id(1)

    @pl.when(hi == 0)
    def _init():
        acc_ref[...] = jnp.zeros_like(acc_ref)

    # Per-strip ref loads: never materialize the whole (B, c_tile, hw_tile) block as one
    # value (it would vastly exceed the 64x4 KiB vreg file and spill).  Each strip is
    # 1 vld + 1 vadd per vreg, keeping the streaming phase cleanly DMA-bound.
    acc = acc_ref[...]
    for j in range(n_strips):                                  # static unroll
        acc = acc + x_ref[:, :, j * 128:(j + 1) * 128].astype(jnp.float32)
    acc_ref[...] = acc

    @pl.when(hi == pl.num_programs(1) - 1)
    def _finalize():
        # Single cross-lane (XLU) reduce; zero padding along H*W does not change the sum.
        o_ref[...] = (jnp.sum(acc_ref[...], axis=-1) * inv_hw)[None]


# -----------------------------------------------------------------------------
# Kernel 1b: kp_gen generator epilogue (matmul / BN / ReLU / matmul / FilterNorm).
# -----------------------------------------------------------------------------
def _kp_epilogue_kernel(pooled_ref, w1t_ref, bn_g_ref, bn_b_ref, w2t_ref, b2_ref,
                        std_ref, mean_ref, o_ref):
    pooled = pooled_ref[...]                                   # (B, C)
    # Conv1x1 (no bias) == matmul with pre-transposed W1 (C, Cr).
    h = jnp.dot(pooled, w1t_ref[...], preferred_element_type=jnp.float32)
    # BatchNorm2d, train-mode batch statistics (spatial dims are 1x1 -> stats over B).
    mu = jnp.mean(h, axis=0, keepdims=True)
    var = jnp.mean((h - mu) ** 2, axis=0, keepdims=True)
    h = (h - mu) * lax.rsqrt(var + 1e-5)
    h = h * bn_g_ref[...] + bn_b_ref[...]
    h = jnp.maximum(h, 0.0)                                    # ReLU
    # Conv1x1 with bias == matmul with pre-transposed W2 (Cr, out*K).
    z = jnp.dot(h, w2t_ref[...], preferred_element_type=jnp.float32) + b2_ref[...]
    # FilterNorm over the flattened (out, K, 1) block per sample.
    u = jnp.mean(z, axis=1, keepdims=True)
    s = jnp.mean((z - u) ** 2, axis=1, keepdims=True)
    zn = (z - u) * lax.rsqrt(s + 1e-12)
    o_ref[...] = zn * std_ref[...] + mean_ref[...]


def kp_gen_forward(x, w1t, bn_g, bn_b, w2t, b2, out_std, out_mean, *, hw_tile=None):
    """x: (B, C, H, W). Returns the generated params, shape (B, out_channel, K, 1)."""
    B, C, H, W = x.shape
    HW = H * W
    Cr = w1t.shape[1]
    OK = w2t.shape[1]
    out_ch, K = out_std.shape[1], out_std.shape[2]

    vmem_budget = _vmem_budget_bytes()

    # Channel-parallel axis (lets both v7x TensorCores stream half the channels each;
    # harmless on single-TC v5e/v6e).  c_tile must keep the sublane dim a multiple of 8.
    c_blocks = 2 if (C % 2 == 0 and (C // 2) % 8 == 0) else 1
    c_tile = C // c_blocks

    if hw_tile is None:
        # One double-buffered x block uses ~1/8 of the scoped-VMEM budget (2 buffers +
        # accumulator scratch + headroom): ~8 MiB/block on 128 MiB-VMEM chips (v5e/v6e),
        # ~4 MiB on v7x — large blocks amortize the ~0.35 us/grid-step overhead.
        block_budget = vmem_budget // 8
        lanes = block_budget // max(1, B * c_tile * x.dtype.itemsize)
        lanes = max(128, (lanes // 128) * 128)
        hw_tile = min(_round_up(HW, 128), min(lanes, 8192))
    assert hw_tile % 128 == 0

    HW_pad = _round_up(HW, hw_tile)
    x_flat = x.reshape(B, C, HW)
    if HW_pad != HW:
        x_flat = jnp.pad(x_flat, ((0, 0), (0, 0), (0, HW_pad - HW)))
    n_hw_steps = HW_pad // hw_tile

    pooled_blocks = pl.pallas_call(
        functools.partial(_pool_kernel, inv_hw=1.0 / float(HW),
                          n_strips=hw_tile // 128),
        out_shape=jax.ShapeDtypeStruct((c_blocks, B, c_tile), jnp.float32),
        grid=(c_blocks, n_hw_steps),
        in_specs=[pl.BlockSpec((B, c_tile, hw_tile), lambda ci, hi: (0, ci, hi))],
        out_specs=pl.BlockSpec((1, B, c_tile), lambda ci, hi: (ci, 0, 0)),
        scratch_shapes=[pltpu.VMEM((B, c_tile, 128), jnp.float32)],
        compiler_params=pltpu.CompilerParams(
            dimension_semantics=("parallel", "arbitrary"),   # H*W is the reduction axis
            vmem_limit_bytes=vmem_budget),
        cost_estimate=pl.CostEstimate(
            flops=B * C * HW, transcendentals=0,
            bytes_accessed=B * C * HW_pad * x.dtype.itemsize + B * C * 4),
    )(x_flat)

    pooled = pooled_blocks.transpose(1, 0, 2).reshape(B, C)    # tiny (B, C)

    kp_flat = pl.pallas_call(
        _kp_epilogue_kernel,
        out_shape=jax.ShapeDtypeStruct((B, OK), jnp.float32),
    )(pooled, w1t, bn_g.reshape(1, Cr), bn_b.reshape(1, Cr), w2t,
      b2.reshape(1, OK), out_std.reshape(1, OK).astype(jnp.float32),
      out_mean.reshape(1, OK).astype(jnp.float32))
    return kp_flat.reshape(B, out_ch, K, 1)


# -----------------------------------------------------------------------------
# Dynamic circular depthwise convs (generated per-sample, per-channel kernels).
# -----------------------------------------------------------------------------
# TODO(synk): the per-(sample, channel) grouped circular depthwise conv (F.conv2d with
# groups=B*C/2 and data-dependent weights) has no efficient Pallas formulation at these
# tiny per-channel (H x H) sizes; it is expressed as an XLA einsum over circulant matrices
# (emitted directly in channels-last token order so no standalone NCHW->NHWC transpose pass
# feeds the fused tail kernel).  Full fusion into kernel #2 via pltpu.roll is future work.
def _dynamic_circular_convs_tokens(x, kp):
    B, C, H, W = x.shape
    C2 = C // 2
    h_pe, w_pe, h_w, w_w = jnp.split(kp, 4, axis=1)            # each (B, C2, K, 1)
    x1 = x[:, :C2] + h_pe.reshape(B, C2, H, 1)                 # positional encodings
    x2 = x[:, C2:] + w_pe.reshape(B, C2, 1, W)
    hw = h_w.reshape(B, C2, H)
    ww = w_w.reshape(B, C2, W)
    # out1[b,h,w,c] = sum_k x1[b,c,(h+k)%H,w] * hw[b,c,k]  (circular corr along H)
    idx_h = (jnp.arange(H)[None, :] - jnp.arange(H)[:, None]) % H
    m1 = hw[:, :, idx_h]                                       # (B, C2, H, H) circulant
    out1 = jnp.einsum('bchj,bcjw->bhwc', m1, x1, precision=HIGHEST)
    # out2[b,h,w,c] = sum_k x2[b,c,h,(w+k)%W] * ww[b,c,k]  (circular corr along W)
    idx_w = (jnp.arange(W)[None, :] - jnp.arange(W)[:, None]) % W
    m2 = ww[:, :, idx_w]                                       # (B, C2, W, W) circulant
    out2 = jnp.einsum('bcwj,bchj->bhwc', m2, x2, precision=HIGHEST)
    return jnp.concatenate([out1, out2], axis=-1).reshape(B * H * W, C)


# -----------------------------------------------------------------------------
# Kernel 2: ConvNeXt tail — bias + LayerNorm + MLP(GELU) + layer scale (delta output).
# -----------------------------------------------------------------------------
def _erf(x):
    # Abramowitz & Stegun 7.1.26 rational approximation (|err| <= 1.5e-7).
    a1, a2, a3, a4, a5 = (0.254829592, -0.284496736, 1.421413741,
                          -1.453152027, 1.061405429)
    p = 0.3275911
    s = jnp.where(x >= 0.0, 1.0, -1.0)
    a = jnp.abs(x)
    # Approx reciprocal runs on the EUP in its own VLIW slot (vs. an exact divide
    # sequence); the 1.5e-7 polynomial error already dominates the error budget.
    t = pl.reciprocal(1.0 + p * a, approx=True)
    poly = t * (a1 + t * (a2 + t * (a3 + t * (a4 + t * a5))))
    return s * (1.0 - poly * jnp.exp(-a * a))


def _gelu_exact(x):
    # nn.GELU() default = exact erf-based GELU.
    return 0.5 * x * (1.0 + _erf(x * 0.7071067811865476))


def _tail_kernel(y_ref, bias_ref, lnw_ref, lnb_ref, w1_ref, b1_ref,
                 w2_ref, b2_ref, g_ref, o_ref, *, h_chunk):
    # y_ref: (tile_n, C) channels-last token block (conv output).  The kernel emits only
    # the delta (gamma * MLP(LN(y + bias))); the residual add is fused outside with the
    # NHWC->NCHW permute, so no residual tokens are read or written here.
    t = y_ref[...].astype(jnp.float32) + bias_ref[...]
    # LayerNorm over channels, eps = 1e-6.
    mu = jnp.mean(t, axis=-1, keepdims=True)
    var = jnp.mean((t - mu) ** 2, axis=-1, keepdims=True)
    t = (t - mu) * lax.rsqrt(var + 1e-6)
    t = t * lnw_ref[...] + lnb_ref[...]
    # MXU-native bf16 matmul inputs (f32 x f32 takes the slow multi-pass path), f32
    # accumulation via preferred_element_type.  The 4C hidden dim is processed in chunks
    # so the live (tile_n, h_chunk) intermediates stay inside VMEM even at large C (v7x).
    t_bf = t.astype(jnp.bfloat16)
    C4 = w1_ref.shape[1]
    u = None
    for s0 in range(0, C4, h_chunk):                           # static unroll
        h = jnp.dot(t_bf, w1_ref[:, s0:s0 + h_chunk],
                    preferred_element_type=jnp.float32) + b1_ref[:, s0:s0 + h_chunk]
        h = _gelu_exact(h)
        part = jnp.dot(h.astype(jnp.bfloat16), w2_ref[s0:s0 + h_chunk, :],
                       preferred_element_type=jnp.float32)
        u = part if u is None else u + part
    o_ref[...] = g_ref[...] * (u + b2_ref[...])


def _choose_tail_tiles(N, C, C4, vmem_budget):
    weight_bytes = 2 * 2 * (C * C4 * 2)            # bf16 w1 + w2, double-buffered
    avail = max(vmem_budget - weight_bytes, vmem_budget // 4)
    tile_n = 128
    for tn in (2048, 1024, 512, 256, 128):
        if tn > _round_up(N, 8):
            continue
        io_bytes = 2 * tn * C * 4 * 2              # double-buffered in + out blocks (f32)
        tmp_bytes = 4 * tn * C * 4                 # t / t_bf / u / misc
        if io_bytes + tmp_bytes <= avail // 2:
            tile_n = tn
            break
    tile_n = min(tile_n, _round_up(N, 8))
    # Chunk the 4C hidden dim so the ~6x (tile_n, h_chunk) f32 GELU temporaries fit the
    # remaining budget (keeps v7x's 64 MiB VMEM out of spill territory).
    h_chunk = C4
    while h_chunk % 2 == 0 and h_chunk > 256 and 6 * tile_n * h_chunk * 4 > avail // 2:
        h_chunk //= 2
    return tile_n, h_chunk


def convnext_tail_delta(y_tok, bias, ln_w, ln_b, w1, b1, w2, b2, gamma):
    """y_tok: (N, C) channels-last tokens. Returns the (N, C) f32 delta."""
    N, C = y_tok.shape
    C4 = w1.shape[1]
    vmem_budget = _vmem_budget_bytes()
    tile_n, h_chunk = _choose_tail_tiles(N, C, C4, vmem_budget)

    N_pad = _round_up(N, tile_n)
    if N_pad != N:
        y_tok = jnp.pad(y_tok, ((0, N_pad - N), (0, 0)))

    w1_bf = w1.astype(jnp.bfloat16)
    w2_bf = w2.astype(jnp.bfloat16)

    cost = pl.CostEstimate(
        flops=4 * N_pad * C * C4,
        transcendentals=2 * N_pad * C4,
        bytes_accessed=2 * N_pad * C * 4 + 2 * C * C4 * 2 + 8 * (C + C4))

    delta = pl.pallas_call(
        functools.partial(_tail_kernel, h_chunk=h_chunk),
        out_shape=jax.ShapeDtypeStruct((N_pad, C), jnp.float32),
        grid=(N_pad // tile_n,),
        in_specs=[
            pl.BlockSpec((tile_n, C), lambda i: (i, 0)),   # conv-output tokens
            pl.BlockSpec((1, C), lambda i: (0, 0)),        # bias
            pl.BlockSpec((1, C), lambda i: (0, 0)),        # LN weight
            pl.BlockSpec((1, C), lambda i: (0, 0)),        # LN bias
            pl.BlockSpec((C, C4), lambda i: (0, 0)),       # pwconv1 weight (C, 4C) bf16
            pl.BlockSpec((1, C4), lambda i: (0, 0)),       # pwconv1 bias
            pl.BlockSpec((C4, C), lambda i: (0, 0)),       # pwconv2 weight (4C, C) bf16
            pl.BlockSpec((1, C), lambda i: (0, 0)),        # pwconv2 bias
            pl.BlockSpec((1, C), lambda i: (0, 0)),        # layer-scale gamma
        ],
        out_specs=pl.BlockSpec((tile_n, C), lambda i: (i, 0)),
        compiler_params=pltpu.CompilerParams(
            dimension_semantics=("parallel",),
            vmem_limit_bytes=vmem_budget),
        cost_estimate=cost,
    )(y_tok, bias.reshape(1, C), ln_w.reshape(1, C), ln_b.reshape(1, C),
      w1_bf, b1.reshape(1, C4), w2_bf, b2.reshape(1, C), gamma.reshape(1, C))

    return delta[:N]


# -----------------------------------------------------------------------------
# Full block forward.
# -----------------------------------------------------------------------------
def block_forward(x, p, *, hw_tile=None):
    """x: (B, C, H, W) float32 with H == W == meta_kernel_size. Returns (B, C, H, W)."""
    B, C, H, W = x.shape
    kp = kp_gen_forward(x, p['kp_w1t'], p['kp_bn_gamma'], p['kp_bn_beta'],
                        p['kp_w2t'], p['kp_b2'], p['kp_out_std'], p['kp_out_mean'],
                        hw_tile=hw_tile)
    y_tok = _dynamic_circular_convs_tokens(x, kp)              # (N, C) tokens
    delta = convnext_tail_delta(y_tok, p['bias'], p['ln_w'], p['ln_b'],
                                p['pw1_w'], p['pw1_b'], p['pw2_w'], p['pw2_b'],
                                p['gamma'])
    # Residual add fused by XLA with the NHWC->NCHW permute in one elementwise pass.
    return x + delta.reshape(B, H, W, C).transpose(0, 3, 1, 2)


# -----------------------------------------------------------------------------
# Pure-JAX reference mirroring the PyTorch module (independent formulations).
# -----------------------------------------------------------------------------
def ref_kp_gen(x, p):
    B, C, H, W = x.shape
    out_ch, K = p['kp_out_std'].shape[1], p['kp_out_std'].shape[2]
    pooled = x.astype(jnp.float32).mean(axis=(2, 3))
    h = jnp.dot(pooled, p['kp_w1t'], precision=HIGHEST)
    mu = h.mean(axis=0, keepdims=True)
    var = ((h - mu) ** 2).mean(axis=0, keepdims=True)
    h = (h - mu) / jnp.sqrt(var + 1e-5) * p['kp_bn_gamma'] + p['kp_bn_beta']
    h = jnp.maximum(h, 0.0)
    z = jnp.dot(h, p['kp_w2t'], precision=HIGHEST) + p['kp_b2']
    z = z.reshape(B, out_ch, K, 1)
    u = z.mean(axis=(1, 2, 3), keepdims=True)
    s = ((z - u) ** 2).mean(axis=(1, 2, 3), keepdims=True)
    return (z - u) / jnp.sqrt(s + 1e-12) * p['kp_out_std'] + p['kp_out_mean']


def ref_forward(x, p):
    B, C, H, W = x.shape
    kp = ref_kp_gen(x, p)
    # dynamic circular depthwise convs (roll-and-accumulate formulation)
    C2 = C // 2
    h_pe, w_pe, h_w, w_w = jnp.split(kp, 4, axis=1)
    x1 = x[:, :C2] + h_pe.reshape(B, C2, H, 1)
    x2 = x[:, C2:] + w_pe.reshape(B, C2, 1, W)
    hw = h_w.reshape(B, C2, H)
    ww = w_w.reshape(B, C2, W)
    out1 = jnp.zeros_like(x1)
    for k in range(H):
        out1 = out1 + jnp.roll(x1, -k, axis=2) * hw[:, :, k][:, :, None, None]
    out2 = jnp.zeros_like(x2)
    for k in range(W):
        out2 = out2 + jnp.roll(x2, -k, axis=3) * ww[:, :, k][:, :, None, None]
    y = jnp.concatenate([out1, out2], axis=1) + p['bias'].reshape(1, C, 1, 1)
    # ConvNeXt tail
    t = y.transpose(0, 2, 3, 1)
    mu = t.mean(axis=-1, keepdims=True)
    var = ((t - mu) ** 2).mean(axis=-1, keepdims=True)
    t = (t - mu) / jnp.sqrt(var + 1e-6) * p['ln_w'] + p['ln_b']
    t = jnp.dot(t, p['pw1_w'], precision=HIGHEST) + p['pw1_b']
    t = jax.nn.gelu(t, approximate=False)
    t = jnp.dot(t, p['pw2_w'], precision=HIGHEST) + p['pw2_b']
    t = p['gamma'] * t
    return x + t.transpose(0, 3, 1, 2)


# -----------------------------------------------------------------------------
# Parameter construction (weights stored pre-transposed to (in, out) for the MXU).
# Values are randomized (instead of PyTorch's ones/zeros inits) so the self-check
# exercises every code path; semantics are unchanged.
# -----------------------------------------------------------------------------
def init_params(key, dim, K, reduction=16, use_pe=True):
    out_ch = (2 * dim) if use_pe else dim
    Cr = dim // reduction
    OK = out_ch * K
    C4 = 4 * dim
    ks = jax.random.split(key, 16)

    def n(k, shape, scale):
        return jax.random.normal(k, shape, jnp.float32) * scale

    return {
        'kp_w1t': n(ks[0], (dim, Cr), 0.2),
        'kp_bn_gamma': 1.0 + n(ks[1], (1, Cr), 0.1),
        'kp_bn_beta': n(ks[2], (1, Cr), 0.1),
        'kp_w2t': n(ks[3], (Cr, OK), 0.2),
        'kp_b2': n(ks[4], (1, OK), 0.1),
        'kp_out_std': 0.2 + n(ks[5], (1, out_ch, K, 1), 0.05),
        'kp_out_mean': n(ks[6], (1, out_ch, K, 1), 0.05),
        'bias': n(ks[7], (dim,), 0.1),
        'ln_w': 1.0 + n(ks[8], (dim,), 0.1),
        'ln_b': n(ks[9], (dim,), 0.1),
        'pw1_w': n(ks[10], (dim, C4), dim ** -0.5),
        'pw1_b': n(ks[11], (C4,), 0.05),
        'pw2_w': n(ks[12], (C4, dim), C4 ** -0.5),
        'pw2_b': n(ks[13], (dim,), 0.05),
        'gamma': 0.5 + n(ks[14], (dim,), 0.1),
    }


if __name__ == "__main__":
    B, dim = 2, 32
    meta_kernel_size = 16          # must equal H and W (required by the module's .view calls)
    H = W = meta_kernel_size

    key = jax.random.PRNGKey(0)
    kx, kparams = jax.random.split(key)
    x = jax.random.normal(kx, (B, dim, H, W), jnp.float32)
    params = init_params(kparams, dim, meta_kernel_size, reduction=16, use_pe=True)

    fwd = jax.jit(block_forward, static_argnames=("hw_tile",))
    # hw_tile=128 forces a multi-step streaming grid even at this small test size so the
    # accumulator + pl.when finalize path is exercised; leave hw_tile=None at real sizes.
    y = jax.block_until_ready(fwd(x, params, hw_tile=128))
    assert y.shape == (B, dim, H, W), y.shape

    # Tight check on the f32 generator head (pooling kernel + epilogue micro-kernel).
    kp_fn = jax.jit(lambda xx, pp: kp_gen_forward(
        xx, pp['kp_w1t'], pp['kp_bn_gamma'], pp['kp_bn_beta'], pp['kp_w2t'],
        pp['kp_b2'], pp['kp_out_std'], pp['kp_out_mean'], hw_tile=128))
    kp = jax.block_until_ready(kp_fn(x, params))
    kp_ref = jax.block_until_ready(jax.jit(ref_kp_gen)(x, params))
    kp_err = float(jnp.max(jnp.abs(kp - kp_ref)))
    assert kp_err < 5e-3, kp_err

    # End-to-end check: relaxed tolerance because the fused tail uses bf16 MXU inputs
    # (f32 accumulation) while the reference runs f32/HIGHEST throughout.
    y_ref = jax.block_until_ready(jax.jit(ref_forward)(x, params))
    err = float(jnp.max(jnp.abs(y - y_ref)))
    assert err < 5e-2, err
    print("KERNEL_OK")
</pallas_src>

<mosaic_0001>
module attributes {stable_mosaic.version = 11 : i64} {
  func.func @_pool_kernel(%arg0: i32, %arg1: i32, %arg2: memref<2x16x128xf32, #tpu.memory_space<vmem>>, %arg3: memref<1x2x16xf32, #tpu.memory_space<vmem>>, %arg4: memref<2x16x128xf32, #tpu.memory_space<vmem>>) attributes {dimension_semantics = [#tpu.dimension_semantics<parallel>, #tpu.dimension_semantics<arbitrary>], iteration_bounds = array<i64: 2, 2>, scalar_prefetch = 0 : i64, scratch_operands = 1 : i64, tpu.core_type = #tpu.core_type<tc>, window_params = [{transform_indices = @transform_0, window_bounds = array<i64: 2, 16, 128>}, {transform_indices = @transform_1, window_bounds = array<i64: 1, 2, 16>}]} {
    %c0_i32 = arith.constant 0 : i32
    %0 = arith.cmpi eq, %arg1, %c0_i32 : i32
    %1 = arith.extui %0 : i1 to i32
    %c0_i32_0 = arith.constant 0 : i32
    %2 = arith.cmpi ne, %1, %c0_i32_0 : i32
    scf.if %2 {
      %cst = arith.constant 0.000000e+00 : f32
      %10 = vector.broadcast %cst : f32 to vector<2x16x128xf32>
      %c0_10 = arith.constant 0 : index
      %c0_11 = arith.constant 0 : index
      %c0_12 = arith.constant 0 : index
      %11 = vector.load %arg4[%c0_10, %c0_11, %c0_12] : memref<2x16x128xf32, #tpu.memory_space<vmem>>, vector<2x16x128xf32>
      tpu.vector_store %arg4[%c0_10, %c0_11, %c0_12], %10 {strides = array<i32>} : memref<2x16x128xf32, #tpu.memory_space<vmem>>, vector<2x16x128xf32>,
    } else {
    }
    %c0 = arith.constant 0 : index
    %c0_1 = arith.constant 0 : index
    %c0_2 = arith.constant 0 : index
    %3 = vector.load %arg4[%c0, %c0_1, %c0_2] : memref<2x16x128xf32, #tpu.memory_space<vmem>>, vector<2x16x128xf32>
    %c0_3 = arith.constant 0 : index
    %c0_4 = arith.constant 0 : index
    %c0_5 = arith.constant 0 : index
    %4 = vector.load %arg2[%c0_3, %c0_4, %c0_5] : memref<2x16x128xf32, #tpu.memory_space<vmem>>, vector<2x16x128xf32>
    %5 = arith.addf %3, %4 : vector<2x16x128xf32>
    %c0_6 = arith.constant 0 : index
    %c0_7 = arith.constant 0 : index
    %c0_8 = arith.constant 0 : index
    %6 = vector.load %arg4[%c0_6, %c0_7, %c0_8] : memref<2x16x128xf32, #tpu.memory_space<vmem>>, vector<2x16x128xf32>
    tpu.vector_store %arg4[%c0_6, %c0_7, %c0_8], %5 {strides = array<i32>} : memref<2x16x128xf32, #tpu.memory_space<vmem>>, vector<2x16x128xf32>,
    %c1_i32 = arith.constant 1 : i32
    %7 = arith.cmpi eq, %arg1, %c1_i32 : i32
    %8 = arith.extui %7 : i1 to i32
    %c0_i32_9 = arith.constant 0 : i32
    %9 = arith.cmpi ne, %8, %c0_i32_9 : i32
    scf.if %9 {
      %c0_10 = arith.constant 0 : index
      %c0_11 = arith.constant 0 : index
      %c0_12 = arith.constant 0 : index
      %10 = vector.load %arg4[%c0_10, %c0_11, %c0_12] : memref<2x16x128xf32, #tpu.memory_space<vmem>>, vector<2x16x128xf32>
      %cst = arith.constant dense<0.000000e+00> : vector<2x16xf32>
      %11 = vector.multi_reduction <add>, %10, %cst [2] : vector<2x16x128xf32> to vector<2x16xf32>
      %cst_13 = arith.constant 3.906250e-03 : f32
      %12 = vector.broadcast %cst_13 : f32 to vector<2x16xf32>
      %13 = arith.mulf %11, %12 : vector<2x16xf32>
      %14 = vector.shape_cast %13 : vector<2x16xf32> to vector<1x2x16xf32>
      %c0_14 = arith.constant 0 : index
      %c0_15 = arith.constant 0 : index
      %c0_16 = arith.constant 0 : index
      %15 = vector.load %arg3[%c0_14, %c0_15, %c0_16] : memref<1x2x16xf32, #tpu.memory_space<vmem>>, vector<1x2x16xf32>
      tpu.vector_store %arg3[%c0_14, %c0_15, %c0_16], %14 {strides = array<i32>} : memref<1x2x16xf32, #tpu.memory_space<vmem>>, vector<1x2x16xf32>,
    } else {
    }
    return
  }
  func.func @transform_0(%arg0: i32, %arg1: i32) -> (i32, i32, i32) {
    %c0_i32 = arith.constant 0 : i32
    %c0_i32_0 = arith.constant 0 : i32
    return %c0_i32, %arg0, %arg1 : i32, i32, i32
  }
  func.func @transform_1(%arg0: i32, %arg1: i32) -> (i32, i32, i32) {
    %c0_i32 = arith.constant 0 : i32
    %c0_i32_0 = arith.constant 0 : i32
    %c0_i32_1 = arith.constant 0 : i32
    return %arg0, %c0_i32, %c0_i32_0 : i32, i32, i32
  }
}

module attributes {stable_mosaic.version = 11 : i64} {
  func.func @_kp_epilogue_kernel(%arg0: memref<2x32xf32, #tpu.memory_space<vmem>>, %arg1: memref<32x2xf32, #tpu.memory_space<vmem>>, %arg2: memref<1x2xf32, #tpu.memory_space<vmem>>, %arg3: memref<1x2xf32, #tpu.memory_space<vmem>>, %arg4: memref<2x1024xf32, #tpu.memory_space<vmem>>, %arg5: memref<1x1024xf32, #tpu.memory_space<vmem>>, %arg6: memref<1x1024xf32, #tpu.memory_space<vmem>>, %arg7: memref<1x1024xf32, #tpu.memory_space<vmem>>, %arg8: memref<2x1024xf32, #tpu.memory_space<vmem>>) attributes {dimension_semantics = [], scalar_prefetch = 0 : i64, scratch_operands = 0 : i64, tpu.core_type = #tpu.core_type<tc>} {
    %c0 = arith.constant 0 : index
    %c0_0 = arith.constant 0 : index
    %0 = vector.load %arg0[%c0, %c0_0] : memref<2x32xf32, #tpu.memory_space<vmem>>, vector<2x32xf32>
    %c0_1 = arith.constant 0 : index
    %c0_2 = arith.constant 0 : index
    %1 = vector.load %arg1[%c0_1, %c0_2] : memref<32x2xf32, #tpu.memory_space<vmem>>, vector<32x2xf32>
    %cst = arith.constant dense<0.000000e+00> : vector<2x2xf32>
    %2 = tpu.matmul %0, %1, %cst {dimension_numbers = #tpu.dot_dimension_numbers<[1], [0], [0], [1], [0, 0, 1, 1], [], []>} : vector<2x32xf32>, vector<32x2xf32>, vector<2x2xf32> -> vector<2x2xf32>
    %cst_3 = arith.constant dense<0.000000e+00> : vector<2xf32>
    %3 = vector.multi_reduction <add>, %2, %cst_3 [0] : vector<2x2xf32> to vector<2xf32>
    %4 = vector.shape_cast %3 : vector<2xf32> to vector<1x2xf32>
    %cst_4 = arith.constant 2.000000e+00 : f32
    %5 = vector.broadcast %cst_4 : f32 to vector<1x2xf32>
    %6 = arith.divf %4, %5 : vector<1x2xf32>
    %7 = vector.broadcast %6 : vector<1x2xf32> to vector<2x2xf32>
    %8 = arith.subf %2, %7 : vector<2x2xf32>
    %9 = arith.mulf %8, %8 : vector<2x2xf32>
    %cst_5 = arith.constant dense<0.000000e+00> : vector<2xf32>
    %10 = vector.multi_reduction <add>, %9, %cst_5 [0] : vector<2x2xf32> to vector<2xf32>
    %11 = vector.shape_cast %10 : vector<2xf32> to vector<1x2xf32>
    %cst_6 = arith.constant 2.000000e+00 : f32
    %12 = vector.broadcast %cst_6 : f32 to vector<1x2xf32>
    %13 = arith.divf %11, %12 : vector<1x2xf32>
    %14 = vector.broadcast %6 : vector<1x2xf32> to vector<2x2xf32>
    %15 = arith.subf %2, %14 : vector<2x2xf32>
    %cst_7 = arith.constant 9.99999974E-6 : f32
    %16 = vector.broadcast %cst_7 : f32 to vector<1x2xf32>
    %17 = arith.addf %13, %16 : vector<1x2xf32>
    %18 = math.rsqrt %17 : vector<1x2xf32>
    %19 = vector.broadcast %18 : vector<1x2xf32> to vector<2x2xf32>
    %20 = arith.mulf %15, %19 : vector<2x2xf32>
    %c0_8 = arith.constant 0 : index
    %c0_9 = arith.constant 0 : index
    %21 = vector.load %arg2[%c0_8, %c0_9] : memref<1x2xf32, #tpu.memory_space<vmem>>, vector<1x2xf32>
    %22 = vector.broadcast %21 : vector<1x2xf32> to vector<2x2xf32>
    %23 = arith.mulf %20, %22 : vector<2x2xf32>
    %c0_10 = arith.constant 0 : index
    %c0_11 = arith.constant 0 : index
    %24 = vector.load %arg3[%c0_10, %c0_11] : memref<1x2xf32, #tpu.memory_space<vmem>>, vector<1x2xf32>
    %25 = vector.broadcast %24 : vector<1x2xf32> to vector<2x2xf32>
    %26 = arith.addf %23, %25 : vector<2x2xf32>
    %cst_12 = arith.constant 0.000000e+00 : f32
    %27 = vector.broadcast %cst_12 : f32 to vector<2x2xf32>
    %28 = arith.maximumf %26, %27 : vector<2x2xf32>
    %c0_13 = arith.constant 0 : index
    %c0_14 = arith.constant 0 : index
    %29 = vector.load %arg4[%c0_13, %c0_14] : memref<2x1024xf32, #tpu.memory_space<vmem>>, vector<2x1024xf32>
    %cst_15 = arith.constant dense<0.000000e+00> : vector<2x1024xf32>
    %30 = tpu.matmul %28, %29, %cst_15 {dimension_numbers = #tpu.dot_dimension_numbers<[1], [0], [0], [1], [0, 0, 1, 1], [], []>} : vector<2x2xf32>, vector<2x1024xf32>, vector<2x1024xf32> -> vector<2x1024xf32>
    %c0_16 = arith.constant 0 : index
    %c0_17 = arith.constant 0 : index
    %31 = vector.load %arg5[%c0_16, %c0_17] : memref<1x1024xf32, #tpu.memory_space<vmem>>, vector<1x1024xf32>
    %32 = vector.broadcast %31 : vector<1x1024xf32> to vector<2x1024xf32>
    %33 = arith.addf %30, %32 : vector<2x1024xf32>
    %cst_18 = arith.constant dense<0.000000e+00> : vector<2xf32>
    %34 = vector.multi_reduction <add>, %33, %cst_18 [1] : vector<2x1024xf32> to vector<2xf32>
    %35 = vector.shape_cast %34 : vector<2xf32> to vector<2x1xf32>
    %cst_19 = arith.constant 1.024000e+03 : f32
    %36 = vector.broadcast %cst_19 : f32 to vector<2x1xf32>
    %37 = arith.divf %35, %36 : vector<2x1xf32>
    %38 = vector.broadcast %37 : vector<2x1xf32> to vector<2x1024xf32>
    %39 = arith.subf %33, %38 : vector<2x1024xf32>
    %40 = arith.mulf %39, %39 : vector<2x1024xf32>
    %cst_20 = arith.constant dense<0.000000e+00> : vector<2xf32>
    %41 = vector.multi_reduction <add>, %40, %cst_20 [1] : vector<2x1024xf32> to vector<2xf32>
    %42 = vector.shape_cast %41 : vector<2xf32> to vector<2x1xf32>
    %cst_21 = arith.constant 1.024000e+03 : f32
    %43 = vector.broadcast %cst_21 : f32 to vector<2x1xf32>
    %44 = arith.divf %42, %43 : vector<2x1xf32>
    %45 = vector.broadcast %37 : vector<2x1xf32> to vector<2x1024xf32>
    %46 = arith.subf %33, %45 : vector<2x1024xf32>
    %cst_22 = arith.constant 9.99999996E-13 : f32
    %47 = vector.broadcast %cst_22 : f32 to vector<2x1xf32>
    %48 = arith.addf %44, %47 : vector<2x1xf32>
    %49 = math.rsqrt %48 : vector<2x1xf32>
    %50 = vector.broadcast %49 : vector<2x1xf32> to vector<2x1024xf32>
    %51 = arith.mulf %46, %50 : vector<2x1024xf32>
    %c0_23 = arith.constant 0 : index
    %c0_24 = arith.constant 0 : index
    %52 = vector.load %arg6[%c0_23, %c0_24] : memref<1x1024xf32, #tpu.memory_space<vmem>>, vector<1x1024xf32>
    %53 = vector.broadcast %52 : vector<1x1024xf32> to vector<2x1024xf32>
    %54 = arith.mulf %51, %53 : vector<2x1024xf32>
    %c0_25 = arith.constant 0 : index
    %c0_26 = arith.constant 0 : index
    %55 = vector.load %arg7[%c0_25, %c0_26] : memref<1x1024xf32, #tpu.memory_space<vmem>>, vector<1x1024xf32>
    %56 = vector.broadcast %55 : vector<1x1024xf32> to vector<2x1024xf32>
    %57 = arith.addf %54, %56 : vector<2x1024xf32>
    %c0_27 = arith.constant 0 : index
    %c0_28 = arith.constant 0 : index
    %58 = vector.load %arg8[%c0_27, %c0_28] : memref<2x1024xf32, #tpu.memory_space<vmem>>, vector<2x1024xf32>
    tpu.vector_store %arg8[%c0_27, %c0_28], %57 {strides = array<i32>} : memref<2x1024xf32, #tpu.memory_space<vmem>>, vector<2x1024xf32>,
    return
  }
}

module attributes {stable_mosaic.version = 11 : i64} {
  func.func @_tail_kernel(%arg0: i32, %arg1: memref<512x32xf32, #tpu.memory_space<vmem>>, %arg2: memref<1x32xf32, #tpu.memory_space<vmem>>, %arg3: memref<1x32xf32, #tpu.memory_space<vmem>>, %arg4: memref<1x32xf32, #tpu.memory_space<vmem>>, %arg5: memref<32x128xbf16, #tpu.memory_space<vmem>>, %arg6: memref<1x128xf32, #tpu.memory_space<vmem>>, %arg7: memref<128x32xbf16, #tpu.memory_space<vmem>>, %arg8: memref<1x32xf32, #tpu.memory_space<vmem>>, %arg9: memref<1x32xf32, #tpu.memory_space<vmem>>, %arg10: memref<512x32xf32, #tpu.memory_space<vmem>>) attributes {dimension_semantics = [#tpu.dimension_semantics<parallel>], iteration_bounds = array<i64: 1>, scalar_prefetch = 0 : i64, scratch_operands = 0 : i64, tpu.core_type = #tpu.core_type<tc>, window_params = [{transform_indices = @transform_0, window_bounds = array<i64: 512, 32>}, {pipeline_mode = #tpu.pipeline_mode<synchronous>, transform_indices = @transform_1, window_bounds = array<i64: 1, 32>}, {pipeline_mode = #tpu.pipeline_mode<synchronous>, transform_indices = @transform_2, window_bounds = array<i64: 1, 32>}, {pipeline_mode = #tpu.pipeline_mode<synchronous>, transform_indices = @transform_3, window_bounds = array<i64: 1, 32>}, {pipeline_mode = #tpu.pipeline_mode<synchronous>, transform_indices = @transform_4, window_bounds = array<i64: 32, 128>}, {pipeline_mode = #tpu.pipeline_mode<synchronous>, transform_indices = @transform_5, window_bounds = array<i64: 1, 128>}, {pipeline_mode = #tpu.pipeline_mode<synchronous>, transform_indices = @transform_6, window_bounds = array<i64: 128, 32>}, {pipeline_mode = #tpu.pipeline_mode<synchronous>, transform_indices = @transform_7, window_bounds = array<i64: 1, 32>}, {pipeline_mode = #tpu.pipeline_mode<synchronous>, transform_indices = @transform_8, window_bounds = array<i64: 1, 32>}, {transform_indices = @transform_9, window_bounds = array<i64: 512, 32>}]} {
    %c0 = arith.constant 0 : index
    %c0_0 = arith.constant 0 : index
    %0 = vector.load %arg1[%c0, %c0_0] : memref<512x32xf32, #tpu.memory_space<vmem>>, vector<512x32xf32>
    %c0_1 = arith.constant 0 : index
    %c0_2 = arith.constant 0 : index
    %1 = vector.load %arg2[%c0_1, %c0_2] : memref<1x32xf32, #tpu.memory_space<vmem>>, vector<1x32xf32>
    %2 = vector.broadcast %1 : vector<1x32xf32> to vector<512x32xf32>
    %3 = arith.addf %0, %2 : vector<512x32xf32>
    %cst = arith.constant dense<0.000000e+00> : vector<512xf32>
    %4 = vector.multi_reduction <add>, %3, %cst [1] : vector<512x32xf32> to vector<512xf32>
    %5 = vector.shape_cast %4 : vector<512xf32> to vector<512x1xf32>
    %cst_3 = arith.constant 3.200000e+01 : f32
    %6 = vector.broadcast %cst_3 : f32 to vector<512x1xf32>
    %7 = arith.divf %5, %6 : vector<512x1xf32>
    %8 = vector.broadcast %7 : vector<512x1xf32> to vector<512x32xf32>
    %9 = arith.subf %3, %8 : vector<512x32xf32>
    %10 = arith.mulf %9, %9 : vector<512x32xf32>
    %cst_4 = arith.constant dense<0.000000e+00> : vector<512xf32>
    %11 = vector.multi_reduction <add>, %10, %cst_4 [1] : vector<512x32xf32> to vector<512xf32>
    %12 = vector.shape_cast %11 : vector<512xf32> to vector<512x1xf32>
    %cst_5 = arith.constant 3.200000e+01 : f32
    %13 = vector.broadcast %cst_5 : f32 to vector<512x1xf32>
    %14 = arith.divf %12, %13 : vector<512x1xf32>
    %15 = vector.broadcast %7 : vector<512x1xf32> to vector<512x32xf32>
    %16 = arith.subf %3, %15 : vector<512x32xf32>
    %cst_6 = arith.constant 9.99999997E-7 : f32
    %17 = vector.broadcast %cst_6 : f32 to vector<512x1xf32>
    %18 = arith.addf %14, %17 : vector<512x1xf32>
    %19 = math.rsqrt %18 : vector<512x1xf32>
    %20 = vector.broadcast %19 : vector<512x1xf32> to vector<512x32xf32>
    %21 = arith.mulf %16, %20 : vector<512x32xf32>
    %c0_7 = arith.constant 0 : index
    %c0_8 = arith.constant 0 : index
    %22 = vector.load %arg3[%c0_7, %c0_8] : memref<1x32xf32, #tpu.memory_space<vmem>>, vector<1x32xf32>
    %23 = vector.broadcast %22 : vector<1x32xf32> to vector<512x32xf32>
    %24 = arith.mulf %21, %23 : vector<512x32xf32>
    %c0_9 = arith.constant 0 : index
    %c0_10 = arith.constant 0 : index
    %25 = vector.load %arg4[%c0_9, %c0_10] : memref<1x32xf32, #tpu.memory_space<vmem>>, vector<1x32xf32>
    %26 = vector.broadcast %25 : vector<1x32xf32> to vector<512x32xf32>
    %27 = arith.addf %24, %26 : vector<512x32xf32>
    %28 = arith.truncf %27 : vector<512x32xf32> to vector<512x32xbf16>
    %c0_11 = arith.constant 0 : index
    %c0_12 = arith.constant 0 : index
    %29 = vector.load %arg5[%c0_11, %c0_12] : memref<32x128xbf16, #tpu.memory_space<vmem>>, vector<32x128xbf16>
    %cst_13 = arith.constant dense<0.000000e+00> : vector<512x128xf32>
    %30 = tpu.matmul %28, %29, %cst_13 {dimension_numbers = #tpu.dot_dimension_numbers<[1], [0], [0], [1], [0, 0, 1, 1], [], []>} : vector<512x32xbf16>, vector<32x128xbf16>, vector<512x128xf32> -> vector<512x128xf32>
    %c0_14 = arith.constant 0 : index
    %c0_15 = arith.constant 0 : index
    %31 = vector.load %arg6[%c0_14, %c0_15] : memref<1x128xf32, #tpu.memory_space<vmem>>, vector<1x128xf32>
    %32 = vector.broadcast %31 : vector<1x128xf32> to vector<512x128xf32>
    %33 = arith.addf %30, %32 : vector<512x128xf32>
    %cst_16 = arith.constant 5.000000e-01 : f32
    %34 = vector.broadcast %cst_16 : f32 to vector<512x128xf32>
    %35 = arith.mulf %34, %33 : vector<512x128xf32>
    %cst_17 = arith.constant 0.707106769 : f32
    %36 = vector.broadcast %cst_17 : f32 to vector<512x128xf32>
    %37 = arith.mulf %33, %36 : vector<512x128xf32>
    %cst_18 = arith.constant 0.000000e+00 : f32
    %38 = vector.broadcast %cst_18 : f32 to vector<512x128xf32>
    %39 = arith.cmpf oge, %37, %38 : vector<512x128xf32>
    %cst_19 = arith.constant 1.000000e+00 : f32
    %cst_20 = arith.constant -1.000000e+00 : f32
    %40 = vector.broadcast %cst_19 : f32 to vector<512x128xf32>
    %41 = vector.broadcast %cst_20 : f32 to vector<512x128xf32>
    %42 = arith.select %39, %40, %41 : vector<512x128xi1>, vector<512x128xf32>
    %43 = math.absf %37 : vector<512x128xf32>
    %cst_21 = arith.constant 0.327591091 : f32
    %44 = vector.broadcast %cst_21 : f32 to vector<512x128xf32>
    %45 = arith.mulf %44, %43 : vector<512x128xf32>
    %cst_22 = arith.constant 1.000000e+00 : f32
    %46 = vector.broadcast %cst_22 : f32 to vector<512x128xf32>
    %47 = arith.addf %46, %45 : vector<512x128xf32>
    %48 = tpu.reciprocal %47 {approx = true} : vector<512x128xf32> -> vector<512x128xf32>
    %cst_23 = arith.constant 1.06140542 : f32
    %49 = vector.broadcast %cst_23 : f32 to vector<512x128xf32>
    %50 = arith.mulf %48, %49 : vector<512x128xf32>
    %cst_24 = arith.constant -1.45315206 : f32
    %51 = vector.broadcast %cst_24 : f32 to vector<512x128xf32>
    %52 = arith.addf %51, %50 : vector<512x128xf32>
    %53 = arith.mulf %48, %52 : vector<512x128xf32>
    %cst_25 = arith.constant 1.42141378 : f32
    %54 = vector.broadcast %cst_25 : f32 to vector<512x128xf32>
    %55 = arith.addf %54, %53 : vector<512x128xf32>
    %56 = arith.mulf %48, %55 : vector<512x128xf32>
    %cst_26 = arith.constant -0.284496725 : f32
    %57 = vector.broadcast %cst_26 : f32 to vector<512x128xf32>
    %58 = arith.addf %57, %56 : vector<512x128xf32>
    %59 = arith.mulf %48, %58 : vector<512x128xf32>
    %cst_27 = arith.constant 0.254829586 : f32
    %60 = vector.broadcast %cst_27 : f32 to vector<512x128xf32>
    %61 = arith.addf %60, %59 : vector<512x128xf32>
    %62 = arith.mulf %48, %61 : vector<512x128xf32>
    %cst_28 = arith.constant 0.000000e+00 : f32
    %63 = vector.broadcast %cst_28 : f32 to vector<512x128xf32>
    %64 = arith.subf %63, %43 : vector<512x128xf32>
    %65 = arith.mulf %64, %43 : vector<512x128xf32>
    %66 = math.exp %65 : vector<512x128xf32>
    %67 = arith.mulf %62, %66 : vector<512x128xf32>
    %cst_29 = arith.constant 1.000000e+00 : f32
    %68 = vector.broadcast %cst_29 : f32 to vector<512x128xf32>
    %69 = arith.subf %68, %67 : vector<512x128xf32>
    %70 = arith.mulf %42, %69 : vector<512x128xf32>
    %cst_30 = arith.constant 1.000000e+00 : f32
    %71 = vector.broadcast %cst_30 : f32 to vector<512x128xf32>
    %72 = arith.addf %71, %70 : vector<512x128xf32>
    %73 = arith.mulf %35, %72 : vector<512x128xf32>
    %74 = arith.truncf %73 : vector<512x128xf32> to vector<512x128xbf16>
    %c0_31 = arith.constant 0 : index
    %c0_32 = arith.constant 0 : index
    %75 = vector.load %arg7[%c0_31, %c0_32] : memref<128x32xbf16, #tpu.memory_space<vmem>>, vector<128x32xbf16>
    %cst_33 = arith.constant dense<0.000000e+00> : vector<512x32xf32>
    %76 = tpu.matmul %74, %75, %cst_33 {dimension_numbers = #tpu.dot_dimension_numbers<[1], [0], [0], [1], [0, 0, 1, 1], [], []>} : vector<512x128xbf16>, vector<128x32xbf16>, vector<512x32xf32> -> vector<512x32xf32>
    %c0_34 = arith.constant 0 : index
    %c0_35 = arith.constant 0 : index
    %77 = vector.load %arg9[%c0_34, %c0_35] : memref<1x32xf32, #tpu.memory_space<vmem>>, vector<1x32xf32>
    %c0_36 = arith.constant 0 : index
    %c0_37 = arith.constant 0 : index
    %78 = vector.load %arg8[%c0_36, %c0_37] : memref<1x32xf32, #tpu.memory_space<vmem>>, vector<1x32xf32>
    %79 = vector.broadcast %78 : vector<1x32xf32> to vector<512x32xf32>
    %80 = arith.addf %76, %79 : vector<512x32xf32>
    %81 = vector.broadcast %77 : vector<1x32xf32> to vector<512x32xf32>
    %82 = arith.mulf %81, %80 : vector<512x32xf32>
    %c0_38 = arith.constant 0 : index
    %c0_39 = arith.constant 0 : index
    %83 = vector.load %arg10[%c0_38, %c0_39] : memref<512x32xf32, #tpu.memory_space<vmem>>, vector<512x32xf32>
    tpu.vector_store %arg10[%c0_38, %c0_39], %82 {strides = array<i32>} : memref<512x32xf32, #tpu.memory_space<vmem>>, vector<512x32xf32>,
    return
  }
  func.func @transform_0(%arg0: i32) -> (i32, i32) {
    %c0_i32 = arith.constant 0 : i32
    %c0_i32_0 = arith.constant 0 : i32
    return %arg0, %c0_i32 : i32, i32
  }
  func.func @transform_1(%arg0: i32) -> (i32, i32) {
    %c0_i32 = arith.constant 0 : i32
    %c0_i32_0 = arith.constant 0 : i32
    %c0_i32_1 = arith.constant 0 : i32
    return %c0_i32, %c0_i32_0 : i32, i32
  }
  func.func @transform_2(%arg0: i32) -> (i32, i32) {
    %c0_i32 = arith.constant 0 : i32
    %c0_i32_0 = arith.constant 0 : i32
    %c0_i32_1 = arith.constant 0 : i32
    return %c0_i32, %c0_i32_0 : i32, i32
  }
  func.func @transform_3(%arg0: i32) -> (i32, i32) {
    %c0_i32 = arith.constant 0 : i32
    %c0_i32_0 = arith.constant 0 : i32
    %c0_i32_1 = arith.constant 0 : i32
    return %c0_i32, %c0_i32_0 : i32, i32
  }
  func.func @transform_4(%arg0: i32) -> (i32, i32) {
    %c0_i32 = arith.constant 0 : i32
    %c0_i32_0 = arith.constant 0 : i32
    %c0_i32_1 = arith.constant 0 : i32
    return %c0_i32, %c0_i32_0 : i32, i32
  }
  func.func @transform_5(%arg0: i32) -> (i32, i32) {
    %c0_i32 = arith.constant 0 : i32
    %c0_i32_0 = arith.constant 0 : i32
    %c0_i32_1 = arith.constant 0 : i32
    return %c0_i32, %c0_i32_0 : i32, i32
  }
  func.func @transform_6(%arg0: i32) -> (i32, i32) {
    %c0_i32 = arith.constant 0 : i32
    %c0_i32_0 = arith.constant 0 : i32
    %c0_i32_1 = arith.constant 0 : i32
    return %c0_i32, %c0_i32_0 : i32, i32
  }
  func.func @transform_7(%arg0: i32) -> (i32, i32) {
    %c0_i32 = arith.constant 0 : i32
    %c0_i32_0 = arith.constant 0 : i32
    %c0_i32_1 = arith.constant 0 : i32
    return %c0_i32, %c0_i32_0 : i32, i32
  }
  func.func @transform_8(%arg0: i32) -> (i32, i32) {
    %c0_i32 = arith.constant 0 : i32
    %c0_i32_0 = arith.constant 0 : i32
    %c0_i32_1 = arith.constant 0 : i32
    return %c0_i32, %c0_i32_0 : i32, i32
  }
  func.func @transform_9(%arg0: i32) -> (i32, i32) {
    %c0_i32 = arith.constant 0 : i32
    %c0_i32_0 = arith.constant 0 : i32
    return %arg0, %c0_i32 : i32, i32
  }
}

</mosaic_0001>

<bundles_post_ra>
// kernel: block_forward.3
= control target key start
LH: loop header
LB: loop body
LE: loop exit
PB: predicated region body
PF: predicated region fallthrough
CT: control target
= control target key end

     0   :  { %s466_s6 = smov 0   ;;  %s468_s7 = smov 0   ;;  %s560_s0 = inlined_call_operand.vmem [shape: f32[2,32,256], index: 0, kind: input, shape index: {}]   ;;  %s561_s1 = inlined_call_operand.vmem [shape: f32[2,2,16], index: 1, kind: output, shape index: {}]  }
   0x1   :  { %s470_s8 = smov 0   ;;  %s472_s9 = smov 0  }
   0x2   :  { %s474_s10 = smov 0   ;;  %s476_s11 = smov 0  }
   0x3   :  { %s478_s12 = smov 0  }
   0x4 LB: > { %s20_s13 = sadd.s32 1, %s445_s10  ;;  %s23_s14 = sadd.s32 1, %s449_s11  ;;  %s453_s12 = sphi %s478_s12, %s11_s12   ;;  %s449_s11 = sphi %s476_s11, %s567_s11   ;;  %s445_s10 = sphi %s474_s10, %s566_s10   ;;  %s441_s9 = sphi %s472_s9, %s565_s9   ;;  %s437_s8 = sphi %s470_s8, %s564_s8   ;;  %s433_s7 = sphi %s468_s7, %s563_s7   ;;  %s429_s6 = sphi %s466_s6, %s562_s6  }
   0x5   : > { %p21_p0 = scmp.ge.s32.totalorder %s20_s13, 2  ;;  %p39_p1 = scmp.ne.s32.totalorder %s433_s7, %s429_s6 }
   0x6   : > { %p40_p2 = scmp.eq.s32.totalorder %s453_s12, 0  ;;  %s32_s18 = sadd.s32 1, %s433_s7 }
   0x7   : > { %s569_s13 = smov (%p21_p0, %s20_s13), 0  ;;  %s571_s14 = smov (!%p21_p0, %s23_s14), %s449_s11 }
   0x8   : > { %p41_p3 = por %p40_p2, %p39_p1  ;;  %p25_p4 = scmp.ge.s32.totalorder %s571_s14, 2 }
   0x9   : > { %s28_s15 = ssub.s32 %s445_s10, %s569_s13  ;;  %p329_p6 = scmp.ge.s32.totalorder %s453_s12, 4 }
   0xa   : > { %s573_s14 = smov (%p25_p4, %s571_s14), 0 }
   0xb   : > { %s27_s16 = ssub.s32 %s449_s11, %s573_s14  ;;  %91 = sbr.rel (%p329_p6) target bundleno = 26 (0x1a), region = 16 }
   0xc   : > { %s29_s17 = sor.u32 %s28_s15, %s27_s16 }
   0xd   : > { %p30_p5 = scmp.eq.s32.totalorder %s29_s17, 0 }
   0xf   : > { %s517_s19 = scalar_select %p30_p5, %s433_s7, %s32_s18  }
  0x12   : > { %94 = sbr.rel (!%p41_p3) target bundleno = 26 (0x1a), region = 20  ;;  %s96_s20 = sand.u32 (%p41_p3), 1, %s433_s7  }
  0x13   : > { %s341_s21 = sshll.u32 (%p41_p3), %s449_s11, 2  ;;  %s330_s22 = sshll.u32 (%p41_p3), %s96_s20, 5 }
  0x14   : > { %s101_s23 = sadd.s32 (%p41_p3), %s445_s10, %s341_s21  ;;  %s98_s28 = scalar_lea.vmem (%p41_p3), [#allocation3], %s330_s22 }
  0x15   : > { %s333_s24 = sshll.u32 (%p41_p3), %s101_s23, 3 }
  0x16   : > { %s103_s27 = scalar_lea.vmem (%p41_p3), %s560_s0, %s333_s24 }
  0x17   : > { %v137_v0 = vld [vmem:[%s103_s27] sm:$0xff] (%p41_p3)  ;;  %v139_v1 = vld [vmem:[%s103_s27 + $0x10] sm:$0xff] (%p41_p3) }
  0x18   : > { %v141_v2 = vld [vmem:[%s103_s27 + $0x40] sm:$0xff] (%p41_p3)  ;;  %138 = vst [vmem:[%s98_s28] sm:$0xff] (%p41_p3), %v137_v0  ;;  %140 = vst [vmem:[%s98_s28 + $0x8] sm:$0xff] (%p41_p3), %v139_v1  ;;  %v143_v3 = vld [vmem:[%s103_s27 + $0x50] sm:$0xff] (%p41_p3) }
  0x19   : > { %142 = vst [vmem:[%s98_s28 + $0x10] sm:$0xff] %v141_v2  ;;  %144 = vst [vmem:[%s98_s28 + $0x18] sm:$0xff] %v143_v3 }
  0x1a PF: > { %p334_p7 = scmp.ge.s32.totalorder %s453_s12, 1  ;;  %p149_p8 = scmp.lt.s32.totalorder %s453_s12, 5 }
  0x1c   : > { %p150_p9 = pnand %p334_p7, %p149_p8 }
  0x1d   : > { %s156_s29 = sand.u32 (!%p150_p9), 1, %s429_s6   ;;  %p175_p10 = scmp.lt.s32.totalorder (!%p150_p9), %s441_s9, 1 }
  0x1e   : > { %153 = sbr.rel (%p150_p9) target bundleno = 211 (0xd3), region = 58  ;;  %s335_s30 = sshll.u32 (!%p150_p9), %s156_s29, 5 }
  0x1f   : > { %s158_s15 = scalar_lea.vmem (!%p150_p9), [#allocation3], %s335_s30  ;;  %p337_p11 = scmp.ne.s32.totalorder (!%p150_p9), %s437_s8, 0 }
  0x25   : > { %s575_s9 = smov (!%p175_p10, %s441_s9), 1  ;;  %182 = sbr.rel (%p337_p11) target bundleno = 44 (0x2c), region = 66 }
  0x26   : > { %s336_s2 = sshll.u32 %s575_s9, 1  ;;  %v455_v4 = vmov (!%p337_p11), 0.0  }
  0x27   : > { %s534_s5 = scalar_lea.vmem %s561_s1, %s336_s2  ;;  %183 = vst [vmem:[#allocation2] sm:$0xff] (!%p337_p11), %v455_v4  ;;  %184 = vst [vmem:[#allocation2 + $0x8] sm:$0xff] (!%p337_p11), %v455_v4 }
  0x28   : > { %185 = vst [vmem:[#allocation2 + $0x10] sm:$0xff] (!%p337_p11), %v455_v4  ;;  %186 = vst [vmem:[#allocation2 + $0x18] sm:$0xff] (!%p337_p11), %v455_v4 }
  0x2c PF: > { %v191_v6 = vld [vmem:[%s158_s15] sm:$0xff]  ;;  %v192_v9 = vld [vmem:[%s158_s15 + $0x8] sm:$0xff]  ;;  %v193_v11 = vld [vmem:[%s158_s15 + $0x10] sm:$0xff]  ;;  %p338_p12 = scmp.ne.s32.totalorder %s437_s8, 1 }
  0x2d   : > { %v194_v15 = vld [vmem:[%s158_s15 + $0x18] sm:$0xff]  ;;  %v227_v21 = vlaneseq (!%p338_p12)  ;;  %vm238_vm0 = vcmask (!%p338_p12), 130112   ;;  %vm249_vm1 = vcmask (!%p338_p12), 1041409   ;;  %vm252_vm2 = vcmask (!%p338_p12), 123904  }
  0x2e   : > { %v187_v5 = vld [vmem:[#allocation2] sm:$0xff]  ;;  %v188_v7 = vld [vmem:[#allocation2 + $0x8] sm:$0xff]  ;;  %206 = sbr.rel (%p338_p12) target bundleno = 211 (0xd3), region = 70 }
  0x2f   : > { %v195_v8 = vadd.f32 %v191_v6, %v187_v5  ;;  %v189_v10 = vld [vmem:[#allocation2 + $0x10] sm:$0xff]  ;;  %v196_v12 = vadd.f32 %v192_v9, %v188_v7  ;;  %v190_v14 = vld [vmem:[#allocation2 + $0x18] sm:$0xff]  ;;  %v228_v22 = vand.u32 (!%p338_p12), 127, %v227_v21  ;;  %v230_v23 = vshrl.u32 (!%p338_p12), %v227_v21, 7 }
  0x30   : > { %v197_v13 = vadd.f32 %v193_v11, %v189_v10  ;;  %v198_v16 = vadd.f32 %v194_v15, %v190_v14 }
  0x31   : > { %199 = vst [vmem:[#allocation2] sm:$0xff] %v195_v8  ;;  %200 = vst [vmem:[#allocation2 + $0x8] sm:$0xff] %v196_v12  ;;  %v233_v24 = vadd.s32 (!%p338_p12), 4294967288, %v228_v22  ;;  %v231_v27 = vsub.s32 (!%p338_p12), %v228_v22, %v230_v23 }
  0x32   : > { %201 = vst [vmem:[#allocation2 + $0x10] sm:$0xff] %v197_v13  ;;  %202 = vst [vmem:[#allocation2 + $0x18] sm:$0xff] %v198_v16 }
  0x33   : > { %v236_v30 = vsub.s32 (!%p338_p12), %v233_v24, %v230_v23 }
  0x38   : > { %v207_v18 = vld [vmem:[#allocation2] sm:$0xff]  ;;  %v208_v20 = vld [vmem:[#allocation2 + $0x8] sm:$0xff] }
  0x39   : > { %v209_v17 = vld [vmem:[#allocation2 + $0x10] sm:$0xff]  ;;  %211 = vadd.xlane.f32.xlu0 %v207_v18  ;;  %v210_v19 = vld [vmem:[#allocation2 + $0x18] sm:$0xff] }
  0x3a   : > { %215 = vadd.xlane.f32.xlu1 %v209_v17 }
  0x3d   : > { %213 = vadd.xlane.f32.xlu0 %v208_v20 }
  0x3e   : > { %217 = vadd.xlane.f32.xlu1 %v210_v19 }
  0xc6   : > { %v212_v26 = vpop.xlane.xlu0 %211 }
  0xc7   : > { %v216_v25 = vpop.xlane.xlu1 %215  ;;  %v219_v29 = vmul.f32 0.00390625, %v212_v26 }
  0xc8   : > { %v221_v28 = vmul.f32 0.00390625, %v216_v25 }
  0xc9   : > { %v232_v36 = vrot.slane %v219_v29, %v231_v27 }
  0xca   : > { %v214_v32 = vpop.xlane.xlu0 %213  ;;  %v243_v35 = vrot.slane %v221_v28, %v231_v27 }
  0xcb   : > { %v218_v31 = vpop.xlane.xlu1 %217  ;;  %v220_v34 = vmul.f32 0.00390625, %v214_v32 }
  0xcc   : > { %v222_v33 = vmul.f32 0.00390625, %v218_v31 }
  0xcd   : > { %v237_v38 = vrot.slane %v220_v34, %v236_v30 }
  0xce   : > { %v247_v37 = vrot.slane %v222_v33, %v236_v30 }
  0xcf   : > { %v239_v40 = vsel %vm238_vm0, %v237_v38, %v232_v36 }
  0xd0   : > { %v248_v39 = vsel %vm238_vm0, %v247_v37, %v243_v35 }
  0xd1   : > { %v250_v41 = vsel %vm249_vm1, %v248_v39, %v239_v40 }
  0xd2   : > { %253 = vst.msk [vmem:[%s534_s5] sm:$0x3] %vm252_vm2, %v250_v41 }
  0xd3 PF: > { %s11_s12 = sadd.s32 1, %s453_s12   ;;  %s562_s6 = smov %s433_s7 }
  0xd4   : > { %p8_p13 = scmp.ge.s32.totalorder %s11_s12, 6   ;;  %s563_s7 = smov %s517_s19 }
  0xd5   : > { %s564_s8 = smov %s445_s10  ;;  %s565_s9 = smov %s449_s11 }
  0xd6   : > { %s566_s10 = smov %s569_s13  ;;  %s567_s11 = smov %s573_s14 }
  0xd7   :  { %10 = sbr.rel (!%p8_p13) target bundleno = 4 (0x4), region = 105 }

// kernel: block_forward.4
= control target key start
LH: loop header
LB: loop body
LE: loop exit
PB: predicated region body
PF: predicated region fallthrough
CT: control target
= control target key end

     0   :  { %v793_v0 = vmov 0.0|0.0   ;;  %vm794_vm0 = vmmov 0   ;;  %v795_v4 = vmov 0.0   ;;  %vm34_vm1 = vcmask 261120   ;;  %s974_s1 = inlined_call_operand.vmem [shape: f32[32,2], index: 1, kind: input, shape index: {}]   ;;  %s975_s0 = inlined_call_operand.vmem [shape: f32[2,32], index: 0, kind: input, shape index: {}]   ;;  %s976_s4 = inlined_call_operand.vmem [shape: f32[2,1024], index: 4, kind: input, shape index: {}]   ;;  %s977_s2 = inlined_call_operand.vmem [shape: f32[1,2], index: 2, kind: input, shape index: {}]   ;;  %s978_s3 = inlined_call_operand.vmem [shape: f32[1,2], index: 3, kind: input, shape index: {}]   ;;  %s979_s5 = inlined_call_operand.vmem [shape: f32[1,1024], index: 5, kind: input, shape index: {}]   ;;  %s980_s6 = inlined_call_operand.vmem [shape: f32[1,1024], index: 6, kind: input, shape index: {}]   ;;  %s981_s7 = inlined_call_operand.vmem [shape: f32[1,1024], index: 7, kind: input, shape index: {}]   ;;  %s982_s8 = inlined_call_operand.vmem [shape: f32[2,1024], index: 8, kind: output, shape index: {}]  }
   0x1   :  { %777 = vmatprep.subr.bf16.mxu0 %v793_v0  ;;  %v30_v1 = vld [vmem:[%s974_s1] sm:$0xff]  ;;  %v31_v2 = vld [vmem:[%s974_s1 + $0x8] sm:$0xff]  ;;  %v32_v3 = vld [vmem:[%s974_s1 + $0x10] sm:$0xff]  ;;  %774 = vmatprep.mubr.msk.f32.mxu0 %vm794_vm0, %v795_v4  ;;  %v152_v9 = vlaneseq  ;;  %v796_v10 = vmov 1983009808   ;;  %vm232_vm2 = vcmask 1041408  }
   0x2   :  { %v778_v5 = vpack.c.bf16 %v31_v2, %v30_v1  ;;  %v33_v6 = vld [vmem:[%s974_s1 + $0x18] sm:$0xff]  ;;  %313 = vmatprep.mubr.f32.mxu1 %v795_v4  ;;  %v29_v8 = vld [vmem:[%s975_s0] sm:$0x3]  ;;  %v196_v11 = vunpack.c.l.s4 %v796_v10  ;;  %v149_v14 = vld [vmem:[%s976_s4 + $0x8] sm:$0xff]  ;;  %vm108_vm3 = vcmask 9216   ;;  %vm228_vm4 = vcmask 15360  }
   0x3   :  { %v781_v7 = vpack.c.bf16 %v33_v6, %v32_v3  ;;  %v860_v12 = vshrl.u32 %v152_v9, 7  ;;  %v211_v16 = vcombine.high %v149_v14, %v149_v14  ;;  %v148_v17 = vld [vmem:[%s976_s4] sm:$0xff] }
   0x4   :  { %779 = vmatpush3.bf16.msra.mxu0 %v778_v5  ;;  %v197_v13 = vunpack.c.0.s8 %v196_v11  ;;  %v194_v20 = vcombine.high %v148_v17, %v148_v17  ;;  %v747_v47 = vld [vmem:[%s977_s2] ss:$0 sm:$0xff] }
   0x5   :  { %780 = vmatprep.subr.bf16.mxu0 %v793_v0  ;;  %v748_v49 = vld [vmem:[%s978_s3] ss:$0 sm:$0xff]  ;;  %v892_v55 = vsub.s32 0, %v860_v12  ;;  %v898_v57 = vsub.s32 1, %v860_v12  ;;  %v902_v59 = vsub.s32 2, %v860_v12  ;;  %v906_v61 = vsub.s32 3, %v860_v12 }
   0x6   :  { %v866_v15 = vsub.s32 %v197_v13, %v860_v12  ;;  %v150_v56 = vld [vmem:[%s979_s5] sm:$0xff]  ;;  %v918_v9 = vsub.s32 6, %v860_v12 }
   0x7   :  { %v155_v58 = vrot.slane %v150_v56, %v892_v55  ;;  %v159_v60 = vrot.slane %v150_v56, %v898_v57  ;;  %v163_v3 = vrot.slane %v150_v56, %v902_v59  ;;  %v167_v6 = vrot.slane %v150_v56, %v906_v61 }
   0x8   :  { %782 = vmatpush3.bf16.msra.mxu0 %v781_v7  ;;  %v201_v18 = vrot.slane %v148_v17, %v866_v15  ;;  %v225_v19 = vrot.slane %v211_v16, %v866_v15  ;;  %v208_v23 = vrot.slane %v194_v20, %v866_v15  ;;  %v218_v51 = vrot.slane %v149_v14, %v866_v15 }
   0x9   :  { %v914_v7 = vsub.s32 5, %v860_v12  ;;  %v922_v14 = vsub.s32 7, %v860_v12 }
   0xa   :  { %v209_v21 = vcombine.high %v201_v18, %v201_v18  ;;  %v227_v22 = vcombine.high %v225_v19, %v225_v19  ;;  %v210_v24 = vcombine.high %v208_v23, %v208_v23  ;;  %v226_v54 = vcombine.high %v218_v51, %v218_v51 }
   0xb   :  { %775 = vmatmul.mubr.msk.f32.vlgmr.msra.gmra.mrb[0].mxu0 %vm34_vm1, %v29_v8  ;;  %v175_v20 = vrot.slane %v150_v56, %v914_v7 }
   0xc   :  { %526 = vmatprep.mubr.f32.mxu0 %v795_v4  ;;  %749 = vmatprep.subr.msk.mxu1 %vm232_vm2, %v209_v21  ;;  %v179_v21 = vrot.slane %v150_v56, %v918_v9 }
   0xd   :  { %750 = vmatpush1.msk.msra.mxu1 %vm232_vm2, %v201_v18  ;;  %758 = vmatprep.subr.msk.mxu0 %vm232_vm2, %v227_v22 }
   0xe   :  { %759 = vmatpush1.msk.msra.mxu0 %vm232_vm2, %v225_v19  ;;  %752 = vmatprep.subr.msk.mxu1 %vm232_vm2, %v210_v24 }
  0xde   :  { %v104_v25 = vpop.f32.mrb[0].mxu0 }
  0xdf   :  { %v109_v26 = vsel %vm108_vm3, %v104_v25, 0.0  ;;  %v776_v27 = vpop.f32.mrb[1].mxu0 }
  0xe0   :  { %v110_v28 = vrot.slane %v109_v26, 4 }
  0xe2   :  { %v111_v29 = vadd.f32 %v110_v28, %v109_v26  ;;  %v183_v26 = vrot.slane %v150_v56, %v922_v14 }
  0xe4   :  { %v112_v30 = vrot.slane %v111_v29, 2 }
  0xe6   :  { %v113_v31 = vadd.f32 %v112_v30, %v111_v29 }
  0xe8   :  { %v114_v32 = vrot.slane %v113_v31, 1 }
  0xea   :  { %v115_v33 = vadd.f32 %v114_v32, %v113_v31 }
  0xec   :  { %v117_v34 = vmul.f32 0.5, %v115_v33 }
  0xee   :  { %v118_v35 = vsub.f32 %v104_v25, %v117_v34 }
  0xf0   :  { %v119_v36 = vmul.f32 %v118_v35, %v118_v35 }
  0xf2   :  { %v120_v37 = vsel %vm108_vm3, %v119_v36, 0.0 }
  0xf3   :  { %v121_v38 = vrot.slane %v120_v37, 4 }
  0xf5   :  { %v122_v39 = vadd.f32 %v121_v38, %v120_v37 }
  0xf7   :  { %v123_v40 = vrot.slane %v122_v39, 2 }
  0xf9   :  { %v124_v41 = vadd.f32 %v123_v40, %v122_v39 }
  0xfb   :  { %v125_v42 = vrot.slane %v124_v41, 1 }
  0xfd   :  { %v126_v43 = vadd.f32 %v125_v42, %v124_v41 }
  0xff   :  { %v127_v44 = vmul.f32 0.5, %v126_v43 }
 0x101   :  { %v128_v45 = vadd.f32 1e-05, %v127_v44 }
 0x103   :  { %789 = vrsqrt.f32 %v128_v45 }
 0x10d   :  { %v790_v46 = vpop.eup %789 }
 0x10e   :  { %v130_v48 = vmul.f32 %v790_v46, %v118_v35 }
 0x110   :  { %v138_v50 = vmul.f32 %v747_v47, %v130_v48 }
 0x112   :  { %v146_v52 = vadd.f32 %v748_v49, %v138_v50 }
 0x114   :  { %v147_v53 = vmax.f32 %v146_v52, 0.0 }
 0x116   :  { %751 = vmatmul.mubr.msk.f32.vlgmr.msra.gmra.mrb[0].mxu1 %vm228_vm4, %v147_v53  ;;  %760 = vmatmul.mubr.msk.f32.vlgmr.msra.gmra.mrb[2].mxu0 %vm228_vm4, %v147_v53 }
 0x117   :  { %753 = vmatpush1.msk.msra.mxu1 %vm232_vm2, %v208_v23  ;;  %384 = vmatprep.mubr.f32.mxu1 %v795_v4 }
 0x118   :  { %755 = vmatprep.subr.msk.mxu1 %vm232_vm2, %v226_v54 }
 0x11a   :  { %754 = vmatmul.mubr.msk.f32.vlgmr.msra.gmra.mrb[2].mxu1 %vm228_vm4, %v147_v53 }
 0x11b   :  { %756 = vmatpush1.msk.msra.mxu1 %vm232_vm2, %v218_v51  ;;  %455 = vmatprep.mubr.f32.mxu1 %v795_v4  ;;  %v910_v4 = vsub.s32 4, %v860_v12 }
 0x11d   :  { %v171_v18 = vrot.slane %v150_v56, %v910_v4 }
 0x11e   :  { %757 = vmatmul.mubr.msk.f32.vlgmr.msra.gmra.mrb[4].mxu1 %vm228_vm4, %v147_v53 }
 0x1e9   :  { %v315_v62 = vpop.f32.mrb[0].mxu1  ;;  %v528_v63 = vpop.f32.mrb[2].mxu0 }
 0x1ea   :  { %v316_v0 = vadd.f32 %v315_v62, %v155_v58  ;;  %v317_v1 = vpop.f32.mrb[1].mxu1  ;;  %v530_v2 = vpop.f32.mrb[3].mxu0  ;;  %v529_v30 = vadd.f32 %v528_v63, %v179_v21 }
 0x1eb   :  { %v318_v5 = vadd.f32 %v317_v1, %v159_v60  ;;  %v531_v34 = vadd.f32 %v530_v2, %v183_v26 }
 0x1ec   :  { %v533_v8 = vsel %vm232_vm2, %v316_v0, 0.0  ;;  %v544_v36 = vsel %vm232_vm2, %v529_v30, 0.0 }
 0x1ed   :  { %v534_v10 = vsel %vm232_vm2, %v318_v5, 0.0  ;;  %v386_v11 = vpop.f32.mrb[2].mxu1  ;;  %v546_v38 = vsel %vm232_vm2, %v531_v34, 0.0 }
 0x1ee   :  { %v535_v13 = vadd.f32 %v534_v10, %v533_v8  ;;  %v387_v16 = vadd.f32 %v386_v11, %v163_v3  ;;  %v388_v17 = vpop.f32.mrb[3].mxu1 }
 0x1ef   :  { %v389_v19 = vadd.f32 %v388_v17, %v167_v6 }
 0x1f0   :  { %v536_v22 = vsel %vm232_vm2, %v387_v16, 0.0 }
 0x1f1   :  { %v537_v23 = vadd.f32 %v536_v22, %v535_v13  ;;  %v538_v24 = vsel %vm232_vm2, %v389_v19, 0.0  ;;  %v457_v25 = vpop.f32.mrb[4].mxu1  ;;  %v596_v22 = vld [vmem:[%s980_s6] sm:$0xff] }
 0x1f2   :  { %v458_v27 = vadd.f32 %v457_v25, %v171_v18  ;;  %v459_v12 = vpop.f32.mrb[5].mxu1  ;;  %v625_v26 = vrot.slane %v596_v22, %v918_v9 }
 0x1f3   :  { %v539_v28 = vadd.f32 %v538_v24, %v537_v23  ;;  %v460_v29 = vadd.f32 %v459_v12, %v175_v20  ;;  %v646_v23 = vld [vmem:[%s981_s7] sm:$0xff]  ;;  %v601_v24 = vrot.slane %v596_v22, %v892_v55  ;;  %v605_v12 = vrot.slane %v596_v22, %v898_v57 }
 0x1f4   :  { %v540_v31 = vsel %vm232_vm2, %v458_v27, 0.0  ;;  %v651_v25 = vrot.slane %v646_v23, %v892_v55  ;;  %v663_v55 = vrot.slane %v646_v23, %v906_v61 }
 0x1f5   :  { %v541_v32 = vadd.f32 %v540_v31, %v539_v28  ;;  %v542_v33 = vsel %vm232_vm2, %v460_v29, 0.0  ;;  %v655_v28 = vrot.slane %v646_v23, %v898_v57  ;;  %v609_v31 = vrot.slane %v596_v22, %v902_v59 }
 0x1f6   :  { %v671_v57 = vrot.slane %v646_v23, %v914_v7 }
 0x1f7   :  { %v543_v35 = vadd.f32 %v542_v33, %v541_v32  ;;  %v659_v32 = vrot.slane %v646_v23, %v902_v59  ;;  %v613_v33 = vrot.slane %v596_v22, %v906_v61 }
 0x1f9   :  { %v545_v37 = vadd.f32 %v544_v36, %v543_v35  ;;  %v617_v35 = vrot.slane %v596_v22, %v910_v4  ;;  %v621_v36 = vrot.slane %v596_v22, %v914_v7 }
 0x1fb   :  { %v547_v39 = vadd.f32 %v546_v38, %v545_v37 }
 0x1fd   :  { %548 = vadd.xlane.f32.xlu0 %v547_v39 }
 0x28a   :  { %v549_v40 = vpop.xlane.xlu0 %548 }
 0x28b   :  { %v551_v41 = vmul.f32 0.0009765625, %v549_v40 }
 0x28d   :  { %v552_v42 = vsub.f32 %v316_v0, %v551_v41  ;;  %v553_v43 = vsub.f32 %v318_v5, %v551_v41  ;;  %v554_v44 = vsub.f32 %v387_v16, %v551_v41  ;;  %v555_v45 = vsub.f32 %v389_v19, %v551_v41 }
 0x28e   :  { %v556_v46 = vsub.f32 %v458_v27, %v551_v41  ;;  %v557_v50 = vsub.f32 %v460_v29, %v551_v41  ;;  %v558_v56 = vsub.f32 %v529_v30, %v551_v41  ;;  %v559_v63 = vsub.f32 %v531_v34, %v551_v41 }
 0x28f   :  { %v560_v47 = vmul.f32 %v552_v42, %v552_v42  ;;  %v561_v48 = vmul.f32 %v553_v43, %v553_v43  ;;  %v562_v49 = vmul.f32 %v554_v44, %v554_v44  ;;  %v563_v51 = vmul.f32 %v555_v45, %v555_v45 }
 0x290   :  { %v564_v58 = vmul.f32 %v556_v46, %v556_v46  ;;  %v565_v0 = vmul.f32 %v557_v50, %v557_v50  ;;  %v566_v3 = vmul.f32 %v558_v56, %v558_v56  ;;  %v567_v8 = vmul.f32 %v559_v63, %v559_v63 }
 0x291   :  { %v568_v52 = vsel %vm232_vm2, %v560_v47, 0.0  ;;  %v569_v53 = vsel %vm232_vm2, %v561_v48, 0.0  ;;  %v571_v60 = vsel %vm232_vm2, %v562_v49, 0.0  ;;  %v573_v1 = vsel %vm232_vm2, %v563_v51, 0.0 }
 0x292   :  { %v570_v54 = vadd.f32 %v569_v53, %v568_v52  ;;  %v575_v5 = vsel %vm232_vm2, %v564_v58, 0.0  ;;  %v577_v10 = vsel %vm232_vm2, %v565_v0, 0.0  ;;  %v579_v13 = vsel %vm232_vm2, %v566_v3, 0.0 }
 0x293   :  { %v581_v17 = vsel %vm232_vm2, %v567_v8, 0.0  ;;  %v675_v27 = vrot.slane %v646_v23, %v918_v9  ;;  %v629_v29 = vrot.slane %v596_v22, %v922_v14  ;;  %v679_v30 = vrot.slane %v646_v23, %v922_v14 }
 0x294   :  { %v572_v62 = vadd.f32 %v571_v60, %v570_v54  ;;  %v667_v9 = vrot.slane %v646_v23, %v910_v4 }
 0x296   :  { %v574_v2 = vadd.f32 %v573_v1, %v572_v62 }
 0x298   :  { %v576_v6 = vadd.f32 %v575_v5, %v574_v2 }
 0x29a   :  { %v578_v11 = vadd.f32 %v577_v10, %v576_v6 }
 0x29c   :  { %v580_v16 = vadd.f32 %v579_v13, %v578_v11 }
 0x29e   :  { %v582_v18 = vadd.f32 %v581_v17, %v580_v16 }
 0x2a0   :  { %583 = vadd.xlane.f32.xlu0 %v582_v18 }
 0x32d   :  { %v584_v19 = vpop.xlane.xlu0 %583 }
 0x32e   :  { %v585_v20 = vmul.f32 0.0009765625, %v584_v19 }
 0x330   :  { %v586_v21 = vadd.f32 1e-12, %v585_v20 }
 0x332   :  { %791 = vrsqrt.f32 %v586_v21 }
 0x33c   :  { %v792_v34 = vpop.eup %791 }
 0x33d   :  { %v588_v37 = vmul.f32 %v792_v34, %v552_v42  ;;  %v589_v38 = vmul.f32 %v792_v34, %v553_v43  ;;  %v590_v14 = vmul.f32 %v792_v34, %v554_v44  ;;  %v591_v39 = vmul.f32 %v792_v34, %v555_v45 }
 0x33e   :  { %v592_v40 = vmul.f32 %v792_v34, %v556_v46  ;;  %v593_v41 = vmul.f32 %v792_v34, %v557_v50  ;;  %v594_v59 = vmul.f32 %v792_v34, %v558_v56  ;;  %v595_v47 = vmul.f32 %v792_v34, %v559_v63 }
 0x33f   :  { %v638_v48 = vmul.f32 %v601_v24, %v588_v37  ;;  %v639_v49 = vmul.f32 %v605_v12, %v589_v38  ;;  %v640_v61 = vmul.f32 %v609_v31, %v590_v14  ;;  %v641_v51 = vmul.f32 %v613_v33, %v591_v39 }
 0x340   :  { %v642_v52 = vmul.f32 %v617_v35, %v592_v40  ;;  %v643_v53 = vmul.f32 %v621_v36, %v593_v41  ;;  %v644_v54 = vmul.f32 %v625_v26, %v594_v59  ;;  %v645_v4 = vmul.f32 %v629_v29, %v595_v47 }
 0x341   :  { %v688_v58 = vadd.f32 %v651_v25, %v638_v48  ;;  %v689_v60 = vadd.f32 %v655_v28, %v639_v49  ;;  %v690_v62 = vadd.f32 %v659_v32, %v640_v61  ;;  %v691_v7 = vadd.f32 %v663_v55, %v641_v51 }
 0x342   :  { %v692_v42 = vadd.f32 %v667_v9, %v642_v52  ;;  %v693_v43 = vadd.f32 %v671_v57, %v643_v53  ;;  %v694_v44 = vadd.f32 %v675_v27, %v644_v54  ;;  %v695_v45 = vadd.f32 %v679_v30, %v645_v4 }
 0x343   :  { %v704_v46 = vcombine.low %v688_v58, %v689_v60  ;;  %v705_v50 = vcombine.low %v690_v62, %v691_v7 }
 0x344   :  { %v721_v56 = vcombine.low %v692_v42, %v693_v43  ;;  %v722_v63 = vcombine.low %v694_v44, %v695_v45 }
 0x345   :  { %v712_v0 = vrot.slane %v704_v46, %v866_v15  ;;  %v719_v1 = vrot.slane %v705_v50, %v866_v15 }
 0x346   :  { %v729_v2 = vrot.slane %v721_v56, %v866_v15  ;;  %v736_v3 = vrot.slane %v722_v63, %v866_v15 }
 0x347   :  { %v720_v5 = vcombine.low %v712_v0, %v719_v1 }
 0x348   :  { %v737_v6 = vcombine.low %v729_v2, %v736_v3 }
 0x349   :  { %740 = vst [vmem:[%s982_s8] sm:$0xff] %v720_v5 }
 0x34a   :  { %741 = vst [vmem:[%s982_s8 + $0x8] sm:$0xff] %v737_v6 }

// kernel: block_forward.5
= control target key start
LH: loop header
LB: loop body
LE: loop exit
PB: predicated region body
PF: predicated region fallthrough
CT: control target
= control target key end

     0   :  { %vm168_vm0 = vcmask 261120   ;;  %s8001_s0 = inlined_call_operand.vmem [shape: f32[512,32], index: 0, kind: input, shape index: {}]   ;;  %s8002_s1 = inlined_call_operand.vmem [shape: f32[1,32], index: 1, kind: input, shape index: {}]   ;;  %s8003_s4 = inlined_call_operand.vmem [shape: bf16[32,128], index: 4, kind: input, shape index: {}]   ;;  %s8004_s2 = inlined_call_operand.vmem [shape: f32[1,32], index: 2, kind: input, shape index: {}]   ;;  %s8005_s3 = inlined_call_operand.vmem [shape: f32[1,32], index: 3, kind: input, shape index: {}]   ;;  %s8006_s6 = inlined_call_operand.vmem [shape: bf16[128,32], index: 6, kind: input, shape index: {}]   ;;  %s8007_s5 = inlined_call_operand.vmem [shape: f32[1,128], index: 5, kind: input, shape index: {}]   ;;  %s8008_s7 = inlined_call_operand.vmem [shape: f32[1,32], index: 7, kind: input, shape index: {}]   ;;  %s8009_s8 = inlined_call_operand.vmem [shape: f32[1,32], index: 8, kind: input, shape index: {}]   ;;  %s8010_s9 = inlined_call_operand.vmem [shape: f32[512,32], index: 9, kind: output, shape index: {}]  }
   0x1   :  { %v33_v0 = vld [vmem:[%s8001_s0] sm:$0xff]  ;;  %v35_v2 = vld [vmem:[%s8001_s0 + $0x10] sm:$0xff]  ;;  %v34_v5 = vld [vmem:[%s8001_s0 + $0x8] sm:$0xff] }
   0x2   :  { %v4522_v1 = vld [vmem:[%s8002_s1] ss:$0 sm:$0xff]  ;;  %v36_v6 = vld [vmem:[%s8001_s0 + $0x18] sm:$0xff]  ;;  %v38_v10 = vld [vmem:[%s8001_s0 + $0x28] sm:$0xff] }
   0x3   :  { %v4528_v3 = vadd.f32 %v4522_v1, %v33_v0  ;;  %v4531_v4 = vadd.f32 %v4522_v1, %v35_v2  ;;  %v4540_v7 = vadd.f32 %v4522_v1, %v34_v5  ;;  %v4543_v8 = vadd.f32 %v4522_v1, %v36_v6  ;;  %v37_v9 = vld [vmem:[%s8001_s0 + $0x20] sm:$0xff]  ;;  %v39_v17 = vld [vmem:[%s8001_s0 + $0x30] sm:$0xff]  ;;  %v40_v18 = vld [vmem:[%s8001_s0 + $0x38] sm:$0xff] }
   0x4   :  { %v4560_v15 = vadd.f32 %v4522_v1, %v37_v9  ;;  %v4563_v16 = vadd.f32 %v4522_v1, %v38_v10  ;;  %v4576_v21 = vadd.f32 %v4522_v1, %v39_v17  ;;  %v4579_v22 = vadd.f32 %v4522_v1, %v40_v18  ;;  %v41_v23 = vld [vmem:[%s8001_s0 + $0x40] sm:$0xff]  ;;  %v42_v24 = vld [vmem:[%s8001_s0 + $0x48] sm:$0xff]  ;;  %v43_v29 = vld [vmem:[%s8001_s0 + $0x50] sm:$0xff] }
   0x5   :  { %v169_v11 = vsel %vm168_vm0, %v4528_v3, 0.0  ;;  %v175_v12 = vsel %vm168_vm0, %v4531_v4, 0.0  ;;  %v172_v13 = vsel %vm168_vm0, %v4540_v7, 0.0  ;;  %v178_v14 = vsel %vm168_vm0, %v4543_v8, 0.0  ;;  %v44_v30 = vld [vmem:[%s8001_s0 + $0x58] sm:$0xff]  ;;  %v45_v35 = vld [vmem:[%s8001_s0 + $0x60] sm:$0xff] }
   0x6   :  { %170 = vadd.xlane.f32.xlu0 %v169_v11  ;;  %176 = vadd.xlane.f32.xlu1 %v175_v12  ;;  %v181_v19 = vsel %vm168_vm0, %v4560_v15, 0.0  ;;  %v184_v20 = vsel %vm168_vm0, %v4563_v16, 0.0  ;;  %v187_v25 = vsel %vm168_vm0, %v4576_v21, 0.0  ;;  %v190_v26 = vsel %vm168_vm0, %v4579_v22, 0.0  ;;  %v46_v36 = vld [vmem:[%s8001_s0 + $0x68] sm:$0xff]  ;;  %v47_v41 = vld [vmem:[%s8001_s0 + $0x70] sm:$0xff] }
   0x7   :  { %v4592_v27 = vadd.f32 %v4522_v1, %v41_v23  ;;  %v4595_v28 = vadd.f32 %v4522_v1, %v42_v24  ;;  %v4608_v33 = vadd.f32 %v4522_v1, %v43_v29  ;;  %v4611_v34 = vadd.f32 %v4522_v1, %v44_v30  ;;  %v48_v42 = vld [vmem:[%s8001_s0 + $0x78] sm:$0xff]  ;;  %v49_v47 = vld [vmem:[%s8001_s0 + $0x80] sm:$0xff]  ;;  %v50_v48 = vld [vmem:[%s8001_s0 + $0x88] sm:$0xff] }
   0x8   :  { %v4624_v39 = vadd.f32 %v4522_v1, %v45_v35  ;;  %v4627_v40 = vadd.f32 %v4522_v1, %v46_v36  ;;  %v4640_v45 = vadd.f32 %v4522_v1, %v47_v41  ;;  %v4643_v46 = vadd.f32 %v4522_v1, %v48_v42  ;;  %v51_v53 = vld [vmem:[%s8001_s0 + $0x90] sm:$0xff]  ;;  %v52_v54 = vld [vmem:[%s8001_s0 + $0x98] sm:$0xff]  ;;  %v53_v59 = vld [vmem:[%s8001_s0 + $0xa0] sm:$0xff] }
   0x9   :  { %v193_v31 = vsel %vm168_vm0, %v4592_v27, 0.0  ;;  %v196_v32 = vsel %vm168_vm0, %v4595_v28, 0.0  ;;  %v199_v37 = vsel %vm168_vm0, %v4608_v33, 0.0  ;;  %v202_v38 = vsel %vm168_vm0, %v4611_v34, 0.0  ;;  %v54_v60 = vld [vmem:[%s8001_s0 + $0xa8] sm:$0xff]  ;;  %v55_v2 = vld [vmem:[%s8001_s0 + $0xb0] sm:$0xff] }
   0xa   :  { %173 = vadd.xlane.f32.xlu0 %v172_v13  ;;  %179 = vadd.xlane.f32.xlu1 %v178_v14  ;;  %v205_v43 = vsel %vm168_vm0, %v4624_v39, 0.0  ;;  %v208_v44 = vsel %vm168_vm0, %v4627_v40, 0.0  ;;  %v211_v49 = vsel %vm168_vm0, %v4640_v45, 0.0  ;;  %v214_v50 = vsel %vm168_vm0, %v4643_v46, 0.0  ;;  %v56_v5 = vld [vmem:[%s8001_s0 + $0xb8] sm:$0xff]  ;;  %v57_v12 = vld [vmem:[%s8001_s0 + $0xc0] sm:$0xff] }
   0xb   :  { %v4656_v51 = vadd.f32 %v4522_v1, %v49_v47  ;;  %v4659_v52 = vadd.f32 %v4522_v1, %v50_v48  ;;  %v4672_v57 = vadd.f32 %v4522_v1, %v51_v53  ;;  %v4675_v58 = vadd.f32 %v4522_v1, %v52_v54  ;;  %v58_v13 = vld [vmem:[%s8001_s0 + $0xc8] sm:$0xff]  ;;  %v60_v23 = vld [vmem:[%s8001_s0 + $0xd8] sm:$0xff]  ;;  %v61_v30 = vld [vmem:[%s8001_s0 + $0xe0] sm:$0xff] }
   0xc   :  { %v4688_v63 = vadd.f32 %v4522_v1, %v53_v59  ;;  %v4691_v0 = vadd.f32 %v4522_v1, %v54_v60  ;;  %v4704_v10 = vadd.f32 %v4522_v1, %v55_v2  ;;  %v4707_v11 = vadd.f32 %v4522_v1, %v56_v5  ;;  %v64_v41 = vld [vmem:[%s8001_s0 + $0xf8] sm:$0xff]  ;;  %v65_v48 = vld [vmem:[%s8001_s0 + $0x100] sm:$0xff] }
   0xd   :  { %v217_v55 = vsel %vm168_vm0, %v4656_v51, 0.0  ;;  %v220_v56 = vsel %vm168_vm0, %v4659_v52, 0.0  ;;  %v223_v61 = vsel %vm168_vm0, %v4672_v57, 0.0  ;;  %v226_v62 = vsel %vm168_vm0, %v4675_v58, 0.0  ;;  %v68_v59 = vld [vmem:[%s8001_s0 + $0x118] sm:$0xff]  ;;  %v69_v5 = vld [vmem:[%s8001_s0 + $0x120] sm:$0xff] }
   0xe   :  { %182 = vadd.xlane.f32.xlu0 %v181_v19  ;;  %185 = vadd.xlane.f32.xlu1 %v184_v20  ;;  %v229_v6 = vsel %vm168_vm0, %v4688_v63, 0.0  ;;  %v232_v9 = vsel %vm168_vm0, %v4691_v0, 0.0  ;;  %v235_v14 = vsel %vm168_vm0, %v4704_v10, 0.0  ;;  %v238_v17 = vsel %vm168_vm0, %v4707_v11, 0.0  ;;  %v59_v20 = vld [vmem:[%s8001_s0 + $0xd0] sm:$0xff] }
   0xf   :  { %v4720_v18 = vadd.f32 %v4522_v1, %v57_v12  ;;  %v4723_v19 = vadd.f32 %v4522_v1, %v58_v13  ;;  %v4739_v29 = vadd.f32 %v4522_v1, %v60_v23  ;;  %v4752_v36 = vadd.f32 %v4522_v1, %v61_v30 }
  0x10   :  { %v4771_v47 = vadd.f32 %v4522_v1, %v64_v41  ;;  %v4784_v54 = vadd.f32 %v4522_v1, %v65_v48  ;;  %v4803_v2 = vadd.f32 %v4522_v1, %v68_v59  ;;  %v4816_v13 = vadd.f32 %v4522_v1, %v69_v5  ;;  %v76_v48 = vld [vmem:[%s8001_s0 + $0x158] sm:$0xff]  ;;  %v77_v59 = vld [vmem:[%s8001_s0 + $0x160] sm:$0xff] }
  0x11   :  { %v241_v24 = vsel %vm168_vm0, %v4720_v18, 0.0  ;;  %v250_v35 = vsel %vm168_vm0, %v4739_v29, 0.0  ;;  %v253_v42 = vsel %vm168_vm0, %v4752_v36, 0.0 }
  0x12   :  { %188 = vadd.xlane.f32.xlu0 %v187_v25  ;;  %191 = vadd.xlane.f32.xlu1 %v190_v26  ;;  %v244_v25 = vsel %vm168_vm0, %v4723_v19, 0.0  ;;  %v4736_v26 = vadd.f32 %v4522_v1, %v59_v20  ;;  %v262_v53 = vsel %vm168_vm0, %v4771_v47, 0.0  ;;  %v265_v60 = vsel %vm168_vm0, %v4784_v54, 0.0  ;;  %v72_v20 = vld [vmem:[%s8001_s0 + $0x138] sm:$0xff] }
  0x13   :  { %v274_v12 = vsel %vm168_vm0, %v4803_v2, 0.0  ;;  %v277_v23 = vsel %vm168_vm0, %v4816_v13, 0.0  ;;  %v4835_v30 = vadd.f32 %v4522_v1, %v72_v20 }
  0x16   :  { %194 = vadd.xlane.f32.xlu0 %v193_v31  ;;  %197 = vadd.xlane.f32.xlu1 %v196_v32  ;;  %v62_v31 = vld [vmem:[%s8001_s0 + $0xe8] sm:$0xff]  ;;  %v247_v32 = vsel %vm168_vm0, %v4736_v26, 0.0 }
  0x1a   :  { %200 = vadd.xlane.f32.xlu0 %v199_v37  ;;  %203 = vadd.xlane.f32.xlu1 %v202_v38  ;;  %v4755_v37 = vadd.f32 %v4522_v1, %v62_v31  ;;  %v63_v38 = vld [vmem:[%s8001_s0 + $0xf0] sm:$0xff]  ;;  %v73_v31 = vld [vmem:[%s8001_s0 + $0x140] sm:$0xff] }
  0x1b   :  { %v4848_v41 = vadd.f32 %v4522_v1, %v73_v31 }
  0x1e   :  { %206 = vadd.xlane.f32.xlu0 %v205_v43  ;;  %209 = vadd.xlane.f32.xlu1 %v208_v44  ;;  %v256_v43 = vsel %vm168_vm0, %v4755_v37, 0.0  ;;  %v4768_v44 = vadd.f32 %v4522_v1, %v63_v38  ;;  %v286_v38 = vsel %vm168_vm0, %v4835_v30, 0.0 }
  0x22   :  { %212 = vadd.xlane.f32.xlu0 %v211_v49  ;;  %215 = vadd.xlane.f32.xlu1 %v214_v50  ;;  %v66_v49 = vld [vmem:[%s8001_s0 + $0x108] sm:$0xff]  ;;  %v259_v50 = vsel %vm168_vm0, %v4768_v44, 0.0 }
  0x26   :  { %218 = vadd.xlane.f32.xlu0 %v217_v55  ;;  %221 = vadd.xlane.f32.xlu1 %v220_v56  ;;  %v4787_v55 = vadd.f32 %v4522_v1, %v66_v49  ;;  %v67_v56 = vld [vmem:[%s8001_s0 + $0x110] sm:$0xff]  ;;  %v289_v49 = vsel %vm168_vm0, %v4848_v41, 0.0 }
  0x2a   :  { %224 = vadd.xlane.f32.xlu0 %v223_v61  ;;  %227 = vadd.xlane.f32.xlu1 %v226_v62  ;;  %v268_v61 = vsel %vm168_vm0, %v4787_v55, 0.0  ;;  %v4800_v62 = vadd.f32 %v4522_v1, %v67_v56  ;;  %v4867_v56 = vadd.f32 %v4522_v1, %v76_v48 }
  0x2c   :  { %v298_v5 = vsel %vm168_vm0, %v4867_v56, 0.0 }
  0x2e   :  { %230 = vadd.xlane.f32.xlu0 %v229_v6  ;;  %233 = vadd.xlane.f32.xlu1 %v232_v9  ;;  %v70_v6 = vld [vmem:[%s8001_s0 + $0x128] sm:$0xff]  ;;  %v271_v9 = vsel %vm168_vm0, %v4800_v62, 0.0 }
  0x32   :  { %236 = vadd.xlane.f32.xlu0 %v235_v14  ;;  %239 = vadd.xlane.f32.xlu1 %v238_v17  ;;  %v4819_v14 = vadd.f32 %v4522_v1, %v70_v6  ;;  %v71_v17 = vld [vmem:[%s8001_s0 + $0x130] sm:$0xff]  ;;  %v4880_v6 = vadd.f32 %v4522_v1, %v77_v59  ;;  %v84_v59 = vld [vmem:[%s8001_s0 + $0x198] sm:$0xff] }
  0x34   :  { %v301_v20 = vsel %vm168_vm0, %v4880_v6, 0.0 }
  0x36   :  { %242 = vadd.xlane.f32.xlu0 %v241_v24  ;;  %245 = vadd.xlane.f32.xlu1 %v244_v25  ;;  %v280_v24 = vsel %vm168_vm0, %v4819_v14, 0.0  ;;  %v4832_v25 = vadd.f32 %v4522_v1, %v71_v17  ;;  %v80_v17 = vld [vmem:[%s8001_s0 + $0x178] sm:$0xff] }
  0x37   :  { %v4899_v31 = vadd.f32 %v4522_v1, %v80_v17  ;;  %v85_v17 = vld [vmem:[%s8001_s0 + $0x1a0] sm:$0xff] }
  0x3a   :  { %248 = vadd.xlane.f32.xlu0 %v247_v32  ;;  %251 = vadd.xlane.f32.xlu1 %v250_v35  ;;  %v74_v32 = vld [vmem:[%s8001_s0 + $0x148] sm:$0xff]  ;;  %v283_v35 = vsel %vm168_vm0, %v4832_v25, 0.0 }
  0x3e   :  { %254 = vadd.xlane.f32.xlu0 %v253_v42  ;;  %257 = vadd.xlane.f32.xlu1 %v256_v43  ;;  %v4851_v42 = vadd.f32 %v4522_v1, %v74_v32  ;;  %v75_v43 = vld [vmem:[%s8001_s0 + $0x150] sm:$0xff]  ;;  %v81_v32 = vld [vmem:[%s8001_s0 + $0x180] sm:$0xff] }
  0x3f   :  { %v4912_v48 = vadd.f32 %v4522_v1, %v81_v32 }
  0x42   :  { %260 = vadd.xlane.f32.xlu0 %v259_v50  ;;  %263 = vadd.xlane.f32.xlu1 %v262_v53  ;;  %v292_v50 = vsel %vm168_vm0, %v4851_v42, 0.0  ;;  %v4864_v53 = vadd.f32 %v4522_v1, %v75_v43  ;;  %v310_v43 = vsel %vm168_vm0, %v4899_v31, 0.0 }
  0x46   :  { %266 = vadd.xlane.f32.xlu0 %v265_v60  ;;  %269 = vadd.xlane.f32.xlu1 %v268_v61  ;;  %v78_v60 = vld [vmem:[%s8001_s0 + $0x168] sm:$0xff]  ;;  %v295_v61 = vsel %vm168_vm0, %v4864_v53, 0.0 }
  0x4a   :  { %272 = vadd.xlane.f32.xlu0 %v271_v9  ;;  %275 = vadd.xlane.f32.xlu1 %v274_v12  ;;  %v4883_v9 = vadd.f32 %v4522_v1, %v78_v60  ;;  %v79_v12 = vld [vmem:[%s8001_s0 + $0x170] sm:$0xff]  ;;  %v313_v60 = vsel %vm168_vm0, %v4912_v48, 0.0 }
  0x4e   :  { %278 = vadd.xlane.f32.xlu0 %v277_v23  ;;  %281 = vadd.xlane.f32.xlu1 %v280_v24  ;;  %v304_v23 = vsel %vm168_vm0, %v4883_v9, 0.0  ;;  %v4896_v24 = vadd.f32 %v4522_v1, %v79_v12  ;;  %v4931_v12 = vadd.f32 %v4522_v1, %v84_v59 }
  0x50   :  { %8052 = vst [vmem:[#allocation4_spill] sm:$0xff] %v4931_v12  ;;  %v322_v32 = vsel %vm168_vm0, %v4931_v12, 0.0 }
  0x52   :  { %284 = vadd.xlane.f32.xlu0 %v283_v35  ;;  %287 = vadd.xlane.f32.xlu1 %v286_v38  ;;  %v82_v35 = vld [vmem:[%s8001_s0 + $0x188] sm:$0xff]  ;;  %v307_v38 = vsel %vm168_vm0, %v4896_v24, 0.0 }
  0x56   :  { %290 = vadd.xlane.f32.xlu0 %v289_v49  ;;  %293 = vadd.xlane.f32.xlu1 %v292_v50  ;;  %v4915_v49 = vadd.f32 %v4522_v1, %v82_v35  ;;  %v83_v50 = vld [vmem:[%s8001_s0 + $0x190] sm:$0xff]  ;;  %v4944_v35 = vadd.f32 %v4522_v1, %v85_v17 }
  0x58   :  { %8050 = vst [vmem:[#allocation2_spill] sm:$0xff] %v4915_v49  ;;  %8053 = vst [vmem:[#allocation5_spill] sm:$0xff] %v4944_v35  ;;  %v325_v59 = vsel %vm168_vm0, %v4944_v35, 0.0 }
  0x5a   :  { %296 = vadd.xlane.f32.xlu0 %v295_v61  ;;  %299 = vadd.xlane.f32.xlu1 %v298_v5  ;;  %v316_v61 = vsel %vm168_vm0, %v4915_v49, 0.0  ;;  %v4928_v5 = vadd.f32 %v4522_v1, %v83_v50  ;;  %v88_v50 = vld [vmem:[%s8001_s0 + $0x1b8] sm:$0xff] }
  0x5b   :  { %v4963_v17 = vadd.f32 %v4522_v1, %v88_v50 }
  0x5c   :  { %8051 = vst [vmem:[#allocation3_spill] sm:$0xff] %v4928_v5 }
  0x5d   :  { %8056 = vst [vmem:[#allocation8_spill] sm:$0xff] %v4963_v17 }
  0x5e   :  { %302 = vadd.xlane.f32.xlu0 %v301_v20  ;;  %305 = vadd.xlane.f32.xlu1 %v304_v23  ;;  %v86_v20 = vld [vmem:[%s8001_s0 + $0x1a8] sm:$0xff]  ;;  %v319_v23 = vsel %vm168_vm0, %v4928_v5, 0.0 }
  0x62   :  { %308 = vadd.xlane.f32.xlu0 %v307_v38  ;;  %311 = vadd.xlane.f32.xlu1 %v310_v43  ;;  %v4947_v38 = vadd.f32 %v4522_v1, %v86_v20  ;;  %v87_v43 = vld [vmem:[%s8001_s0 + $0x1b0] sm:$0xff]  ;;  %v89_v20 = vld [vmem:[%s8001_s0 + $0x1c0] sm:$0xff] }
  0x64   :  { %8054 = vst [vmem:[#allocation6_spill] sm:$0xff] %v4947_v38 }
  0x66   :  { %314 = vadd.xlane.f32.xlu0 %v313_v60  ;;  %317 = vadd.xlane.f32.xlu1 %v316_v61  ;;  %v328_v60 = vsel %vm168_vm0, %v4947_v38, 0.0  ;;  %v4960_v61 = vadd.f32 %v4522_v1, %v87_v43  ;;  %v334_v43 = vsel %vm168_vm0, %v4963_v17, 0.0  ;;  %v4976_v38 = vadd.f32 %v4522_v1, %v89_v20 }
  0x68   :  { %8055 = vst [vmem:[#allocation7_spill] sm:$0xff] %v4960_v61  ;;  %8057 = vst [vmem:[#allocation9_spill] sm:$0xff] %v4976_v38  ;;  %v337_v35 = vsel %vm168_vm0, %v4976_v38, 0.0 }
  0x6a   :  { %320 = vadd.xlane.f32.xlu0 %v319_v23  ;;  %323 = vadd.xlane.f32.xlu1 %v322_v32  ;;  %v90_v23 = vld [vmem:[%s8001_s0 + $0x1c8] sm:$0xff]  ;;  %v331_v32 = vsel %vm168_vm0, %v4960_v61, 0.0 }
  0x6b   :  { %v4979_v50 = vadd.f32 %v4522_v1, %v90_v23 }
  0x6e   :  { %326 = vadd.xlane.f32.xlu0 %v325_v59  ;;  %329 = vadd.xlane.f32.xlu1 %v328_v60  ;;  %v340_v59 = vsel %vm168_vm0, %v4979_v50, 0.0 }
  0x72   :  { %332 = vadd.xlane.f32.xlu0 %v331_v32  ;;  %335 = vadd.xlane.f32.xlu1 %v334_v43 }
  0x76   :  { %338 = vadd.xlane.f32.xlu0 %v337_v35  ;;  %341 = vadd.xlane.f32.xlu1 %v340_v59 }
  0x93   :  { %v171_v60 = vpop.xlane.xlu0 %170  ;;  %v177_v61 = vpop.xlane.xlu1 %176 }
  0x94   :  { %v362_v12 = vmul.f32 0.03125, %v171_v60  ;;  %v364_v17 = vmul.f32 0.03125, %v177_v61 }
  0x96   :  { %v4986_v20 = vsub.f32 %v4528_v3, %v362_v12  ;;  %v4989_v23 = vsub.f32 %v4531_v4, %v364_v17 }
  0x97   :  { %v174_v32 = vpop.xlane.xlu0 %173  ;;  %v180_v43 = vpop.xlane.xlu1 %179 }
  0x98   :  { %8058 = vst [vmem:[#allocation10_spill] sm:$0xff] %v4989_v23  ;;  %v363_v5 = vmul.f32 0.03125, %v174_v32  ;;  %v365_v49 = vmul.f32 0.03125, %v180_v43  ;;  %v490_v38 = vmul.f32 %v4986_v20, %v4986_v20  ;;  %v492_v35 = vmul.f32 %v4989_v23, %v4989_v23 }
  0x9a   :  { %v4996_v59 = vsub.f32 %v4540_v7, %v363_v5  ;;  %v4999_v61 = vsub.f32 %v4543_v8, %v365_v49  ;;  %v554_v3 = vsel %vm168_vm0, %v490_v38, 0.0  ;;  %v560_v17 = vsel %vm168_vm0, %v492_v35, 0.0 }
  0x9b   :  { %555 = vadd.xlane.f32.xlu0 %v554_v3  ;;  %v183_v4 = vpop.xlane.xlu0 %182  ;;  %v186_v12 = vpop.xlane.xlu1 %185 }
  0x9c   :  { %v366_v60 = vmul.f32 0.03125, %v183_v4  ;;  %v367_v32 = vmul.f32 0.03125, %v186_v12  ;;  %v491_v43 = vmul.f32 %v4996_v59, %v4996_v59  ;;  %v493_v23 = vmul.f32 %v4999_v61, %v4999_v61 }
  0x9e   :  { %v5008_v7 = vsub.f32 %v4560_v15, %v366_v60  ;;  %v5011_v8 = vsub.f32 %v4563_v16, %v367_v32  ;;  %v557_v49 = vsel %vm168_vm0, %v491_v43, 0.0  ;;  %v563_v35 = vsel %vm168_vm0, %v493_v23, 0.0 }
  0x9f   :  { %561 = vadd.xlane.f32.xlu0 %v560_v17  ;;  %558 = vadd.xlane.f32.xlu1 %v557_v49  ;;  %v189_v5 = vpop.xlane.xlu0 %188  ;;  %v192_v38 = vpop.xlane.xlu1 %191 }
  0xa0   :  { %v368_v3 = vmul.f32 0.03125, %v189_v5  ;;  %v369_v4 = vmul.f32 0.03125, %v192_v38  ;;  %v494_v12 = vmul.f32 %v5008_v7, %v5008_v7  ;;  %v495_v15 = vmul.f32 %v5011_v8, %v5011_v8 }
  0xa2   :  { %v5020_v60 = vsub.f32 %v4576_v21, %v368_v3  ;;  %v5023_v16 = vsub.f32 %v4579_v22, %v369_v4  ;;  %v566_v17 = vsel %vm168_vm0, %v494_v12, 0.0  ;;  %v569_v43 = vsel %vm168_vm0, %v495_v15, 0.0 }
  0xa3   :  { %564 = vadd.xlane.f32.xlu1 %v563_v35  ;;  %567 = vadd.xlane.f32.xlu0 %v566_v17  ;;  %v195_v32 = vpop.xlane.xlu0 %194  ;;  %v198_v23 = vpop.xlane.xlu1 %197 }
  0xa4   :  { %v370_v49 = vmul.f32 0.03125, %v195_v32  ;;  %v371_v5 = vmul.f32 0.03125, %v198_v23  ;;  %v496_v38 = vmul.f32 %v5020_v60, %v5020_v60  ;;  %v497_v21 = vmul.f32 %v5023_v16, %v5023_v16 }
  0xa6   :  { %v5032_v3 = vsub.f32 %v4592_v27, %v370_v49  ;;  %v5035_v22 = vsub.f32 %v4595_v28, %v371_v5  ;;  %v572_v35 = vsel %vm168_vm0, %v496_v38, 0.0  ;;  %v575_v15 = vsel %vm168_vm0, %v497_v21, 0.0 }
  0xa7   :  { %570 = vadd.xlane.f32.xlu1 %v569_v43  ;;  %573 = vadd.xlane.f32.xlu0 %v572_v35  ;;  %v201_v4 = vpop.xlane.xlu0 %200  ;;  %v204_v12 = vpop.xlane.xlu1 %203 }
  0xa8   :  { %v372_v17 = vmul.f32 0.03125, %v201_v4  ;;  %v373_v32 = vmul.f32 0.03125, %v204_v12  ;;  %v498_v23 = vmul.f32 %v5032_v3, %v5032_v3  ;;  %v499_v27 = vmul.f32 %v5035_v22, %v5035_v22 }
  0xaa   :  { %v5044_v49 = vsub.f32 %v4608_v33, %v372_v17  ;;  %v5047_v28 = vsub.f32 %v4611_v34, %v373_v32  ;;  %v578_v43 = vsel %vm168_vm0, %v498_v23, 0.0  ;;  %v581_v21 = vsel %vm168_vm0, %v499_v27, 0.0 }
  0xab   :  { %576 = vadd.xlane.f32.xlu1 %v575_v15  ;;  %579 = vadd.xlane.f32.xlu0 %v578_v43  ;;  %v207_v5 = vpop.xlane.xlu0 %206  ;;  %v210_v38 = vpop.xlane.xlu1 %209 }
  0xac   :  { %v374_v35 = vmul.f32 0.03125, %v207_v5  ;;  %v375_v4 = vmul.f32 0.03125, %v210_v38  ;;  %v500_v12 = vmul.f32 %v5044_v49, %v5044_v49  ;;  %v501_v33 = vmul.f32 %v5047_v28, %v5047_v28 }
  0xae   :  { %v5056_v17 = vsub.f32 %v4624_v39, %v374_v35  ;;  %v5059_v34 = vsub.f32 %v4627_v40, %v375_v4  ;;  %v584_v15 = vsel %vm168_vm0, %v500_v12, 0.0  ;;  %v587_v27 = vsel %vm168_vm0, %v501_v33, 0.0 }
  0xaf   :  { %582 = vadd.xlane.f32.xlu1 %v581_v21  ;;  %585 = vadd.xlane.f32.xlu0 %v584_v15  ;;  %v213_v32 = vpop.xlane.xlu0 %212  ;;  %v216_v23 = vpop.xlane.xlu1 %215 }
  0xb0   :  { %v376_v43 = vmul.f32 0.03125, %v213_v32  ;;  %v377_v5 = vmul.f32 0.03125, %v216_v23  ;;  %v502_v38 = vmul.f32 %v5056_v17, %v5056_v17  ;;  %v503_v39 = vmul.f32 %v5059_v34, %v5059_v34 }
  0xb2   :  { %v5068_v35 = vsub.f32 %v4640_v45, %v376_v43  ;;  %v5071_v40 = vsub.f32 %v4643_v46, %v377_v5  ;;  %v590_v21 = vsel %vm168_vm0, %v502_v38, 0.0  ;;  %v593_v33 = vsel %vm168_vm0, %v503_v39, 0.0 }
  0xb3   :  { %588 = vadd.xlane.f32.xlu1 %v587_v27  ;;  %591 = vadd.xlane.f32.xlu0 %v590_v21  ;;  %v219_v4 = vpop.xlane.xlu0 %218  ;;  %v222_v12 = vpop.xlane.xlu1 %221 }
  0xb4   :  { %v378_v15 = vmul.f32 0.03125, %v219_v4  ;;  %v379_v32 = vmul.f32 0.03125, %v222_v12  ;;  %v504_v23 = vmul.f32 %v5068_v35, %v5068_v35  ;;  %v505_v45 = vmul.f32 %v5071_v40, %v5071_v40 }
  0xb6   :  { %v5080_v43 = vsub.f32 %v4656_v51, %v378_v15  ;;  %v5083_v46 = vsub.f32 %v4659_v52, %v379_v32  ;;  %v596_v27 = vsel %vm168_vm0, %v504_v23, 0.0  ;;  %v599_v39 = vsel %vm168_vm0, %v505_v45, 0.0  ;;  %v91_v52 = vld [vmem:[%s8001_s0 + $0x1d0] sm:$0xff] }
  0xb7   :  { %594 = vadd.xlane.f32.xlu1 %v593_v33  ;;  %597 = vadd.xlane.f32.xlu0 %v596_v27  ;;  %v225_v5 = vpop.xlane.xlu0 %224  ;;  %v228_v38 = vpop.xlane.xlu1 %227 }
  0xb8   :  { %8059 = vst [vmem:[#allocation11_spill] sm:$0xff] %v5083_v46  ;;  %v380_v21 = vmul.f32 0.03125, %v225_v5  ;;  %v381_v4 = vmul.f32 0.03125, %v228_v38  ;;  %v506_v12 = vmul.f32 %v5080_v43, %v5080_v43  ;;  %v507_v51 = vmul.f32 %v5083_v46, %v5083_v46 }
  0xb9   :  { %v5103_v5 = vadd.f32 %v4522_v1, %v91_v52 }
  0xba   :  { %v5095_v15 = vsub.f32 %v4672_v57, %v380_v21  ;;  %v5098_v33 = vsub.f32 %v4675_v58, %v381_v4  ;;  %v602_v32 = vsel %vm168_vm0, %v506_v12, 0.0  ;;  %v605_v23 = vsel %vm168_vm0, %v507_v51, 0.0  ;;  %v93_v12 = vld [vmem:[%s8001_s0 + $0x1e0] sm:$0xff] }
  0xbb   :  { %600 = vadd.xlane.f32.xlu1 %v599_v39  ;;  %603 = vadd.xlane.f32.xlu0 %v602_v32  ;;  %v231_v45 = vpop.xlane.xlu0 %230  ;;  %v234_v27 = vpop.xlane.xlu1 %233  ;;  %v92_v39 = vld [vmem:[%s8001_s0 + $0x1d8] sm:$0xff]  ;;  %v343_v51 = vsel %vm168_vm0, %v5103_v5, 0.0 }
  0xbc   :  { %8060 = vst [vmem:[#allocation12_spill] sm:$0xff] %v5095_v15  ;;  %8061 = vst [vmem:[#allocation13_spill] sm:$0xff] %v5098_v33  ;;  %v508_v38 = vmul.f32 %v5095_v15, %v5095_v15  ;;  %v382_v46 = vmul.f32 0.03125, %v231_v45  ;;  %v383_v57 = vmul.f32 0.03125, %v234_v27  ;;  %v509_v58 = vmul.f32 %v5098_v33, %v5098_v33  ;;  %v4066_v27 = vld [vmem:[%s8003_s4] sm:$0xff]  }
  0xbd   :  { %v5122_v52 = vadd.f32 %v4522_v1, %v92_v39  ;;  %3901 = vmatprep.subr.bf16.mxu0 %v4066_v27 }
  0xbe   :  { %v608_v21 = vsel %vm168_vm0, %v508_v38, 0.0  ;;  %v5114_v4 = vsub.f32 %v4688_v63, %v382_v46  ;;  %v5128_v63 = vsub.f32 %v4691_v0, %v383_v57  ;;  %v611_v46 = vsel %vm168_vm0, %v509_v58, 0.0  ;;  %3902 = vmatpush3.bf16.msra.mxu0 %v4066_v27  ;;  %v4067_v0 = vld [vmem:[%s8003_s4 + $0x8] sm:$0xff]  }
  0xbf   :  { %606 = vadd.xlane.f32.xlu1 %v605_v23  ;;  %609 = vadd.xlane.f32.xlu0 %v608_v21  ;;  %v237_v32 = vpop.xlane.xlu0 %236  ;;  %v240_v45 = vpop.xlane.xlu1 %239  ;;  %v346_v39 = vsel %vm168_vm0, %v5122_v52, 0.0  ;;  %v5136_v21 = vadd.f32 %v4522_v1, %v93_v12  ;;  %v94_v12 = vld [vmem:[%s8001_s0 + $0x1e8] sm:$0xff] }
  0xc0   :  { %8062 = vst [vmem:[#allocation14_spill] sm:$0xff] %v5114_v4  ;;  %8063 = vst [vmem:[#allocation15_spill] sm:$0xff] %v5128_v63  ;;  %v510_v23 = vmul.f32 %v5114_v4, %v5114_v4  ;;  %v384_v38 = vmul.f32 0.03125, %v237_v32  ;;  %v385_v32 = vmul.f32 0.03125, %v240_v45  ;;  %3903 = vmatprep.subr.bf16.mxu0 %v4067_v0 }
  0xc1   :  { %8064 = vst [vmem:[#allocation16_spill] sm:$0xff] %v5136_v21  ;;  %v349_v27 = vsel %vm168_vm0, %v5136_v21, 0.0 }
  0xc2   :  { %v614_v57 = vsel %vm168_vm0, %v510_v23, 0.0  ;;  %v5143_v58 = vsub.f32 %v4704_v10, %v384_v38  ;;  %3904 = vmatpush3.bf16.msra.mxu0 %v4067_v0  ;;  %v5156_v45 = vsub.f32 %v4707_v11, %v385_v32 }
  0xc3   :  { %612 = vadd.xlane.f32.xlu1 %v611_v46  ;;  %344 = vadd.xlane.f32.xlu0 %v343_v51  ;;  %v243_v33 = vpop.xlane.xlu0 %242  ;;  %v246_v15 = vpop.xlane.xlu1 %245  ;;  %v511_v51 = vmul.f32 %v5128_v63, %v5128_v63  ;;  %v5153_v46 = vadd.f32 %v4522_v1, %v94_v12 }
  0xc4   :  { %8065 = vst [vmem:[#allocation17_spill] sm:$0xff] %v5143_v58  ;;  %8066 = vst [vmem:[#allocation18_spill] sm:$0xff] %v5156_v45  ;;  %v512_v63 = vmul.f32 %v5143_v58, %v5143_v58  ;;  %v386_v4 = vmul.f32 0.03125, %v243_v33  ;;  %v513_v33 = vmul.f32 %v5156_v45, %v5156_v45 }
  0xc5   :  { %v617_v38 = vsel %vm168_vm0, %v511_v51, 0.0  ;;  %v352_v0 = vsel %vm168_vm0, %v5153_v46, 0.0 }
  0xc6   :  { %v620_v51 = vsel %vm168_vm0, %v512_v63, 0.0  ;;  %v5171_v58 = vsub.f32 %v4720_v18, %v386_v4 }
  0xc7   :  { %347 = vadd.xlane.f32.xlu1 %v346_v39  ;;  %615 = vadd.xlane.f32.xlu0 %v614_v57  ;;  %v249_v10 = vpop.xlane.xlu0 %248  ;;  %v252_v23 = vpop.xlane.xlu1 %251  ;;  %v95_v39 = vld [vmem:[%s8001_s0 + $0x1f0] sm:$0xff]  ;;  %v387_v57 = vmul.f32 0.03125, %v246_v15 }
  0xc8   :  { %v5167_v12 = vadd.f32 %v4522_v1, %v95_v39  ;;  %v388_v21 = vmul.f32 0.03125, %v249_v10  ;;  %v389_v63 = vmul.f32 0.03125, %v252_v23  ;;  %v623_v10 = vsel %vm168_vm0, %v513_v33, 0.0 }
  0xc9   :  { %v5179_v15 = vsub.f32 %v4723_v19, %v387_v57 }
  0xca   :  { %v5188_v45 = vsub.f32 %v4736_v26, %v388_v21  ;;  %v5193_v19 = vsub.f32 %v4739_v29, %v389_v63 }
  0xcb   :  { %618 = vadd.xlane.f32.xlu1 %v617_v38  ;;  %350 = vadd.xlane.f32.xlu0 %v349_v27  ;;  %v255_v11 = vpop.xlane.xlu0 %254  ;;  %v258_v32 = vpop.xlane.xlu1 %257  ;;  %v96_v27 = vld [vmem:[%s8001_s0 + $0x1f8] sm:$0xff]  ;;  %8067 = vst [vmem:[#allocation19_spill] sm:$0xff] %v5179_v15  ;;  %v355_v38 = vsel %vm168_vm0, %v5167_v12, 0.0  ;;  %v515_v57 = vmul.f32 %v5179_v15, %v5179_v15 }
  0xcc   :  { %v5184_v18 = vadd.f32 %v4522_v1, %v96_v27  ;;  %v391_v23 = vmul.f32 0.03125, %v258_v32 }
  0xcd   :  { %v629_v32 = vsel %vm168_vm0, %v515_v57, 0.0 }
  0xce   :  { %v358_v1 = vsel %vm168_vm0, %v5184_v18, 0.0  ;;  %v5206_v29 = vsub.f32 %v4755_v37, %v391_v23 }
  0xcf   :  { %353 = vadd.xlane.f32.xlu1 %v352_v0  ;;  %621 = vadd.xlane.f32.xlu0 %v620_v51  ;;  %v261_v4 = vpop.xlane.xlu0 %260  ;;  %v264_v39 = vpop.xlane.xlu1 %263  ;;  %v514_v0 = vmul.f32 %v5171_v58, %v5171_v58  ;;  %v390_v51 = vmul.f32 0.03125, %v255_v11  ;;  %v516_v11 = vmul.f32 %v5188_v45, %v5188_v45 }
  0xd0   :  { %v393_v63 = vmul.f32 0.03125, %v264_v39  ;;  %v519_v57 = vmul.f32 %v5206_v29, %v5206_v29 }
  0xd1   :  { %v626_v26 = vsel %vm168_vm0, %v514_v0, 0.0  ;;  %v5201_v21 = vsub.f32 %v4752_v36, %v390_v51  ;;  %v632_v36 = vsel %vm168_vm0, %v516_v11, 0.0 }
  0xd2   :  { %v5218_v37 = vsub.f32 %v4771_v47, %v393_v63 }
  0xd3   :  { %624 = vadd.xlane.f32.xlu1 %v623_v10  ;;  %356 = vadd.xlane.f32.xlu0 %v355_v38  ;;  %v267_v33 = vpop.xlane.xlu0 %266  ;;  %v270_v27 = vpop.xlane.xlu1 %269  ;;  %v392_v38 = vmul.f32 0.03125, %v261_v4  ;;  %v517_v10 = vmul.f32 %v5193_v19, %v5193_v19  ;;  %v518_v4 = vmul.f32 %v5201_v21, %v5201_v21 }
  0xd4   :  { %v395_v23 = vmul.f32 0.03125, %v270_v27  ;;  %v641_v27 = vsel %vm168_vm0, %v519_v57, 0.0 }
  0xd5   :  { %v5213_v51 = vsub.f32 %v4768_v44, %v392_v38  ;;  %v635_v39 = vsel %vm168_vm0, %v517_v10, 0.0  ;;  %v638_v44 = vsel %vm168_vm0, %v518_v4, 0.0  ;;  %v521_v10 = vmul.f32 %v5218_v37, %v5218_v37 }
  0xd6   :  { %v5230_v47 = vsub.f32 %v4787_v55, %v395_v23 }
  0xd7   :  { %359 = vadd.xlane.f32.xlu1 %v358_v1  ;;  %627 = vadd.xlane.f32.xlu0 %v626_v26  ;;  %v273_v15 = vpop.xlane.xlu0 %272  ;;  %v276_v0 = vpop.xlane.xlu1 %275  ;;  %v394_v1 = vmul.f32 0.03125, %v267_v33  ;;  %v520_v33 = vmul.f32 %v5213_v51, %v5213_v51 }
  0xd8   :  { %v397_v63 = vmul.f32 0.03125, %v276_v0  ;;  %v647_v0 = vsel %vm168_vm0, %v521_v10, 0.0  ;;  %v523_v57 = vmul.f32 %v5230_v47, %v5230_v47 }
  0xd9   :  { %v5225_v38 = vsub.f32 %v4784_v54, %v394_v1  ;;  %v644_v54 = vsel %vm168_vm0, %v520_v33, 0.0 }
  0xda   :  { %v5242_v55 = vsub.f32 %v4803_v2, %v397_v63 }
  0xdb   :  { %630 = vadd.xlane.f32.xlu1 %v629_v32  ;;  %633 = vadd.xlane.f32.xlu0 %v632_v36  ;;  %v279_v26 = vpop.xlane.xlu0 %278  ;;  %v282_v11 = vpop.xlane.xlu1 %281  ;;  %v396_v32 = vmul.f32 0.03125, %v273_v15  ;;  %v522_v15 = vmul.f32 %v5225_v38, %v5225_v38 }
  0xdc   :  { %v399_v23 = vmul.f32 0.03125, %v282_v11  ;;  %v653_v11 = vsel %vm168_vm0, %v523_v57, 0.0  ;;  %v525_v10 = vmul.f32 %v5242_v55, %v5242_v55 }
  0xdd   :  { %v5237_v1 = vsub.f32 %v4800_v62, %v396_v32  ;;  %v650_v62 = vsel %vm168_vm0, %v522_v15, 0.0 }
  0xde   :  { %v5254_v2 = vsub.f32 %v4819_v14, %v399_v23 }
  0xdf   :  { %636 = vadd.xlane.f32.xlu1 %v635_v39  ;;  %639 = vadd.xlane.f32.xlu0 %v638_v44  ;;  %v285_v36 = vpop.xlane.xlu0 %284  ;;  %v288_v4 = vpop.xlane.xlu1 %287  ;;  %v398_v39 = vmul.f32 0.03125, %v279_v26  ;;  %v524_v26 = vmul.f32 %v5237_v1, %v5237_v1 }
  0xe0   :  { %v401_v63 = vmul.f32 0.03125, %v288_v4  ;;  %v659_v4 = vsel %vm168_vm0, %v525_v10, 0.0  ;;  %v527_v57 = vmul.f32 %v5254_v2, %v5254_v2 }
  0xe1   :  { %v5249_v32 = vsub.f32 %v4816_v13, %v398_v39  ;;  %v656_v13 = vsel %vm168_vm0, %v524_v26, 0.0 }
  0xe2   :  { %v5266_v14 = vsub.f32 %v4835_v30, %v401_v63 }
  0xe3   :  { %642 = vadd.xlane.f32.xlu1 %v641_v27  ;;  %645 = vadd.xlane.f32.xlu0 %v644_v54  ;;  %v291_v44 = vpop.xlane.xlu0 %290  ;;  %v294_v33 = vpop.xlane.xlu1 %293  ;;  %v400_v27 = vmul.f32 0.03125, %v285_v36  ;;  %v526_v36 = vmul.f32 %v5249_v32, %v5249_v32 }
  0xe4   :  { %v403_v23 = vmul.f32 0.03125, %v294_v33  ;;  %v665_v33 = vsel %vm168_vm0, %v527_v57, 0.0  ;;  %v529_v10 = vmul.f32 %v5266_v14, %v5266_v14 }
  0xe5   :  { %v5261_v39 = vsub.f32 %v4832_v25, %v400_v27  ;;  %v662_v25 = vsel %vm168_vm0, %v526_v36, 0.0 }
  0xe6   :  { %v5278_v30 = vsub.f32 %v4851_v42, %v403_v23 }
  0xe7   :  { %648 = vadd.xlane.f32.xlu1 %v647_v0  ;;  %651 = vadd.xlane.f32.xlu0 %v650_v62  ;;  %v297_v54 = vpop.xlane.xlu0 %296  ;;  %v300_v15 = vpop.xlane.xlu1 %299  ;;  %v402_v0 = vmul.f32 0.03125, %v291_v44  ;;  %v528_v44 = vmul.f32 %v5261_v39, %v5261_v39 }
  0xe8   :  { %v405_v63 = vmul.f32 0.03125, %v300_v15  ;;  %v671_v15 = vsel %vm168_vm0, %v529_v10, 0.0  ;;  %v531_v57 = vmul.f32 %v5278_v30, %v5278_v30 }
  0xe9   :  { %v5273_v27 = vsub.f32 %v4848_v41, %v402_v0  ;;  %v668_v41 = vsel %vm168_vm0, %v528_v44, 0.0 }
  0xea   :  { %v5290_v42 = vsub.f32 %v4867_v56, %v405_v63 }
  0xeb   :  { %654 = vadd.xlane.f32.xlu1 %v653_v11  ;;  %657 = vadd.xlane.f32.xlu0 %v656_v13  ;;  %v303_v62 = vpop.xlane.xlu0 %302  ;;  %v306_v26 = vpop.xlane.xlu1 %305  ;;  %v404_v11 = vmul.f32 0.03125, %v297_v54  ;;  %v530_v54 = vmul.f32 %v5273_v27, %v5273_v27 }
  0xec   :  { %v407_v23 = vmul.f32 0.03125, %v306_v26  ;;  %v677_v26 = vsel %vm168_vm0, %v531_v57, 0.0  ;;  %v533_v10 = vmul.f32 %v5290_v42, %v5290_v42 }
  0xed   :  { %v5285_v0 = vsub.f32 %v4864_v53, %v404_v11  ;;  %v674_v53 = vsel %vm168_vm0, %v530_v54, 0.0 }
  0xee   :  { %v5302_v56 = vsub.f32 %v4883_v9, %v407_v23 }
  0xef   :  { %660 = vadd.xlane.f32.xlu1 %v659_v4  ;;  %663 = vadd.xlane.f32.xlu0 %v662_v25  ;;  %v309_v13 = vpop.xlane.xlu0 %308  ;;  %v312_v36 = vpop.xlane.xlu1 %311  ;;  %v406_v4 = vmul.f32 0.03125, %v303_v62  ;;  %v532_v62 = vmul.f32 %v5285_v0, %v5285_v0 }
  0xf0   :  { %8068 = vst [vmem:[#allocation20_spill] sm:$0xff] %v5302_v56  ;;  %v409_v63 = vmul.f32 0.03125, %v312_v36  ;;  %v683_v36 = vsel %vm168_vm0, %v533_v10, 0.0  ;;  %v535_v57 = vmul.f32 %v5302_v56, %v5302_v56 }
  0xf1   :  { %v5297_v11 = vsub.f32 %v4880_v6, %v406_v4  ;;  %v680_v6 = vsel %vm168_vm0, %v532_v62, 0.0 }
  0xf2   :  { %v5314_v9 = vsub.f32 %v4899_v31, %v409_v63  ;;  %v8070_v31 = vld [vmem:[#allocation2_spill] sm:$0xff] }
  0xf3   :  { %666 = vadd.xlane.f32.xlu1 %v665_v33  ;;  %669 = vadd.xlane.f32.xlu0 %v668_v41  ;;  %v315_v25 = vpop.xlane.xlu0 %314  ;;  %v318_v44 = vpop.xlane.xlu1 %317  ;;  %v408_v33 = vmul.f32 0.03125, %v309_v13  ;;  %v534_v13 = vmul.f32 %v5297_v11, %v5297_v11 }
  0xf4   :  { %8069 = vst [vmem:[#allocation21_spill] sm:$0xff] %v5314_v9  ;;  %v411_v23 = vmul.f32 0.03125, %v318_v44  ;;  %v689_v44 = vsel %vm168_vm0, %v535_v57, 0.0 }
  0xf5   :  { %v5309_v4 = vsub.f32 %v4896_v24, %v408_v33  ;;  %v686_v62 = vsel %vm168_vm0, %v534_v13, 0.0 }
  0xf6   :  { %v5326_v63 = vsub.f32 %v8070_v31, %v411_v23  ;;  %v8074_v23 = vld [vmem:[#allocation4_spill] sm:$0xff] }
  0xf7   :  { %672 = vadd.xlane.f32.xlu1 %v671_v15  ;;  %675 = vadd.xlane.f32.xlu0 %v674_v53  ;;  %v321_v41 = vpop.xlane.xlu0 %320  ;;  %v324_v54 = vpop.xlane.xlu1 %323  ;;  %v410_v15 = vmul.f32 0.03125, %v315_v25  ;;  %v536_v25 = vmul.f32 %v5309_v4, %v5309_v4 }
  0xf8   :  { %v412_v33 = vmul.f32 0.03125, %v321_v41  ;;  %8071 = vst [vmem:[#allocation2_spill] sm:$0xff] %v5326_v63  ;;  %v413_v10 = vmul.f32 0.03125, %v324_v54  ;;  %v539_v31 = vmul.f32 %v5326_v63, %v5326_v63 }
  0xf9   :  { %v5321_v24 = vsub.f32 %v4912_v48, %v410_v15  ;;  %v692_v48 = vsel %vm168_vm0, %v536_v25, 0.0  ;;  %v8072_v15 = vld [vmem:[#allocation3_spill] sm:$0xff] }
  0xfa   :  { %v5333_v56 = vsub.f32 %v8072_v15, %v412_v33  ;;  %v8076_v33 = vld [vmem:[#allocation5_spill] sm:$0xff] }
  0xfb   :  { %678 = vadd.xlane.f32.xlu1 %v677_v26  ;;  %681 = vadd.xlane.f32.xlu0 %v680_v6  ;;  %v327_v53 = vpop.xlane.xlu0 %326  ;;  %v330_v26 = vpop.xlane.xlu1 %329  ;;  %v537_v6 = vmul.f32 %v5314_v9, %v5314_v9  ;;  %v538_v41 = vmul.f32 %v5321_v24, %v5321_v24 }
  0xfc   :  { %8073 = vst [vmem:[#allocation3_spill] sm:$0xff] %v5333_v56  ;;  %v415_v57 = vmul.f32 0.03125, %v330_v26  ;;  %v701_v26 = vsel %vm168_vm0, %v539_v31, 0.0 }
  0xfd   :  { %v695_v54 = vsel %vm168_vm0, %v537_v6, 0.0  ;;  %v698_v25 = vsel %vm168_vm0, %v538_v41, 0.0 }
  0xff   :  { %684 = vadd.xlane.f32.xlu1 %v683_v36  ;;  %687 = vadd.xlane.f32.xlu0 %v686_v62  ;;  %v333_v13 = vpop.xlane.xlu0 %332  ;;  %v414_v36 = vmul.f32 0.03125, %v327_v53  ;;  %v5338_v62 = vsub.f32 %v8074_v23, %v413_v10  ;;  %v336_v9 = vpop.xlane.xlu1 %335  ;;  %v540_v53 = vmul.f32 %v5333_v56, %v5333_v56  ;;  %v8078_v10 = vld [vmem:[#allocation6_spill] sm:$0xff] }
 0x100   :  { %v5350_v23 = vsub.f32 %v8078_v10, %v415_v57  ;;  %v417_v6 = vmul.f32 0.03125, %v336_v9  ;;  %v8082_v57 = vld [vmem:[#allocation8_spill] sm:$0xff]  ;;  %v8084_v10 = vld [vmem:[#allocation9_spill] sm:$0xff] }
 0x101   :  { %8075 = vst [vmem:[#allocation4_spill] sm:$0xff] %v5338_v62  ;;  %v5345_v15 = vsub.f32 %v8076_v33, %v414_v36  ;;  %v541_v63 = vmul.f32 %v5338_v62, %v5338_v62  ;;  %v704_v41 = vsel %vm168_vm0, %v540_v53, 0.0  ;;  %v8080_v36 = vld [vmem:[#allocation7_spill] sm:$0xff] }
 0x102   :  { %8079 = vst [vmem:[#allocation6_spill] sm:$0xff] %v5350_v23  ;;  %v543_v31 = vmul.f32 %v5350_v23, %v5350_v23 }
 0x103   :  { %690 = vadd.xlane.f32.xlu1 %v689_v44  ;;  %693 = vadd.xlane.f32.xlu0 %v692_v48  ;;  %8077 = vst [vmem:[#allocation5_spill] sm:$0xff] %v5345_v15  ;;  %v416_v44 = vmul.f32 0.03125, %v333_v13  ;;  %v339_v48 = vpop.xlane.xlu0 %338  ;;  %v542_v13 = vmul.f32 %v5345_v15, %v5345_v15  ;;  %v707_v9 = vsel %vm168_vm0, %v541_v63, 0.0 }
 0x104   :  { %v418_v56 = vmul.f32 0.03125, %v339_v48 }
 0x105   :  { %v5357_v33 = vsub.f32 %v8080_v36, %v416_v44  ;;  %v710_v53 = vsel %vm168_vm0, %v542_v13, 0.0 }
 0x106   :  { %v5369_v44 = vsub.f32 %v8084_v10, %v418_v56 }
 0x107   :  { %696 = vadd.xlane.f32.xlu1 %v695_v54  ;;  %699 = vadd.xlane.f32.xlu0 %v698_v25  ;;  %8081 = vst [vmem:[#allocation7_spill] sm:$0xff] %v5357_v33  ;;  %v342_v54 = vpop.xlane.xlu1 %341  ;;  %v5362_v25 = vsub.f32 %v8082_v57, %v417_v6  ;;  %v544_v48 = vmul.f32 %v5357_v33, %v5357_v33 }
 0x108   :  { %8085 = vst [vmem:[#allocation9_spill] sm:$0xff] %v5369_v44  ;;  %v419_v36 = vmul.f32 0.03125, %v342_v54  ;;  %v546_v56 = vmul.f32 %v5369_v44, %v5369_v44 }
 0x109   :  { %8083 = vst [vmem:[#allocation8_spill] sm:$0xff] %v5362_v25  ;;  %v716_v63 = vsel %vm168_vm0, %v544_v48, 0.0 }
 0x10a   :  { %v5375_v6 = vsub.f32 %v4979_v50, %v419_v36  ;;  %v722_v54 = vsel %vm168_vm0, %v546_v56, 0.0 }
 0x10b   :  { %702 = vadd.xlane.f32.xlu1 %v701_v26  ;;  %705 = vadd.xlane.f32.xlu0 %v704_v41  ;;  %v713_v26 = vsel %vm168_vm0, %v543_v31, 0.0  ;;  %v545_v41 = vmul.f32 %v5362_v25, %v5362_v25 }
 0x10c   :  { %8086 = vst [vmem:[#allocation22_spill] sm:$0xff] %v5375_v6  ;;  %v547_v57 = vmul.f32 %v5375_v6, %v5375_v6 }
 0x10d   :  { %v719_v13 = vsel %vm168_vm0, %v545_v41, 0.0 }
 0x10e   :  { %v725_v50 = vsel %vm168_vm0, %v547_v57, 0.0 }
 0x10f   :  { %708 = vadd.xlane.f32.xlu1 %v707_v9  ;;  %711 = vadd.xlane.f32.xlu0 %v710_v53 }
 0x113   :  { %714 = vadd.xlane.f32.xlu1 %v713_v26  ;;  %717 = vadd.xlane.f32.xlu0 %v716_v63 }
 0x117   :  { %720 = vadd.xlane.f32.xlu1 %v719_v13  ;;  %723 = vadd.xlane.f32.xlu0 %v722_v54 }
 0x11b   :  { %726 = vadd.xlane.f32.xlu1 %v725_v50 }
 0x128   :  { %v556_v9 = vpop.xlane.xlu0 %555 }
 0x129   :  { %v746_v31 = vmul.f32 0.03125, %v556_v9 }
 0x12b   :  { %v810_v53 = vadd.f32 1e-06, %v746_v31 }
 0x12c   :  { %v559_v10 = vpop.xlane.xlu1 %558  ;;  %v562_v36 = vpop.xlane.xlu0 %561 }
 0x12d   :  { %4076 = vrsqrt.f32 %v810_v53  ;;  %v747_v48 = vmul.f32 0.03125, %v559_v10  ;;  %v748_v26 = vmul.f32 0.03125, %v562_v36 }
 0x12f   :  { %v811_v63 = vadd.f32 1e-06, %v747_v48  ;;  %v812_v41 = vadd.f32 1e-06, %v748_v26 }
 0x130   :  { %v565_v44 = vpop.xlane.xlu1 %564  ;;  %v568_v56 = vpop.xlane.xlu0 %567 }
 0x131   :  { %4078 = vrsqrt.f32 %v811_v63  ;;  %v749_v25 = vmul.f32 0.03125, %v565_v44  ;;  %v750_v6 = vmul.f32 0.03125, %v568_v56 }
 0x132   :  { %4080 = vrsqrt.f32 %v812_v41 }
 0x133   :  { %v813_v13 = vadd.f32 1e-06, %v749_v25  ;;  %v814_v54 = vadd.f32 1e-06, %v750_v6  ;;  %v5391_v25 = vld [vmem:[%s8004_s2] ss:$0 sm:$0xff] }
 0x134   :  { %v571_v57 = vpop.xlane.xlu1 %570  ;;  %v574_v50 = vpop.xlane.xlu0 %573 }
 0x135   :  { %4082 = vrsqrt.f32 %v813_v13  ;;  %v751_v9 = vmul.f32 0.03125, %v571_v57  ;;  %v752_v31 = vmul.f32 0.03125, %v574_v50 }
 0x136   :  { %4084 = vrsqrt.f32 %v814_v54 }
 0x137   :  { %v4077_v33 = vpop.eup %4076  ;;  %v815_v53 = vadd.f32 1e-06, %v751_v9  ;;  %v816_v10 = vadd.f32 1e-06, %v752_v31 }
 0x138   :  { %v577_v36 = vpop.xlane.xlu1 %576  ;;  %v580_v48 = vpop.xlane.xlu0 %579  ;;  %v938_v26 = vmul.f32 %v4077_v33, %v4986_v20  ;;  %v8087_v20 = vld [vmem:[#allocation10_spill] sm:$0xff] }
 0x139   :  { %4086 = vrsqrt.f32 %v815_v53  ;;  %v753_v63 = vmul.f32 0.03125, %v577_v36  ;;  %v754_v44 = vmul.f32 0.03125, %v580_v48  ;;  %v5399_v36 = vld [vmem:[%s8005_s3] ss:$0 sm:$0xff] }
 0x13a   :  { %4088 = vrsqrt.f32 %v816_v10  ;;  %v1009_v9 = vmul.f32 %v5391_v25, %v938_v26 }
 0x13b   :  { %v4079_v6 = vpop.eup %4078  ;;  %v817_v41 = vadd.f32 1e-06, %v753_v63  ;;  %v818_v56 = vadd.f32 1e-06, %v754_v44 }
 0x13c   :  { %v4081_v13 = vpop.eup %4080  ;;  %v583_v54 = vpop.xlane.xlu1 %582  ;;  %v939_v50 = vmul.f32 %v4079_v6, %v4996_v59 }
 0x13d   :  { %v586_v57 = vpop.xlane.xlu0 %585  ;;  %v940_v33 = vmul.f32 %v4081_v13, %v8087_v20  ;;  %4090 = vrsqrt.f32 %v817_v41  ;;  %v755_v31 = vmul.f32 0.03125, %v583_v54  ;;  %v1080_v41 = vadd.f32 %v5399_v36, %v1009_v9 }
 0x13e   :  { %v756_v53 = vmul.f32 0.03125, %v586_v57  ;;  %4092 = vrsqrt.f32 %v818_v56  ;;  %v1010_v10 = vmul.f32 %v5391_v25, %v939_v50 }
 0x13f   :  { %v4083_v48 = vpop.eup %4082  ;;  %v819_v63 = vadd.f32 1e-06, %v755_v31  ;;  %v1011_v54 = vmul.f32 %v5391_v25, %v940_v33 }
 0x140   :  { %v820_v44 = vadd.f32 1e-06, %v756_v53  ;;  %v4085_v23 = vpop.eup %4084  ;;  %v941_v59 = vmul.f32 %v4083_v48, %v4999_v61  ;;  %v589_v26 = vpop.xlane.xlu1 %588  ;;  %v1081_v13 = vadd.f32 %v5399_v36, %v1010_v10 }
 0x141   :  { %v592_v6 = vpop.xlane.xlu0 %591  ;;  %v942_v57 = vmul.f32 %v4085_v23, %v5008_v7  ;;  %4094 = vrsqrt.f32 %v819_v63  ;;  %v757_v56 = vmul.f32 0.03125, %v589_v26  ;;  %v1082_v33 = vadd.f32 %v5399_v36, %v1011_v54 }
 0x142   :  { %v758_v20 = vmul.f32 0.03125, %v592_v6  ;;  %4096 = vrsqrt.f32 %v820_v44  ;;  %v1144_v50 = vpack.c.bf16 %v1081_v13, %v1080_v41  ;;  %v1012_v31 = vmul.f32 %v5391_v25, %v941_v59 }
 0x143   :  { %v4087_v53 = vpop.eup %4086  ;;  %v821_v15 = vadd.f32 1e-06, %v757_v56  ;;  %v1013_v23 = vmul.f32 %v5391_v25, %v942_v57 }
 0x144   :  { %v822_v61 = vadd.f32 1e-06, %v758_v20  ;;  %v4089_v48 = vpop.eup %4088  ;;  %v943_v62 = vmul.f32 %v4087_v53, %v5011_v8  ;;  %v595_v9 = vpop.xlane.xlu1 %594  ;;  %3905 = vmatprep.mubr.msk.bf16.mxu0 %vm168_vm0, %v1144_v50  ;;  %v1083_v7 = vadd.f32 %v5399_v36, %v1012_v31 }
 0x145   :  { %v598_v10 = vpop.xlane.xlu0 %597  ;;  %v944_v63 = vmul.f32 %v4089_v48, %v5020_v60  ;;  %4098 = vrsqrt.f32 %v821_v15  ;;  %v759_v44 = vmul.f32 0.03125, %v595_v9  ;;  %v1084_v57 = vadd.f32 %v5399_v36, %v1013_v23 }
 0x146   :  { %v760_v59 = vmul.f32 0.03125, %v598_v10  ;;  %4100 = vrsqrt.f32 %v822_v61  ;;  %v1145_v26 = vpack.c.bf16 %v1083_v7, %v1082_v33  ;;  %v1014_v6 = vmul.f32 %v5391_v25, %v943_v62 }
 0x147   :  { %v4091_v8 = vpop.eup %4090  ;;  %v823_v41 = vadd.f32 1e-06, %v759_v44  ;;  %v1015_v15 = vmul.f32 %v5391_v25, %v944_v63 }
 0x148   :  { %v824_v13 = vadd.f32 1e-06, %v760_v59  ;;  %v4093_v56 = vpop.eup %4092  ;;  %v945_v20 = vmul.f32 %v4091_v8, %v5023_v16  ;;  %v601_v54 = vpop.xlane.xlu1 %600  ;;  %3906 = vmatmul.mubr.msk.bf16.vlgmr.msra.gmra.mrb[0].mxu0 %vm168_vm0, %v1145_v26  ;;  %v1085_v60 = vadd.f32 %v5399_v36, %v1014_v6 }
 0x149   :  { %v604_v50 = vpop.xlane.xlu0 %603  ;;  %v946_v31 = vmul.f32 %v4093_v56, %v5032_v3  ;;  %4102 = vrsqrt.f32 %v823_v41  ;;  %v761_v62 = vmul.f32 0.03125, %v601_v54  ;;  %v1086_v63 = vadd.f32 %v5399_v36, %v1015_v15 }
 0x14a   :  { %v762_v53 = vmul.f32 0.03125, %v604_v50  ;;  %4104 = vrsqrt.f32 %v824_v13  ;;  %v1146_v61 = vpack.c.bf16 %v1085_v60, %v1084_v57  ;;  %v1016_v48 = vmul.f32 %v5391_v25, %v945_v20 }
 0x14b   :  { %v4095_v16 = vpop.eup %4094  ;;  %v825_v9 = vadd.f32 1e-06, %v761_v62  ;;  %v1017_v59 = vmul.f32 %v5391_v25, %v946_v31 }
 0x14c   :  { %v826_v10 = vadd.f32 1e-06, %v762_v53  ;;  %v4097_v33 = vpop.eup %4096  ;;  %v947_v7 = vmul.f32 %v4095_v16, %v5035_v22  ;;  %v607_v23 = vpop.xlane.xlu1 %606  ;;  %3909 = vmatprep.mubr.msk.bf16.mxu0 %vm168_vm0, %v1146_v61  ;;  %v1087_v3 = vadd.f32 %v5399_v36, %v1016_v48 }
 0x14d   :  { %v610_v44 = vpop.xlane.xlu0 %609  ;;  %v948_v26 = vmul.f32 %v4097_v33, %v5044_v49  ;;  %4106 = vrsqrt.f32 %v825_v9  ;;  %v763_v6 = vmul.f32 0.03125, %v607_v23  ;;  %v1088_v15 = vadd.f32 %v5399_v36, %v1017_v59 }
 0x14e   :  { %v764_v8 = vmul.f32 0.03125, %v610_v44  ;;  %4108 = vrsqrt.f32 %v826_v10  ;;  %v1147_v41 = vpack.c.bf16 %v1087_v3, %v1086_v63  ;;  %v1018_v13 = vmul.f32 %v5391_v25, %v947_v7 }
 0x14f   :  { %v4099_v22 = vpop.eup %4098  ;;  %v827_v56 = vadd.f32 1e-06, %v763_v6  ;;  %v1019_v31 = vmul.f32 %v5391_v25, %v948_v26 }
 0x150   :  { %v828_v20 = vadd.f32 1e-06, %v764_v8  ;;  %v4101_v54 = vpop.eup %4100  ;;  %v949_v50 = vmul.f32 %v4099_v22, %v5047_v28  ;;  %v613_v57 = vpop.xlane.xlu1 %612  ;;  %3910 = vmatmul.mubr.msk.bf16.gmra.mrb[4].mxu0 %vm168_vm0, %v1147_v41  ;;  %v1089_v49 = vadd.f32 %v5399_v36, %v1018_v13 }
 0x151   :  { %v345_v60 = vpop.xlane.xlu0 %344  ;;  %v950_v62 = vmul.f32 %v4101_v54, %v5056_v17  ;;  %4110 = vrsqrt.f32 %v827_v56  ;;  %v765_v53 = vmul.f32 0.03125, %v613_v57  ;;  %v1090_v63 = vadd.f32 %v5399_v36, %v1019_v31 }
 0x152   :  { %v420_v61 = vmul.f32 0.03125, %v345_v60  ;;  %4112 = vrsqrt.f32 %v828_v20  ;;  %v1148_v48 = vpack.c.bf16 %v1089_v49, %v1088_v15  ;;  %v1020_v16 = vmul.f32 %v5391_v25, %v949_v50 }
 0x153   :  { %v4103_v28 = vpop.eup %4102  ;;  %v829_v9 = vadd.f32 1e-06, %v765_v53  ;;  %v1021_v33 = vmul.f32 %v5391_v25, %v950_v62 }
 0x154   :  { %v5437_v10 = vsub.f32 %v5103_v5, %v420_v61  ;;  %v4105_v7 = vpop.eup %4104  ;;  %v951_v23 = vmul.f32 %v4103_v28, %v5059_v34  ;;  %v348_v44 = vpop.xlane.xlu1 %347  ;;  %3913 = vmatprep.mubr.msk.bf16.mxu0 %vm168_vm0, %v1148_v48  ;;  %v1091_v3 = vadd.f32 %v5399_v36, %v1020_v16  ;;  %v8088_v16 = vld [vmem:[#allocation16_spill] sm:$0xff] }
 0x155   :  { %v616_v17 = vpop.xlane.xlu0 %615  ;;  %v952_v59 = vmul.f32 %v4105_v7, %v5068_v35  ;;  %4114 = vrsqrt.f32 %v829_v9  ;;  %v421_v26 = vmul.f32 0.03125, %v348_v44  ;;  %v1092_v56 = vadd.f32 %v5399_v36, %v1021_v33  ;;  %v8089_v7 = vld [vmem:[#allocation11_spill] sm:$0xff] }
 0x156   :  { %v766_v6 = vmul.f32 0.03125, %v616_v17  ;;  %v1149_v5 = vpack.c.bf16 %v1091_v3, %v1090_v63  ;;  %v548_v8 = vmul.f32 %v5437_v10, %v5437_v10  ;;  %v1022_v41 = vmul.f32 %v5391_v25, %v951_v23 }
 0x157   :  { %v4107_v34 = vpop.eup %4106  ;;  %v5449_v13 = vsub.f32 %v5122_v52, %v421_v26  ;;  %v1023_v15 = vmul.f32 %v5391_v25, %v952_v59  ;;  %v8090_v59 = vld [vmem:[#allocation12_spill] sm:$0xff] }
 0x158   :  { %v830_v22 = vadd.f32 1e-06, %v766_v6  ;;  %v4109_v20 = vpop.eup %4108  ;;  %v953_v54 = vmul.f32 %v4107_v34, %v5071_v40  ;;  %v619_v35 = vpop.xlane.xlu1 %618  ;;  %3914 = vmatmul.mubr.msk.bf16.gmra.mrb[8].mxu0 %vm168_vm0, %v1149_v5  ;;  %v728_v50 = vsel %vm168_vm0, %v548_v8, 0.0  ;;  %v1093_v60 = vadd.f32 %v5399_v36, %v1022_v41 }
 0x159   :  { %v351_v57 = vpop.xlane.xlu0 %350  ;;  %v954_v49 = vmul.f32 %v4109_v20, %v5080_v43  ;;  %v767_v52 = vmul.f32 0.03125, %v619_v35  ;;  %729 = vadd.xlane.f32.xlu0 %v728_v50  ;;  %v549_v62 = vmul.f32 %v5449_v13, %v5449_v13  ;;  %v1094_v63 = vadd.f32 %v5399_v36, %v1023_v15  ;;  %v8091_v35 = vld [vmem:[#allocation13_spill] sm:$0xff] }
 0x15a   :  { %4116 = vrsqrt.f32 %v830_v22  ;;  %v422_v31 = vmul.f32 0.03125, %v351_v57  ;;  %v1150_v40 = vpack.c.bf16 %v1093_v60, %v1092_v56  ;;  %v1024_v53 = vmul.f32 %v5391_v25, %v953_v54 }
 0x15b   :  { %v4111_v61 = vpop.eup %4110  ;;  %v831_v48 = vadd.f32 1e-06, %v767_v52  ;;  %v1025_v9 = vmul.f32 %v5391_v25, %v954_v49  ;;  %v731_v23 = vsel %vm168_vm0, %v549_v62, 0.0 }
 0x15c   :  { %v5462_v28 = vsub.f32 %v8088_v16, %v422_v31  ;;  %v4113_v33 = vpop.eup %4112  ;;  %v955_v43 = vmul.f32 %v4111_v61, %v8089_v7  ;;  %v354_v44 = vpop.xlane.xlu1 %353  ;;  %3917 = vmatprep.mubr.msk.bf16.mxu0 %vm168_vm0, %v1150_v40  ;;  %v1095_v3 = vadd.f32 %v5399_v36, %v1024_v53  ;;  %732 = vadd.xlane.f32.xlu1 %v731_v23 }
 0x15d   :  { %v622_v17 = vpop.xlane.xlu0 %621  ;;  %v956_v26 = vmul.f32 %v4113_v33, %v8090_v59  ;;  %4118 = vrsqrt.f32 %v831_v48  ;;  %v423_v6 = vmul.f32 0.03125, %v354_v44  ;;  %v1096_v54 = vadd.f32 %v5399_v36, %v1025_v9  ;;  %v8092_v33 = vld [vmem:[#allocation14_spill] sm:$0xff] }
 0x15e   :  { %v768_v5 = vmul.f32 0.03125, %v622_v17  ;;  %v1151_v8 = vpack.c.bf16 %v1095_v3, %v1094_v63  ;;  %v550_v41 = vmul.f32 %v5462_v28, %v5462_v28  ;;  %v1026_v34 = vmul.f32 %v5391_v25, %v955_v43 }
 0x15f   :  { %v4115_v22 = vpop.eup %4114  ;;  %v5475_v56 = vsub.f32 %v5153_v46, %v423_v6  ;;  %v1027_v52 = vmul.f32 %v5391_v25, %v956_v26 }
 0x160   :  { %v832_v20 = vadd.f32 1e-06, %v768_v5  ;;  %v957_v50 = vmul.f32 %v4115_v22, %v8091_v35  ;;  %v625_v57 = vpop.xlane.xlu1 %624  ;;  %3918 = vmatmul.mubr.msk.bf16.gmra.mrb[12].mxu0 %vm168_vm0, %v1151_v8  ;;  %v734_v60 = vsel %vm168_vm0, %v550_v41, 0.0  ;;  %v1097_v49 = vadd.f32 %v5399_v36, %v1026_v34  ;;  %v8093_v41 = vld [vmem:[#allocation15_spill] sm:$0xff] }
 0x161   :  { %v357_v15 = vpop.xlane.xlu0 %356  ;;  %v769_v31 = vmul.f32 0.03125, %v625_v57  ;;  %735 = vadd.xlane.f32.xlu0 %v734_v60  ;;  %v551_v62 = vmul.f32 %v5475_v56, %v5475_v56  ;;  %v1098_v44 = vadd.f32 %v5399_v36, %v1027_v52 }
 0x162   :  { %4120 = vrsqrt.f32 %v832_v20  ;;  %v424_v46 = vmul.f32 0.03125, %v357_v15  ;;  %v1152_v40 = vpack.c.bf16 %v1097_v49, %v1096_v54  ;;  %v1028_v53 = vmul.f32 %v5391_v25, %v957_v50 }
 0x163   :  { %v833_v48 = vadd.f32 1e-06, %v769_v31  ;;  %v737_v9 = vsel %vm168_vm0, %v551_v62, 0.0  ;;  %v8094_v31 = vld [vmem:[#allocation17_spill] sm:$0xff] }
 0x164   :  { %v4117_v61 = vpop.eup %4116  ;;  %v5487_v16 = vsub.f32 %v5167_v12, %v424_v46  ;;  %738 = vadd.xlane.f32.xlu1 %v737_v9  ;;  %v360_v43 = vpop.xlane.xlu1 %359  ;;  %3921 = vmatprep.mubr.msk.bf16.mxu0 %vm168_vm0, %v1152_v40  ;;  %v1099_v17 = vadd.f32 %v5399_v36, %v1028_v53 }
 0x165   :  { %v958_v7 = vmul.f32 %v4117_v61, %v8092_v33  ;;  %v628_v23 = vpop.xlane.xlu0 %627  ;;  %4122 = vrsqrt.f32 %v833_v48  ;;  %v425_v63 = vmul.f32 0.03125, %v360_v43 }
 0x166   :  { %v770_v3 = vmul.f32 0.03125, %v628_v23  ;;  %v552_v12 = vmul.f32 %v5487_v16, %v5487_v16  ;;  %v1153_v59 = vpack.c.bf16 %v1099_v17, %v1098_v44  ;;  %v8095_v44 = vld [vmem:[#allocation18_spill] sm:$0xff] }
 0x167   :  { %v4119_v26 = vpop.eup %4118  ;;  %v5497_v6 = vsub.f32 %v5184_v18, %v425_v63  ;;  %v1029_v54 = vmul.f32 %v5391_v25, %v958_v7 }
 0x168   :  { %v834_v5 = vadd.f32 1e-06, %v770_v3  ;;  %v740_v8 = vsel %vm168_vm0, %v552_v12, 0.0  ;;  %v959_v34 = vmul.f32 %v4119_v26, %v8093_v41  ;;  %v631_v22 = vpop.xlane.xlu1 %630  ;;  %3922 = vmatmul.mubr.msk.bf16.gmra.mrb[16].mxu0 %vm168_vm0, %v1153_v59 }
 0x169   :  { %741 = vadd.xlane.f32.xlu0 %v740_v8  ;;  %v634_v20 = vpop.xlane.xlu0 %633  ;;  %v771_v35 = vmul.f32 0.03125, %v631_v22  ;;  %v553_v57 = vmul.f32 %v5497_v6, %v5497_v6  ;;  %v1100_v53 = vadd.f32 %v5399_v36, %v1029_v54 }
 0x16a   :  { %4124 = vrsqrt.f32 %v834_v5  ;;  %v772_v50 = vmul.f32 0.03125, %v634_v20  ;;  %v1030_v18 = vmul.f32 %v5391_v25, %v959_v34 }
 0x16b   :  { %v835_v15 = vadd.f32 1e-06, %v771_v35  ;;  %v743_v52 = vsel %vm168_vm0, %v553_v57, 0.0 }
 0x16c   :  { %v4121_v60 = vpop.eup %4120  ;;  %v836_v49 = vadd.f32 1e-06, %v772_v50  ;;  %744 = vadd.xlane.f32.xlu1 %v743_v52  ;;  %v637_v62 = vpop.xlane.xlu1 %636  ;;  %v1101_v61 = vadd.f32 %v5399_v36, %v1030_v18 }
 0x16d   :  { %v960_v46 = vmul.f32 %v4121_v60, %v8094_v31  ;;  %v640_v40 = vpop.xlane.xlu0 %639  ;;  %4126 = vrsqrt.f32 %v835_v15  ;;  %v773_v48 = vmul.f32 0.03125, %v637_v62 }
 0x16e   :  { %v774_v9 = vmul.f32 0.03125, %v640_v40  ;;  %4128 = vrsqrt.f32 %v836_v49  ;;  %v1154_v33 = vpack.c.bf16 %v1101_v61, %v1100_v53 }
 0x16f   :  { %v4123_v7 = vpop.eup %4122  ;;  %v837_v43 = vadd.f32 1e-06, %v773_v48  ;;  %v1031_v12 = vmul.f32 %v5391_v25, %v960_v46  ;;  %v8096_v46 = vld [vmem:[#allocation19_spill] sm:$0xff] }
 0x170   :  { %v838_v23 = vadd.f32 1e-06, %v774_v9  ;;  %v961_v17 = vmul.f32 %v4123_v7, %v8095_v44  ;;  %v643_v63 = vpop.xlane.xlu1 %642  ;;  %3925 = vmatprep.mubr.msk.bf16.mxu0 %vm168_vm0, %v1154_v33 }
 0x171   :  { %v646_v3 = vpop.xlane.xlu0 %645  ;;  %4130 = vrsqrt.f32 %v837_v43  ;;  %v775_v59 = vmul.f32 0.03125, %v643_v63  ;;  %v1102_v35 = vadd.f32 %v5399_v36, %v1031_v12 }
 0x172   :  { %v776_v26 = vmul.f32 0.03125, %v646_v3  ;;  %4132 = vrsqrt.f32 %v838_v23  ;;  %v1032_v5 = vmul.f32 %v5391_v25, %v961_v17 }
 0x173   :  { %v839_v41 = vadd.f32 1e-06, %v775_v59 }
 0x174   :  { %v4125_v8 = vpop.eup %4124  ;;  %v840_v34 = vadd.f32 1e-06, %v776_v26  ;;  %v649_v20 = vpop.xlane.xlu1 %648  ;;  %v1103_v50 = vadd.f32 %v5399_v36, %v1032_v5 }
 0x175   :  { %v962_v22 = vmul.f32 %v4125_v8, %v5171_v58  ;;  %v652_v54 = vpop.xlane.xlu0 %651  ;;  %4134 = vrsqrt.f32 %v839_v41  ;;  %v777_v57 = vmul.f32 0.03125, %v649_v20 }
 0x176   :  { %v778_v18 = vmul.f32 0.03125, %v652_v54  ;;  %4136 = vrsqrt.f32 %v840_v34  ;;  %v1155_v60 = vpack.c.bf16 %v1103_v50, %v1102_v35 }
 0x177   :  { %v4127_v15 = vpop.eup %4126  ;;  %v841_v49 = vadd.f32 1e-06, %v777_v57  ;;  %v1033_v53 = vmul.f32 %v5391_v25, %v962_v22 }
 0x178   :  { %v842_v52 = vadd.f32 1e-06, %v778_v18  ;;  %v4129_v31 = vpop.eup %4128  ;;  %v963_v62 = vmul.f32 %v4127_v15, %v8096_v46  ;;  %v655_v40 = vpop.xlane.xlu1 %654  ;;  %3926 = vmatmul.mubr.msk.bf16.gmra.mrb[20].mxu0 %vm168_vm0, %v1155_v60 }
 0x179   :  { %v658_v58 = vpop.xlane.xlu0 %657  ;;  %v964_v61 = vmul.f32 %v4129_v31, %v5188_v45  ;;  %4138 = vrsqrt.f32 %v841_v49  ;;  %v779_v48 = vmul.f32 0.03125, %v655_v40  ;;  %v1104_v12 = vadd.f32 %v5399_v36, %v1033_v53 }
 0x17a   :  { %v780_v9 = vmul.f32 0.03125, %v658_v58  ;;  %4140 = vrsqrt.f32 %v842_v52  ;;  %v1034_v33 = vmul.f32 %v5391_v25, %v963_v62 }
 0x17b   :  { %v4131_v7 = vpop.eup %4130  ;;  %v843_v43 = vadd.f32 1e-06, %v779_v48  ;;  %v1035_v45 = vmul.f32 %v5391_v25, %v964_v61 }
 0x17c   :  { %v844_v23 = vadd.f32 1e-06, %v780_v9  ;;  %v4133_v44 = vpop.eup %4132  ;;  %v965_v17 = vmul.f32 %v4131_v7, %v5193_v19  ;;  %v661_v63 = vpop.xlane.xlu1 %660  ;;  %v1105_v59 = vadd.f32 %v5399_v36, %v1034_v33 }
 0x17d   :  { %v664_v3 = vpop.xlane.xlu0 %663  ;;  %v966_v26 = vmul.f32 %v4133_v44, %v5201_v21  ;;  %4142 = vrsqrt.f32 %v843_v43  ;;  %v781_v5 = vmul.f32 0.03125, %v661_v63  ;;  %v1106_v18 = vadd.f32 %v5399_v36, %v1035_v45 }
 0x17e   :  { %v782_v8 = vmul.f32 0.03125, %v664_v3  ;;  %4144 = vrsqrt.f32 %v844_v23  ;;  %v1156_v41 = vpack.c.bf16 %v1105_v59, %v1104_v12  ;;  %v1036_v34 = vmul.f32 %v5391_v25, %v965_v17 }
 0x17f   :  { %v4135_v22 = vpop.eup %4134  ;;  %v845_v20 = vadd.f32 1e-06, %v781_v5  ;;  %v1037_v60 = vmul.f32 %v5391_v25, %v966_v26 }
 0x180   :  { %v846_v19 = vadd.f32 1e-06, %v782_v8  ;;  %v4137_v54 = vpop.eup %4136  ;;  %v967_v35 = vmul.f32 %v4135_v22, %v5206_v29  ;;  %v667_v50 = vpop.xlane.xlu1 %666  ;;  %3929 = vmatprep.mubr.msk.bf16.mxu0 %vm168_vm0, %v1156_v41  ;;  %v1107_v21 = vadd.f32 %v5399_v36, %v1036_v34 }
 0x181   :  { %v670_v57 = vpop.xlane.xlu0 %669  ;;  %v968_v15 = vmul.f32 %v4137_v54, %v5213_v51  ;;  %4146 = vrsqrt.f32 %v845_v20  ;;  %v783_v49 = vmul.f32 0.03125, %v667_v50  ;;  %v1108_v9 = vadd.f32 %v5399_v36, %v1037_v60 }
 0x182   :  { %v784_v52 = vmul.f32 0.03125, %v670_v57  ;;  %4148 = vrsqrt.f32 %v846_v19  ;;  %v1157_v31 = vpack.c.bf16 %v1107_v21, %v1106_v18  ;;  %v1038_v46 = vmul.f32 %v5391_v25, %v967_v35 }
 0x183   :  { %v4139_v29 = vpop.eup %4138  ;;  %v847_v62 = vadd.f32 1e-06, %v783_v49  ;;  %v1039_v33 = vmul.f32 %v5391_v25, %v968_v15 }
 0x184   :  { %v848_v40 = vadd.f32 1e-06, %v784_v52  ;;  %v4141_v58 = vpop.eup %4140  ;;  %v969_v53 = vmul.f32 %v4139_v29, %v5218_v37  ;;  %v673_v61 = vpop.xlane.xlu1 %672  ;;  %3930 = vmatmul.mubr.msk.bf16.gmra.mrb[24].mxu0 %vm168_vm0, %v1157_v31  ;;  %v1109_v51 = vadd.f32 %v5399_v36, %v1038_v46 }
 0x185   :  { %v676_v48 = vpop.xlane.xlu0 %675  ;;  %v970_v7 = vmul.f32 %v4141_v58, %v5225_v38  ;;  %4150 = vrsqrt.f32 %v847_v62  ;;  %v785_v43 = vmul.f32 0.03125, %v673_v61  ;;  %v1110_v5 = vadd.f32 %v5399_v36, %v1039_v33 }
 0x186   :  { %v786_v23 = vmul.f32 0.03125, %v676_v48  ;;  %4152 = vrsqrt.f32 %v848_v40  ;;  %v1158_v44 = vpack.c.bf16 %v1109_v51, %v1108_v9  ;;  %v1040_v17 = vmul.f32 %v5391_v25, %v969_v53 }
 0x187   :  { %v4143_v37 = vpop.eup %4142  ;;  %v849_v63 = vadd.f32 1e-06, %v785_v43  ;;  %v1041_v8 = vmul.f32 %v5391_v25, %v970_v7 }
 0x188   :  { %v850_v3 = vadd.f32 1e-06, %v786_v23  ;;  %v4145_v12 = vpop.eup %4144  ;;  %v971_v59 = vmul.f32 %v4143_v37, %v5230_v47  ;;  %v679_v45 = vpop.xlane.xlu1 %678  ;;  %3933 = vmatprep.mubr.msk.bf16.mxu0 %vm168_vm0, %v1158_v44  ;;  %v1111_v38 = vadd.f32 %v5399_v36, %v1040_v17 }
 0x189   :  { %v682_v26 = vpop.xlane.xlu0 %681  ;;  %v972_v41 = vmul.f32 %v4145_v12, %v5237_v1  ;;  %4154 = vrsqrt.f32 %v849_v63  ;;  %v787_v34 = vmul.f32 0.03125, %v679_v45  ;;  %v1112_v60 = vadd.f32 %v5399_v36, %v1041_v8 }
 0x18a   :  { %v788_v22 = vmul.f32 0.03125, %v682_v26  ;;  %4156 = vrsqrt.f32 %v850_v3  ;;  %v1159_v20 = vpack.c.bf16 %v1111_v38, %v1110_v5  ;;  %v1042_v19 = vmul.f32 %v5391_v25, %v971_v59 }
 0x18b   :  { %v4147_v47 = vpop.eup %4146  ;;  %v851_v54 = vadd.f32 1e-06, %v787_v34  ;;  %v1043_v15 = vmul.f32 %v5391_v25, %v972_v41 }
 0x18c   :  { %v852_v35 = vadd.f32 1e-06, %v788_v22  ;;  %v4149_v50 = vpop.eup %4148  ;;  %v973_v57 = vmul.f32 %v4147_v47, %v5242_v55  ;;  %v685_v18 = vpop.xlane.xlu1 %684  ;;  %3934 = vmatmul.mubr.msk.bf16.gmra.mrb[28].mxu0 %vm168_vm0, %v1159_v20  ;;  %v1113_v1 = vadd.f32 %v5399_v36, %v1042_v19 }
 0x18d   :  { %v688_v21 = vpop.xlane.xlu0 %687  ;;  %v974_v49 = vmul.f32 %v4149_v50, %v5249_v32  ;;  %4158 = vrsqrt.f32 %v851_v54  ;;  %v789_v52 = vmul.f32 0.03125, %v685_v18  ;;  %v1114_v9 = vadd.f32 %v5399_v36, %v1043_v15 }
 0x18e   :  { %v790_v31 = vmul.f32 0.03125, %v688_v21  ;;  %4160 = vrsqrt.f32 %v852_v35  ;;  %v1160_v46 = vpack.c.bf16 %v1113_v1, %v1112_v60  ;;  %v1044_v29 = vmul.f32 %v5391_v25, %v973_v57 }
 0x18f   :  { %v4151_v55 = vpop.eup %4150  ;;  %v853_v62 = vadd.f32 1e-06, %v789_v52  ;;  %v1045_v51 = vmul.f32 %v5391_v25, %v974_v49 }
 0x190   :  { %v854_v40 = vadd.f32 1e-06, %v790_v31  ;;  %v4153_v58 = vpop.eup %4152  ;;  %v975_v53 = vmul.f32 %v4151_v55, %v5254_v2  ;;  %v691_v61 = vpop.xlane.xlu1 %690  ;;  %3937 = vmatprep.mubr.msk.bf16.mxu0 %vm168_vm0, %v1160_v46  ;;  %v1115_v32 = vadd.f32 %v5399_v36, %v1044_v29 }
 0x191   :  { %v694_v48 = vpop.xlane.xlu0 %693  ;;  %v976_v33 = vmul.f32 %v4153_v58, %v5261_v39  ;;  %4162 = vrsqrt.f32 %v853_v62  ;;  %v791_v7 = vmul.f32 0.03125, %v691_v61  ;;  %v1116_v45 = vadd.f32 %v5399_v36, %v1045_v51 }
 0x192   :  { %v792_v43 = vmul.f32 0.03125, %v694_v48  ;;  %4164 = vrsqrt.f32 %v854_v40  ;;  %v1161_v23 = vpack.c.bf16 %v1115_v32, %v1114_v9  ;;  %v1046_v44 = vmul.f32 %v5391_v25, %v975_v53 }
 0x193   :  { %v4155_v2 = vpop.eup %4154  ;;  %v855_v17 = vadd.f32 1e-06, %v791_v7  ;;  %v1047_v26 = vmul.f32 %v5391_v25, %v976_v33  ;;  %v8097_v7 = vld [vmem:[#allocation20_spill] sm:$0xff] }
 0x194   :  { %v856_v37 = vadd.f32 1e-06, %v792_v43  ;;  %v4157_v63 = vpop.eup %4156  ;;  %v977_v3 = vmul.f32 %v4155_v2, %v5266_v14  ;;  %v697_v12 = vpop.xlane.xlu1 %696  ;;  %3938 = vmatmul.mubr.msk.bf16.gmra.mrb[32].mxu0 %vm168_vm0, %v1161_v23  ;;  %v1117_v39 = vadd.f32 %v5399_v36, %v1046_v44 }
 0x195   :  { %v700_v59 = vpop.xlane.xlu0 %699  ;;  %v978_v5 = vmul.f32 %v4157_v63, %v5273_v27  ;;  %4166 = vrsqrt.f32 %v855_v17  ;;  %v793_v38 = vmul.f32 0.03125, %v697_v12  ;;  %v1118_v50 = vadd.f32 %v5399_v36, %v1047_v26 }
 0x196   :  { %v794_v8 = vmul.f32 0.03125, %v700_v59  ;;  %4168 = vrsqrt.f32 %v856_v37  ;;  %v1162_v41 = vpack.c.bf16 %v1117_v39, %v1116_v45  ;;  %v1048_v34 = vmul.f32 %v5391_v25, %v977_v3 }
 0x197   :  { %v4159_v14 = vpop.eup %4158  ;;  %v857_v22 = vadd.f32 1e-06, %v793_v38  ;;  %v1049_v57 = vmul.f32 %v5391_v25, %v978_v5  ;;  %v8098_v38 = vld [vmem:[#allocation21_spill] sm:$0xff] }
 0x198   :  { %v858_v20 = vadd.f32 1e-06, %v794_v8  ;;  %v4161_v19 = vpop.eup %4160  ;;  %v979_v47 = vmul.f32 %v4159_v14, %v5278_v30  ;;  %v703_v54 = vpop.xlane.xlu1 %702  ;;  %3941 = vmatprep.mubr.msk.bf16.mxu0 %vm168_vm0, %v1162_v41  ;;  %v1119_v27 = vadd.f32 %v5399_v36, %v1048_v34 }
 0x199   :  { %v706_v35 = vpop.xlane.xlu0 %705  ;;  %v980_v18 = vmul.f32 %v4161_v19, %v5285_v0  ;;  %4170 = vrsqrt.f32 %v857_v22  ;;  %v795_v21 = vmul.f32 0.03125, %v703_v54  ;;  %v1120_v62 = vadd.f32 %v5399_v36, %v1049_v57 }
 0x19a   :  { %v796_v60 = vmul.f32 0.03125, %v706_v35  ;;  %4172 = vrsqrt.f32 %v858_v20  ;;  %v1163_v1 = vpack.c.bf16 %v1119_v27, %v1118_v50  ;;  %v1050_v15 = vmul.f32 %v5391_v25, %v979_v47 }
 0x19b   :  { %v4163_v30 = vpop.eup %4162  ;;  %v859_v49 = vadd.f32 1e-06, %v795_v21  ;;  %v1051_v40 = vmul.f32 %v5391_v25, %v980_v18  ;;  %v8099_v21 = vld [vmem:[#allocation2_spill] sm:$0xff] }
 0x19c   :  { %v860_v52 = vadd.f32 1e-06, %v796_v60  ;;  %v4165_v31 = vpop.eup %4164  ;;  %v981_v46 = vmul.f32 %v4163_v30, %v5290_v42  ;;  %v709_v29 = vpop.xlane.xlu1 %708  ;;  %3942 = vmatmul.mubr.msk.bf16.gmra.mrb[36].mxu0 %vm168_vm0, %v1163_v1  ;;  %v1121_v0 = vadd.f32 %v5399_v36, %v1050_v15 }
 0x19d   :  { %v712_v55 = vpop.xlane.xlu0 %711  ;;  %v982_v58 = vmul.f32 %v4165_v31, %v5297_v11  ;;  %4174 = vrsqrt.f32 %v859_v49  ;;  %v797_v53 = vmul.f32 0.03125, %v709_v29  ;;  %v1122_v2 = vadd.f32 %v5399_v36, %v1051_v40  ;;  %v8100_v49 = vld [vmem:[#allocation3_spill] sm:$0xff]  ;;  %v8101_v40 = vld [vmem:[#allocation4_spill] sm:$0xff] }
 0x19e   :  { %v798_v61 = vmul.f32 0.03125, %v712_v55  ;;  %4176 = vrsqrt.f32 %v860_v52  ;;  %v1164_v48 = vpack.c.bf16 %v1121_v0, %v1120_v62  ;;  %v1052_v9 = vmul.f32 %v5391_v25, %v981_v46 }
 0x19f   :  { %v4167_v42 = vpop.eup %4166  ;;  %v861_v32 = vadd.f32 1e-06, %v797_v53  ;;  %v1053_v17 = vmul.f32 %v5391_v25, %v982_v58 }
 0x1a0   :  { %v862_v51 = vadd.f32 1e-06, %v798_v61  ;;  %v4169_v33 = vpop.eup %4168  ;;  %v983_v43 = vmul.f32 %v4167_v42, %v8097_v7  ;;  %v715_v23 = vpop.xlane.xlu1 %714  ;;  %3945 = vmatprep.mubr.msk.bf16.mxu0 %vm168_vm0, %v1164_v48  ;;  %v1123_v11 = vadd.f32 %v5399_v36, %v1052_v9  ;;  %v8102_v9 = vld [vmem:[#allocation5_spill] sm:$0xff] }
 0x1a1   :  { %v718_v44 = vpop.xlane.xlu0 %717  ;;  %v984_v37 = vmul.f32 %v4169_v33, %v5309_v4  ;;  %4178 = vrsqrt.f32 %v861_v32  ;;  %v799_v63 = vmul.f32 0.03125, %v715_v23  ;;  %v1124_v14 = vadd.f32 %v5399_v36, %v1053_v17  ;;  %v8104_v17 = vld [vmem:[#allocation7_spill] sm:$0xff] }
 0x1a2   :  { %v800_v3 = vmul.f32 0.03125, %v718_v44  ;;  %4180 = vrsqrt.f32 %v862_v51  ;;  %v1165_v12 = vpack.c.bf16 %v1123_v11, %v1122_v2  ;;  %v1054_v59 = vmul.f32 %v5391_v25, %v983_v43  ;;  %v8103_v43 = vld [vmem:[#allocation6_spill] sm:$0xff] }
 0x1a3   :  { %v4171_v45 = vpop.eup %4170  ;;  %v863_v39 = vadd.f32 1e-06, %v799_v63  ;;  %v1055_v22 = vmul.f32 %v5391_v25, %v984_v37 }
 0x1a4   :  { %v864_v26 = vadd.f32 1e-06, %v800_v3  ;;  %v4173_v5 = vpop.eup %4172  ;;  %v985_v8 = vmul.f32 %v4171_v45, %v8098_v38  ;;  %v721_v41 = vpop.xlane.xlu1 %720  ;;  %3946 = vmatmul.mubr.msk.bf16.gmra.mrb[40].mxu0 %vm168_vm0, %v1165_v12  ;;  %v1125_v4 = vadd.f32 %v5399_v36, %v1054_v59  ;;  %v8105_v45 = vld [vmem:[#allocation8_spill] sm:$0xff] }
 0x1a5   :  { %v724_v34 = vpop.xlane.xlu0 %723  ;;  %v986_v20 = vmul.f32 %v4173_v5, %v5321_v24  ;;  %4182 = vrsqrt.f32 %v863_v39  ;;  %v801_v19 = vmul.f32 0.03125, %v721_v41  ;;  %v1126_v15 = vadd.f32 %v5399_v36, %v1055_v22 }
 0x1a6   :  { %v802_v47 = vmul.f32 0.03125, %v724_v34  ;;  %4184 = vrsqrt.f32 %v864_v26  ;;  %v1166_v54 = vpack.c.bf16 %v1125_v4, %v1124_v14  ;;  %v1056_v35 = vmul.f32 %v5391_v25, %v985_v8  ;;  %v8106_v8 = vld [vmem:[#allocation9_spill] sm:$0xff]  ;;  %v5628_v14 = vld [vmem:[%s8004_s2] ss:$0 sm:$0xff] }
 0x1a7   :  { %v4175_v50 = vpop.eup %4174  ;;  %v865_v27 = vadd.f32 1e-06, %v801_v19  ;;  %v1057_v30 = vmul.f32 %v5391_v25, %v986_v20  ;;  %v8107_v20 = vld [vmem:[#allocation22_spill] sm:$0xff] }
 0x1a8   :  { %v866_v57 = vadd.f32 1e-06, %v802_v47  ;;  %v4177_v18 = vpop.eup %4176  ;;  %v987_v60 = vmul.f32 %v4175_v50, %v8099_v21  ;;  %v727_v1 = vpop.xlane.xlu1 %726  ;;  %3949 = vmatprep.mubr.msk.bf16.mxu0 %vm168_vm0, %v1166_v54  ;;  %v1127_v24 = vadd.f32 %v5399_v36, %v1056_v35  ;;  %v4068_v21 = vld [vmem:[%s8006_s6] sm:$0xff]  }
 0x1a9   :  { %v988_v52 = vmul.f32 %v4177_v18, %v8100_v49  ;;  %4186 = vrsqrt.f32 %v865_v27  ;;  %v803_v31 = vmul.f32 0.03125, %v727_v1  ;;  %v1128_v53 = vadd.f32 %v5399_v36, %v1057_v30  ;;  %3969 = vmatprep.subr.bf16.mxu0 %v4068_v21  ;;  %4049 = vmatprep.subr.bf16.mxu1 %v4068_v21  ;;  %v4070_v49 = vld [vmem:[%s8006_s6 + $0x10] sm:$0xff]  }
 0x1aa   :  { %4188 = vrsqrt.f32 %v866_v57  ;;  %v1167_v46 = vpack.c.bf16 %v1127_v24, %v1126_v15  ;;  %v1058_v29 = vmul.f32 %v5391_v25, %v987_v60  ;;  %3970 = vmatpush3.bf16.msra.mxu0 %v4068_v21  ;;  %4057 = vmatpush3.bf16.msra.mxu1 %v4068_v21  ;;  %v4069_v60 = vld [vmem:[%s8006_s6 + $0x8] sm:$0xff]  }
 0x1ab   :  { %v4179_v55 = vpop.eup %4178  ;;  %v867_v62 = vadd.f32 1e-06, %v803_v31  ;;  %v1059_v48 = vmul.f32 %v5391_v25, %v988_v52  ;;  %3971 = vmatprep.subr.bf16.mxu0 %v4069_v60  ;;  %4050 = vmatprep.subr.bf16.mxu1 %v4069_v60 }
 0x1ac   :  { %v4181_v0 = vpop.eup %4180  ;;  %v989_v58 = vmul.f32 %v4179_v55, %v8101_v40  ;;  %3950 = vmatmul.mubr.msk.bf16.gmra.mrb[44].mxu0 %vm168_vm0, %v1167_v46  ;;  %v1129_v61 = vadd.f32 %v5399_v36, %v1058_v29 }
 0x1ad   :  { %v990_v42 = vmul.f32 %v4181_v0, %v8102_v9  ;;  %4190 = vrsqrt.f32 %v867_v62  ;;  %v1130_v44 = vadd.f32 %v5399_v36, %v1059_v48 }
 0x1ae   :  { %v1168_v32 = vpack.c.bf16 %v1129_v61, %v1128_v53  ;;  %v1060_v51 = vmul.f32 %v5391_v25, %v989_v58  ;;  %3972 = vmatpush3.bf16.msra.mxu0 %v4069_v60  ;;  %4058 = vmatpush3.bf16.msra.mxu1 %v4069_v60 }
 0x1af   :  { %v4183_v33 = vpop.eup %4182  ;;  %v1061_v11 = vmul.f32 %v5391_v25, %v990_v42  ;;  %3973 = vmatprep.subr.bf16.mxu0 %v4070_v49  ;;  %4051 = vmatprep.subr.bf16.mxu1 %v4070_v49 }
 0x1b0   :  { %v4185_v7 = vpop.eup %4184  ;;  %v991_v23 = vmul.f32 %v4183_v33, %v8103_v43  ;;  %3953 = vmatprep.mubr.msk.bf16.mxu0 %vm168_vm0, %v1168_v32  ;;  %v1131_v2 = vadd.f32 %v5399_v36, %v1060_v51 }
 0x1b1   :  { %v992_v37 = vmul.f32 %v4185_v7, %v8104_v17  ;;  %v1132_v26 = vadd.f32 %v5399_v36, %v1061_v11 }
 0x1b2   :  { %v1169_v63 = vpack.c.bf16 %v1131_v2, %v1130_v44  ;;  %v1062_v3 = vmul.f32 %v5391_v25, %v991_v23  ;;  %3974 = vmatpush3.bf16.msra.mxu0 %v4070_v49  ;;  %4059 = vmatpush3.bf16.msra.mxu1 %v4070_v49 }
 0x1b3   :  { %v4187_v12 = vpop.eup %4186  ;;  %v1063_v38 = vmul.f32 %v5391_v25, %v992_v37 }
 0x1b4   :  { %v4189_v59 = vpop.eup %4188  ;;  %v993_v39 = vmul.f32 %v4187_v12, %v8105_v45  ;;  %3954 = vmatmul.mubr.msk.bf16.gmra.mrb[48].mxu0 %vm168_vm0, %v1169_v63  ;;  %v1133_v5 = vadd.f32 %v5399_v36, %v1062_v3 }
 0x1b5   :  { %v994_v41 = vmul.f32 %v4189_v59, %v8106_v8  ;;  %v1134_v47 = vadd.f32 %v5399_v36, %v1063_v38 }
 0x1b6   :  { %v1170_v34 = vpack.c.bf16 %v1133_v5, %v1132_v26  ;;  %v1064_v4 = vmul.f32 %v5628_v14, %v993_v39  ;;  %v4071_v26 = vld [vmem:[%s8006_s6 + $0x18] sm:$0xff]  }
 0x1b7   :  { %v4191_v22 = vpop.eup %4190  ;;  %v1065_v25 = vmul.f32 %v5628_v14, %v994_v41  ;;  %3975 = vmatprep.subr.bf16.mxu0 %v4071_v26  ;;  %4052 = vmatprep.subr.bf16.mxu1 %v4071_v26 }
 0x1b8   :  { %v995_v19 = vmul.f32 %v4191_v22, %v8107_v20  ;;  %3957 = vmatprep.mubr.msk.bf16.mxu0 %vm168_vm0, %v1170_v34  ;;  %v1135_v54 = vadd.f32 %v5399_v36, %v1064_v4  ;;  %3976 = vmatpush3.bf16.msra.mxu0 %v4071_v26  ;;  %v4073_v4 = vld [vmem:[%s8006_s6 + $0x28] sm:$0xff]   ;;  %v5683_v22 = vld [vmem:[%s8007_s5] ss:$0 sm:$0xff] }
 0x1b9   :  { %v1136_v27 = vadd.f32 %v5399_v36, %v1065_v25  ;;  %4060 = vmatpush3.bf16.msra.mxu1 %v4071_v26 }
 0x1ba   :  { %v1171_v35 = vpack.c.bf16 %v1135_v54, %v1134_v47  ;;  %v1066_v50 = vmul.f32 %v5628_v14, %v995_v19 }
 0x1bc   :  { %3958 = vmatmul.mubr.msk.bf16.gmra.mrb[52].mxu0 %vm168_vm0, %v1171_v35  ;;  %v1137_v57 = vadd.f32 %v5399_v36, %v1066_v50  ;;  %v4075_v35 = vld [vmem:[%s8006_s6 + $0x38] sm:$0xff]  }
 0x1be   :  { %v1172_v18 = vpack.c.bf16 %v1137_v57, %v1136_v27 }
 0x1c0   :  { %3961 = vmatprep.mubr.msk.bf16.mxu0 %vm168_vm0, %v1172_v18 }
 0x1e6   :  { %v730_v1 = vpop.xlane.xlu0 %729 }
 0x1e7   :  { %v804_v15 = vmul.f32 0.03125, %v730_v1 }
 0x1e9   :  { %v868_v36 = vadd.f32 1e-06, %v804_v15  ;;  %v733_v24 = vpop.xlane.xlu1 %732 }
 0x1ea   :  { %v805_v30 = vmul.f32 0.03125, %v733_v24 }
 0x1eb   :  { %4192 = vrsqrt.f32 %v868_v36 }
 0x1ec   :  { %v869_v52 = vadd.f32 1e-06, %v805_v30 }
 0x1ee   :  { %v736_v31 = vpop.xlane.xlu0 %735  ;;  %4194 = vrsqrt.f32 %v869_v52 }
 0x1ef   :  { %v806_v46 = vmul.f32 0.03125, %v736_v31 }
 0x1f1   :  { %v870_v29 = vadd.f32 1e-06, %v806_v46  ;;  %v739_v55 = vpop.xlane.xlu1 %738 }
 0x1f2   :  { %v807_v62 = vmul.f32 0.03125, %v739_v55 }
 0x1f3   :  { %4196 = vrsqrt.f32 %v870_v29 }
 0x1f4   :  { %v871_v0 = vadd.f32 1e-06, %v807_v62 }
 0x1f5   :  { %v4193_v40 = vpop.eup %4192 }
 0x1f6   :  { %v742_v58 = vpop.xlane.xlu0 %741  ;;  %v996_v53 = vmul.f32 %v4193_v40, %v5437_v10  ;;  %4198 = vrsqrt.f32 %v871_v0  ;;  %v4461_v10 = vld [vmem:[%s8005_s3] ss:$0 sm:$0xff] }
 0x1f7   :  { %v808_v61 = vmul.f32 0.03125, %v742_v58 }
 0x1f8   :  { %v4195_v9 = vpop.eup %4194  ;;  %v1067_v33 = vmul.f32 %v5628_v14, %v996_v53 }
 0x1f9   :  { %v872_v48 = vadd.f32 1e-06, %v808_v61  ;;  %v745_v42 = vpop.xlane.xlu1 %744  ;;  %v997_v32 = vmul.f32 %v4195_v9, %v5449_v13 }
 0x1fa   :  { %v809_v51 = vmul.f32 0.03125, %v745_v42  ;;  %v1138_v2 = vadd.f32 %v4461_v10, %v1067_v33 }
 0x1fb   :  { %4200 = vrsqrt.f32 %v872_v48  ;;  %v1068_v43 = vmul.f32 %v5628_v14, %v997_v32 }
 0x1fc   :  { %v873_v7 = vadd.f32 1e-06, %v809_v51 }
 0x1fd   :  { %v4197_v23 = vpop.eup %4196  ;;  %v1139_v11 = vadd.f32 %v4461_v10, %v1068_v43 }
 0x1fe   :  { %v998_v44 = vmul.f32 %v4197_v23, %v5462_v28  ;;  %4202 = vrsqrt.f32 %v873_v7 }
 0x1ff   :  { %v1173_v37 = vpack.c.bf16 %v1139_v11, %v1138_v2 }
 0x200   :  { %v4199_v17 = vpop.eup %4198  ;;  %v1069_v63 = vmul.f32 %v5628_v14, %v998_v44 }
 0x201   :  { %v999_v13 = vmul.f32 %v4199_v17, %v5475_v56  ;;  %3962 = vmatmul.mubr.msk.bf16.gmra.mrb[56].mxu0 %vm168_vm0, %v1173_v37 }
 0x202   :  { %v1140_v59 = vadd.f32 %v4461_v10, %v1069_v63 }
 0x203   :  { %v1070_v3 = vmul.f32 %v5628_v14, %v999_v13 }
 0x205   :  { %v4201_v12 = vpop.eup %4200  ;;  %v1141_v45 = vadd.f32 %v4461_v10, %v1070_v3 }
 0x206   :  { %v1000_v28 = vmul.f32 %v4201_v12, %v5487_v16  ;;  %v4072_v16 = vld [vmem:[%s8006_s6 + $0x20] sm:$0xff]  }
 0x207   :  { %v1174_v39 = vpack.c.bf16 %v1141_v45, %v1140_v59  ;;  %3977 = vmatprep.subr.bf16.mxu0 %v4072_v16  ;;  %4053 = vmatprep.subr.bf16.mxu1 %v4072_v16 }
 0x208   :  { %v4203_v5 = vpop.eup %4202  ;;  %v1071_v56 = vmul.f32 %v5628_v14, %v1000_v28  ;;  %3978 = vmatpush3.bf16.msra.mxu0 %v4072_v16  ;;  %4061 = vmatpush3.bf16.msra.mxu1 %v4072_v16  ;;  %v8040_v28 = vmov -1.0  }
 0x209   :  { %v1001_v38 = vmul.f32 %v4203_v5, %v5497_v6  ;;  %3965 = vmatprep.mubr.msk.bf16.mxu0 %vm168_vm0, %v1174_v39  ;;  %3979 = vmatprep.subr.bf16.mxu0 %v4073_v4 }
 0x20a   :  { %v1142_v41 = vadd.f32 %v4461_v10, %v1071_v56  ;;  %4054 = vmatprep.subr.bf16.mxu1 %v4073_v4 }
 0x20b   :  { %v1072_v8 = vmul.f32 %v5628_v14, %v1001_v38  ;;  %v4074_v14 = vld [vmem:[%s8006_s6 + $0x30] sm:$0xff]  }
 0x20c   :  { %3980 = vmatpush3.bf16.msra.mxu0 %v4073_v4  ;;  %4062 = vmatpush3.bf16.msra.mxu1 %v4073_v4 }
 0x20d   :  { %v1143_v34 = vadd.f32 %v4461_v10, %v1072_v8  ;;  %3981 = vmatprep.subr.bf16.mxu0 %v4074_v14  ;;  %4055 = vmatprep.subr.bf16.mxu1 %v4074_v14 }
 0x20f   :  { %v1175_v6 = vpack.c.bf16 %v1143_v34, %v1142_v41 }
 0x210   :  { %3982 = vmatpush3.bf16.msra.mxu0 %v4074_v14  ;;  %4063 = vmatpush3.bf16.msra.mxu1 %v4074_v14 }
 0x211   :  { %3966 = vmatmul.mubr.msk.bf16.gmra.mrb[60].mxu0 %vm168_vm0, %v1175_v6  ;;  %3983 = vmatprep.subr.bf16.mxu0 %v4075_v35 }
 0x212   :  { %4056 = vmatprep.subr.bf16.mxu1 %v4075_v35 }
 0x214   :  { %3984 = vmatpush3.bf16.msra.mxu0 %v4075_v35  ;;  %4064 = vmatpush3.bf16.msra.mxu1 %v4075_v35 }
 0x21b   :  { %v3907_v20 = vpop.f32.mrb[0].mxu0 }
 0x21c   :  { %v1338_v19 = vadd.f32 %v3907_v20, %v5683_v22  ;;  %v1329_v47 = vpop.f32.mrb[1].mxu0 }
 0x21d   :  { %v1330_v54 = vadd.f32 %v5683_v22, %v1329_v47  ;;  %v3908_v25 = vpop.f32.mrb[2].mxu0 }
 0x21e   :  { %v1650_v50 = vmul.f32 0.70710677, %v1338_v19  ;;  %v1341_v27 = vadd.f32 %v3908_v25, %v5683_v22  ;;  %v1332_v57 = vpop.f32.mrb[3].mxu0  ;;  %v5697_v32 = vmul.f32 0.5, %v1338_v19 }
 0x21f   :  { %v1648_v18 = vmul.f32 0.70710677, %v1330_v54  ;;  %v1333_v1 = vadd.f32 %v5683_v22, %v1332_v57  ;;  %v5701_v23 = vmul.f32 0.5, %v1330_v54 }
 0x220   :  { %v1842_v21 = vand.u32 2147483647, %v1650_v50  ;;  %v5691_v60 = vmul.f32 0.70710677, %v1341_v27  ;;  %vm1714_vm1 = vcmp.ge.f32.partialorder %v1650_v50, 0.0  ;;  %v5716_v39 = vmul.f32 0.5, %v1341_v27 }
 0x221   :  { %v1840_v15 = vand.u32 2147483647, %v1648_v18  ;;  %v1649_v31 = vmul.f32 0.70710677, %v1333_v1  ;;  %vm1712_vm2 = vcmp.ge.f32.partialorder %v1648_v18, 0.0  ;;  %v5714_v59 = vsel %vm1714_vm1, 1.0, %v8040_v28 }
 0x222   :  { %v1906_v36 = vmul.f32 0.3275911, %v1842_v21  ;;  %v1843_v30 = vand.u32 2147483647, %v5691_v60  ;;  %v2674_v52 = vsub.f32 0.0, %v1842_v21  ;;  %vm1715_vm3 = vcmp.ge.f32.partialorder %v5691_v60, 0.0 }
 0x223   :  { %v1904_v24 = vmul.f32 0.3275911, %v1840_v15  ;;  %v3911_v46 = vpop.f32.mrb[4].mxu0  ;;  %v2672_v0 = vsub.f32 0.0, %v1840_v15  ;;  %v1841_v40 = vand.u32 2147483647, %v1649_v31 }
 0x224   :  { %v1970_v49 = vadd.f32 1.0, %v1906_v36  ;;  %v1907_v55 = vmul.f32 0.3275911, %v1843_v30  ;;  %v1345_v62 = vpop.f32.mrb[5].mxu0  ;;  %v2738_v48 = vmul.f32 %v2674_v52, %v1842_v21  ;;  %v2675_v9 = vsub.f32 0.0, %v1843_v30 }
 0x225   :  { %v1968_v29 = vadd.f32 1.0, %v1904_v24  ;;  %v3912_v58 = vpop.f32.mrb[6].mxu0  ;;  %v1905_v42 = vmul.f32 0.3275911, %v1841_v40  ;;  %v1354_v51 = vadd.f32 %v3911_v46, %v5683_v22  ;;  %v2736_v33 = vmul.f32 %v2672_v0, %v1840_v15 }
 0x226   :  { %4204 = vrcp.f32 %v1970_v49  ;;  %v1971_v53 = vadd.f32 1.0, %v1907_v55  ;;  %v5695_v61 = vpop.f32.mrb[7].mxu0  ;;  %v1357_v43 = vadd.f32 %v3912_v58, %v5683_v22  ;;  %v2673_v44 = vsub.f32 0.0, %v1841_v40 }
 0x227   :  { %4206 = vrcp.f32 %v1968_v29  ;;  %v1969_v7 = vadd.f32 1.0, %v1905_v42  ;;  %v5703_v10 = vmul.f32 0.70710677, %v1354_v51  ;;  %v2804_v11 = vmul.f32 1.442695, %v2738_v48 }
 0x228   :  { %4208 = vrcp.f32 %v1971_v53  ;;  %v2739_v17 = vmul.f32 %v2675_v9, %v1843_v30  ;;  %v1346_v37 = vadd.f32 %v5683_v22, %v1345_v62  ;;  %v5709_v3 = vmul.f32 0.70710677, %v1357_v43 }
 0x229   :  { %4210 = vrcp.f32 %v1969_v7  ;;  %v1846_v63 = vand.u32 2147483647, %v5703_v10  ;;  %v2800_v45 = vmul.f32 1.442695, %v2736_v33  ;;  %vm1713_vm4 = vcmp.ge.f32.partialorder %v1649_v31, 0.0 }
 0x22a   :  { %v2737_v5 = vmul.f32 %v2673_v44, %v1841_v40  ;;  %v5722_v56 = vand.u32 2147483647, %v5709_v3  ;;  %v5727_v16 = vsel %vm1712_vm2, 1.0, %v8040_v28  ;;  %v2806_v41 = vmul.f32 1.442695, %v2739_v17 }
 0x22b   :  { %v3915_v2 = vpop.f32.mrb[8].mxu0  ;;  %v1910_v38 = vmul.f32 0.3275911, %v1846_v63  ;;  %v5729_v34 = vmul.f32 0.5, %v1333_v1  ;;  %v5731_v6 = vmul.f32 0.70710677, %v1346_v37  ;;  %4212 = vpow2.f32 %v2804_v11 }
 0x22c   :  { %v5706_v13 = vpop.f32.mrb[9].mxu0  ;;  %v1911_v19 = vmul.f32 0.3275911, %v5722_v56  ;;  %4214 = vpow2.f32 %v2800_v45  ;;  %v5741_v54 = vsel %vm1715_vm3, 1.0, %v8040_v28  ;;  %v5745_v25 = vsel %vm1713_vm4, 1.0, %v8040_v28 }
 0x22d   :  { %v5711_v12 = vpop.f32.mrb[10].mxu0  ;;  %8108 = vst [vmem:[#allocation10_spill] sm:$0xff] %v5731_v6  ;;  %v1974_v20 = vadd.f32 1.0, %v1910_v38  ;;  %v2802_v50 = vmul.f32 1.442695, %v2737_v5  ;;  %v5751_v1 = vmul.f32 0.5, %v1354_v51  ;;  %v5769_v55 = vadd.f32 %v3915_v2, %v5683_v22 }
 0x22e   :  { %v5719_v26 = vpop.f32.mrb[11].mxu0  ;;  %v1975_v27 = vadd.f32 1.0, %v1911_v19  ;;  %v1844_v60 = vand.u32 2147483647, %v5731_v6  ;;  %v5758_v30 = vmul.f32 0.5, %v1346_v37  ;;  %v5760_v49 = vmul.f32 0.5, %v1357_v43 }
 0x22f   :  { %4216 = vrcp.f32 %v1974_v20  ;;  %vm1718_vm5 = vcmp.ge.f32.partialorder %v5703_v10, 0.0  ;;  %v2678_v29 = vsub.f32 0.0, %v1846_v63  ;;  %v5776_v9 = vadd.f32 %v5683_v22, %v5695_v61 }
 0x230   :  { %v5724_v8 = vpop.eup %4204  ;;  %4218 = vpow2.f32 %v2806_v41  ;;  %8109 = vst [vmem:[#allocation16_spill] sm:$0xff] %v5758_v30  ;;  %v2676_v48 = vsub.f32 0.0, %v1844_v60  ;;  %vm1719_vm6 = vcmp.ge.f32.partialorder %v5709_v3, 0.0  ;;  %v1908_v44 = vmul.f32 0.3275911, %v1844_v60 }
 0x231   :  { %v5733_v4 = vpop.eup %4206  ;;  %v2098_v14 = vmul.f32 1.0614054, %v5724_v8  ;;  %4220 = vrcp.f32 %v1975_v27  ;;  %v2742_v43 = vmul.f32 %v2678_v29, %v1846_v63  ;;  %v5783_v2 = vmul.f32 0.70710677, %v5769_v55 }
 0x232   :  { %v2096_v47 = vmul.f32 1.0614054, %v5733_v4  ;;  %v5749_v18 = vpop.eup %4208  ;;  %4222 = vpow2.f32 %v2802_v50  ;;  %v5789_v45 = vsel %vm1718_vm5, 1.0, %v8040_v28  ;;  %v2740_v63 = vmul.f32 %v2676_v48, %v1844_v60 }
 0x233   :  { %v2162_v35 = vadd.f32 -1.4531521, %v2098_v14  ;;  %v5747_v57 = vpop.f32.mrb[12].mxu0  ;;  %v2099_v24 = vmul.f32 1.0614054, %v5749_v18  ;;  %v5764_v31 = vpop.eup %4210  ;;  %v2679_v14 = vsub.f32 0.0, %v5722_v56 }
 0x234   :  { %v2160_v21 = vadd.f32 -1.4531521, %v2096_v47  ;;  %v5754_v15 = vpop.f32.mrb[13].mxu0  ;;  %v2097_v58 = vmul.f32 1.0614054, %v5764_v31  ;;  %v5808_v27 = vsel %vm1719_vm6, 1.0, %v8040_v28 }
 0x235   :  { %v2226_v36 = vmul.f32 %v5724_v8, %v2162_v35  ;;  %v5762_v52 = vpop.f32.mrb[14].mxu0  ;;  %v2163_v40 = vadd.f32 -1.4531521, %v2099_v24  ;;  %v4213_v11 = vpop.eup %4212  ;;  %v5797_v20 = vmul.f32 0.70710677, %v5776_v9  ;;  %v1972_v29 = vadd.f32 1.0, %v1908_v44 }
 0x236   :  { %v2224_v46 = vmul.f32 %v5733_v4, %v2160_v21  ;;  %v5771_v62 = vpop.f32.mrb[15].mxu0  ;;  %v2161_v33 = vadd.f32 -1.4531521, %v2097_v58  ;;  %v5793_v38 = vpop.eup %4214  ;;  %v5818_v48 = vand.u32 2147483647, %v5783_v2  ;;  %vm1722_vm7 = vcmp.ge.f32.partialorder %v5783_v2, 0.0 }
 0x237   :  { %v2290_v0 = vadd.f32 1.4214138, %v2226_v36  ;;  %v2227_v51 = vmul.f32 %v5749_v18, %v2163_v40  ;;  %8110 = vst [vmem:[#allocation11_spill] sm:$0xff] %v5797_v20  ;;  %4224 = vrcp.f32 %v1972_v29 }
 0x238   :  { %v2288_v53 = vadd.f32 1.4214138, %v2224_v46  ;;  %v2225_v61 = vmul.f32 %v5764_v31, %v2161_v33  ;;  %v2812_v46 = vmul.f32 1.442695, %v2742_v43  ;;  %v1845_v33 = vand.u32 2147483647, %v5797_v20 }
 0x239   :  { %v2354_v42 = vmul.f32 %v5724_v8, %v2290_v0  ;;  %v2291_v37 = vadd.f32 1.4214138, %v2227_v51  ;;  %v5801_v47 = vpop.eup %4216  ;;  %v2743_v51 = vmul.f32 %v2679_v14, %v5722_v56  ;;  %v5831_v56 = vadd.f32 %v5683_v22, %v5706_v13 }
 0x23a   :  { %v2352_v7 = vmul.f32 %v5733_v4, %v2288_v53  ;;  %v2289_v50 = vadd.f32 1.4214138, %v2225_v61  ;;  %v4219_v60 = vpop.eup %4218  ;;  %v2102_v24 = vmul.f32 1.0614054, %v5801_v47 }
 0x23b   :  { %v2418_v17 = vadd.f32 -0.28449672, %v2354_v42  ;;  %v5791_v5 = vpop.f32.mrb[16].mxu0  ;;  %v2355_v10 = vmul.f32 %v5749_v18, %v2291_v37  ;;  %v2808_v42 = vmul.f32 1.442695, %v2740_v63 }
 0x23c   :  { %v2416_v41 = vadd.f32 -0.28449672, %v2352_v7  ;;  %v5799_v19 = vpop.f32.mrb[17].mxu0  ;;  %v2353_v53 = vmul.f32 %v5764_v31, %v2289_v50  ;;  %v2166_v3 = vadd.f32 -1.4531521, %v2102_v24  ;;  %v5822_v7 = vpop.eup %4220 }
 0x23d   :  { %v2482_v35 = vmul.f32 %v5724_v8, %v2418_v17  ;;  %v5810_v21 = vpop.f32.mrb[18].mxu0  ;;  %v2419_v58 = vadd.f32 -0.28449672, %v2355_v10  ;;  %v1914_v37 = vmul.f32 0.3275911, %v5818_v48  ;;  %v4223_v61 = vpop.eup %4222 }
 0x23e   :  { %v2480_v36 = vmul.f32 %v5733_v4, %v2416_v41  ;;  %v5814_v0 = vpop.f32.mrb[19].mxu0  ;;  %v2417_v17 = vadd.f32 -0.28449672, %v2353_v53  ;;  %v2103_v10 = vmul.f32 1.0614054, %v5822_v7 }
 0x23f   :  { %v2546_v40 = vadd.f32 0.2548296, %v2482_v35  ;;  %v2483_v44 = vmul.f32 %v5749_v18, %v2419_v58  ;;  %v2230_v35 = vmul.f32 %v5801_v47, %v2166_v3  ;;  %v2814_v58 = vmul.f32 1.442695, %v2743_v51 }
 0x240   :  { %v2544_v41 = vadd.f32 0.2548296, %v2480_v36  ;;  %v2481_v50 = vmul.f32 %v5764_v31, %v2417_v17  ;;  %v5840_v29 = vmul.f32 0.70710677, %v5831_v56 }
 0x241   :  { %v2610_v43 = vmul.f32 %v5724_v8, %v2546_v40  ;;  %v2547_v14 = vadd.f32 0.2548296, %v2483_v44  ;;  %v1978_v8 = vadd.f32 1.0, %v1914_v37  ;;  %v2294_v24 = vadd.f32 1.4214138, %v2230_v35 }
 0x242   :  { %v2167_v40 = vadd.f32 -1.4531521, %v2103_v10  ;;  %v2545_v28 = vadd.f32 0.2548296, %v2481_v50  ;;  %v2608_v3 = vmul.f32 %v5733_v4, %v2544_v41  ;;  %v2677_v44 = vsub.f32 0.0, %v1845_v33 }
 0x243   :  { %v2930_v63 = vmul.f32 %v4213_v11, %v2610_v43  ;;  %v2611_v36 = vmul.f32 %v5749_v18, %v2547_v14  ;;  %4226 = vrcp.f32 %v1978_v8  ;;  %v2358_v30 = vmul.f32 %v5801_v47, %v2294_v24 }
 0x244   :  { %4228 = vpow2.f32 %v2812_v46  ;;  %v2231_v13 = vmul.f32 %v5822_v7, %v2167_v40  ;;  %v2609_v51 = vmul.f32 %v5764_v31, %v2545_v28  ;;  %v5844_v4 = vmul.f32 0.5, %v5776_v9 }
 0x245   :  { %v2994_v53 = vsub.f32 1.0, %v2930_v63  ;;  %v2931_v43 = vmul.f32 %v4219_v60, %v2611_v36  ;;  %v2422_v17 = vadd.f32 -0.28449672, %v2358_v30  ;;  %4230 = vpow2.f32 %v2808_v42 }
 0x246   :  { %v2295_v18 = vadd.f32 1.4214138, %v2231_v13  ;;  %4232 = vpow2.f32 %v2814_v58  ;;  %8111 = vst [vmem:[#allocation12_spill] sm:$0xff] %v5844_v4  ;;  %v1909_v46 = vmul.f32 0.3275911, %v1845_v33  ;;  %v2928_v41 = vmul.f32 %v5793_v38, %v2608_v3 }
 0x247   :  { %v3058_v11 = vmul.f32 %v2994_v53, %v5714_v59  ;;  %v2995_v37 = vsub.f32 1.0, %v2931_v43  ;;  %v2486_v59 = vmul.f32 %v5801_v47, %v2422_v17  ;;  %v2682_v35 = vsub.f32 0.0, %v5818_v48 }
 0x248   :  { %v2359_v60 = vmul.f32 %v5822_v7, %v2295_v18  ;;  %v2741_v30 = vmul.f32 %v2677_v44, %v1845_v33  ;;  %v1848_v31 = vand.u32 2147483647, %v5840_v29  ;;  %v2929_v63 = vmul.f32 %v4223_v61, %v2609_v51  ;;  %v5863_v33 = vpop.eup %4224 }
 0x249   :  { %v3122_v10 = vadd.f32 1.0, %v3058_v11  ;;  %v3059_v28 = vmul.f32 %v2995_v37, %v5741_v54  ;;  %v2550_v9 = vadd.f32 0.2548296, %v2486_v59  ;;  %v5856_v38 = vadd.f32 %v5711_v12, %v5683_v22  ;;  %8112 = vst [vmem:[#allocation13_spill] sm:$0xff] %v5863_v33 }
 0x24a   :  { %v2423_v14 = vadd.f32 -0.28449672, %v2359_v60  ;;  %v1973_v24 = vadd.f32 1.0, %v1909_v46  ;;  %v1912_v40 = vmul.f32 0.3275911, %v1848_v31  ;;  %v2992_v58 = vsub.f32 1.0, %v2928_v41 }
 0x24b   :  { %v5852_v42 = vpop.f32.mrb[20].mxu0  ;;  %v3123_v8 = vadd.f32 1.0, %v3059_v28  ;;  %v2614_v61 = vmul.f32 %v5801_v47, %v2550_v9  ;;  %v2746_v36 = vmul.f32 %v2682_v35, %v5818_v48  ;;  %v5873_v13 = vmul.f32 %v3122_v10, %v5697_v32 }
 0x24c   :  { %v5858_v50 = vpop.f32.mrb[21].mxu0  ;;  %v2487_v53 = vmul.f32 %v5822_v7, %v2423_v14  ;;  %v1976_v43 = vadd.f32 1.0, %v1912_v40  ;;  %v5879_v44 = vmul.f32 0.70710677, %v5856_v38  ;;  %v2993_v47 = vsub.f32 1.0, %v2929_v63 }
 0x24d   :  { %v5861_v54 = vpop.f32.mrb[22].mxu0  ;;  %v5870_v3 = vpop.eup %4226  ;;  %v5876_v11 = vmul.f32 %v3123_v8, %v5716_v39  ;;  %v2810_v17 = vmul.f32 1.442695, %v2741_v30  ;;  %v5882_v18 = vmul.f32 0.5, %v5769_v55  ;;  %v8113_v46 = vmov -1.0  }
 0x24e   :  { %v5868_v12 = vpop.f32.mrb[23].mxu0  ;;  %v4229_v51 = vpop.eup %4228  ;;  %v2106_v48 = vmul.f32 1.0614054, %v5870_v3  ;;  %v2551_v32 = vadd.f32 0.2548296, %v2487_v53  ;;  %v5890_v39 = vsel %vm1722_vm7, 1.0, %v8113_v46  ;;  %4234 = vrcp.f32 %v1976_v43 }
 0x24f   :  { %v5892_v41 = vpop.eup %4230  ;;  %v2934_v59 = vmul.f32 %v4229_v51, %v2614_v61  ;;  %4236 = vrcp.f32 %v1973_v24  ;;  %v2680_v35 = vsub.f32 0.0, %v1848_v31  ;;  %v3056_v10 = vmul.f32 %v2992_v58, %v5727_v16 }
 0x250   :  { %8114 = vst [vmem:[#allocation14_spill] sm:$0xff] %v5892_v41  ;;  %v2170_v60 = vadd.f32 -1.4531521, %v2106_v48  ;;  %v4233_v55 = vpop.eup %4232  ;;  %v2820_v28 = vmul.f32 1.442695, %v2746_v36  ;;  %v1365_v63 = vadd.f32 %v5683_v22, %v5719_v26  ;;  %v3057_v2 = vmul.f32 %v2993_v47, %v5745_v25 }
 0x251   :  { %v1851_v30 = vand.u32 2147483647, %v5879_v44  ;;  %4238 = vpow2.f32 %v2810_v17  ;;  %v5901_v14 = vmul.f32 0.5, %v5831_v56  ;;  %v2615_v8 = vmul.f32 %v5822_v7, %v2551_v32 }
 0x252   :  { %v2234_v9 = vmul.f32 %v5870_v3, %v2170_v60  ;;  %vm1720_vm8 = vcmp.ge.f32.partialorder %v5840_v29, 0.0  ;;  %v1657_v16 = vmul.f32 0.70710677, %v1365_v63  ;;  %v2998_v40 = vsub.f32 1.0, %v2934_v59 }
 0x253   :  { %v1915_v24 = vmul.f32 0.3275911, %v1851_v30  ;;  %v2744_v61 = vmul.f32 %v2680_v35, %v1848_v31  ;;  %v1386_v26 = vadd.f32 %v5747_v57, %v5683_v22  ;;  %v3120_v53 = vadd.f32 1.0, %v3056_v10 }
 0x254   :  { %v2298_v58 = vadd.f32 1.4214138, %v2234_v9  ;;  %4240 = vpow2.f32 %v2820_v28  ;;  %v5907_v36 = vand.u32 2147483647, %v1657_v16  ;;  %v3121_v56 = vadd.f32 1.0, %v3057_v2 }
 0x255   :  { %v1979_v25 = vadd.f32 1.0, %v1915_v24  ;;  %v5913_v29 = vsel %vm1720_vm8, 1.0, %v8113_v46  ;;  %v1378_v51 = vadd.f32 %v5683_v22, %v5754_v15  ;;  %v2935_v47 = vmul.f32 %v4233_v55, %v2615_v8 }
 0x256   :  { %v2362_v7 = vmul.f32 %v5870_v3, %v2298_v58  ;;  %vm1723_vm9 = vcmp.ge.f32.partialorder %v5879_v44, 0.0  ;;  %v1913_v57 = vmul.f32 0.3275911, %v5907_v36  ;;  %v3062_v48 = vmul.f32 %v2998_v40, %v5789_v45 }
 0x257   :  { %v5909_v43 = vpop.f32.mrb[24].mxu0  ;;  %4242 = vrcp.f32 %v1979_v25  ;;  %v2816_v59 = vmul.f32 1.442695, %v2744_v61  ;;  %v5924_v60 = vmul.f32 0.70710677, %v1386_v26  ;;  %v5929_v15 = vmul.f32 %v3120_v53, %v5701_v23 }
 0x258   :  { %v5917_v31 = vpop.f32.mrb[25].mxu0  ;;  %v2426_v32 = vadd.f32 -0.28449672, %v2362_v7  ;;  %v5926_v35 = vpop.eup %4234  ;;  %v5932_v55 = vmul.f32 0.5, %v5856_v38  ;;  %v2683_v10 = vsub.f32 0.0, %v1851_v30  ;;  %v1977_v28 = vadd.f32 1.0, %v1913_v57 }
 0x259   :  { %v5921_v17 = vpop.f32.mrb[26].mxu0  ;;  %v5936_v9 = vpop.eup %4236  ;;  %v5939_v45 = vmul.f32 %v3121_v56, %v5729_v34  ;;  %v2104_v24 = vmul.f32 1.0614054, %v5926_v35  ;;  %v5943_v40 = vmul.f32 0.70710677, %v1378_v51  ;;  %v2999_v23 = vsub.f32 1.0, %v2935_v47 }
 0x25a   :  { %8115 = vst [vmem:[#allocation15_spill] sm:$0xff] %v5921_v17  ;;  %v5934_v2 = vpop.f32.mrb[27].mxu0  ;;  %8117 = vst [vmem:[#allocation18_spill] sm:$0xff] %v5936_v9  ;;  %v2490_v8 = vmul.f32 %v5870_v3, %v2426_v32  ;;  %v5948_v38 = vsel %vm1723_vm9, 1.0, %v8113_v46  ;;  %4244 = vrcp.f32 %v1977_v28  ;;  %v1854_v58 = vand.u32 2147483647, %v5924_v60 }
 0x25b   :  { %8116 = vst [vmem:[#allocation17_spill] sm:$0xff] %v5934_v2  ;;  %v5951_v61 = vpop.eup %4238  ;;  %v3126_v53 = vadd.f32 1.0, %v3062_v48  ;;  %v2168_v34 = vadd.f32 -1.4531521, %v2104_v24  ;;  %4246 = vpow2.f32 %v2816_v59  ;;  %v5955_v25 = vadd.f32 %v5762_v52, %v5683_v22 }
 0x25c   :  { %8118 = vst [vmem:[#allocation19_spill] sm:$0xff] %v5951_v61  ;;  %v2747_v56 = vmul.f32 %v2683_v10, %v1851_v30  ;;  %v5957_v7 = vmul.f32 0.5, %v1365_v63  ;;  %vm1721_vm10 = vcmp.ge.f32.partialorder %v1657_v16, 0.0  ;;  %v1918_v47 = vmul.f32 0.3275911, %v1854_v58 }
 0x25d   :  { %v2554_v44 = vadd.f32 0.2548296, %v2490_v8  ;;  %v2232_v57 = vmul.f32 %v5926_v35, %v2168_v34  ;;  %v5960_v32 = vmul.f32 0.5, %v1386_v26  ;;  %v1852_v28 = vand.u32 2147483647, %v5943_v40 }
 0x25e   :  { %v4241_v37 = vpop.eup %4240  ;;  %v3063_v48 = vmul.f32 %v2999_v23, %v5808_v27  ;;  %v2681_v59 = vsub.f32 0.0, %v5907_v36  ;;  %v1982_v24 = vadd.f32 1.0, %v1918_v47  ;;  %v5966_v52 = vmul.f32 0.70710677, %v5955_v25 }
 0x25f   :  { %v5969_v30 = vmul.f32 %v3126_v53, %v5751_v1  ;;  %v2296_v63 = vadd.f32 1.4214138, %v2232_v57  ;;  %v5972_v16 = vsel %vm1721_vm10, 1.0, %v8113_v46  ;;  %v1916_v26 = vmul.f32 0.3275911, %v1852_v28 }
 0x260   :  { %v2822_v8 = vmul.f32 1.442695, %v2747_v56  ;;  %4248 = vrcp.f32 %v1982_v24  ;;  %v2686_v34 = vsub.f32 0.0, %v1854_v58  ;;  %v5977_v27 = vand.u32 2147483647, %v5966_v52 }
 0x261   :  { %8119 = vst [vmem:[#allocation20_spill] sm:$0xff] %v5969_v30  ;;  %v5974_v10 = vpop.eup %4242  ;;  %v2618_v23 = vmul.f32 %v5870_v3, %v2554_v44  ;;  %v2360_v47 = vmul.f32 %v5926_v35, %v2296_v63  ;;  %v1980_v53 = vadd.f32 1.0, %v1916_v26  ;;  %v3127_v57 = vadd.f32 1.0, %v3063_v48 }
 0x262   :  { %v2107_v1 = vmul.f32 1.0614054, %v5974_v10  ;;  %v2745_v4 = vmul.f32 %v2681_v59, %v5907_v36  ;;  %v1919_v61 = vmul.f32 0.3275911, %v5977_v27  ;;  %v5986_v56 = vadd.f32 %v5683_v22, %v5771_v62 }
 0x263   :  { %v2424_v24 = vadd.f32 -0.28449672, %v2360_v47  ;;  %v5988_v30 = vmul.f32 0.5, %v1378_v51  ;;  %4250 = vrcp.f32 %v1980_v53  ;;  %vm1726_vm11 = vcmp.ge.f32.partialorder %v5924_v60, 0.0 }
 0x264   :  { %v2171_v41 = vadd.f32 -1.4531521, %v2107_v1  ;;  %v5990_v3 = vpop.eup %4244  ;;  %4252 = vpow2.f32 %v2822_v8  ;;  %vm1724_vm12 = vcmp.ge.f32.partialorder %v5943_v40, 0.0  ;;  %v1983_v44 = vadd.f32 1.0, %v1919_v61 }
 0x265   :  { %v5994_v36 = vpop.eup %4246  ;;  %v2938_v48 = vmul.f32 %v4241_v37, %v2618_v23  ;;  %v2105_v62 = vmul.f32 1.0614054, %v5990_v3  ;;  %v2750_v63 = vmul.f32 %v2686_v34, %v1854_v58  ;;  %v2488_v51 = vmul.f32 %v5926_v35, %v2424_v24 }
 0x266   :  { %v2235_v59 = vmul.f32 %v5974_v10, %v2171_v41  ;;  %v2818_v26 = vmul.f32 1.442695, %v2745_v4  ;;  %v2684_v47 = vsub.f32 0.0, %v1852_v28  ;;  %v6000_v1 = vmul.f32 0.70710677, %v5986_v56 }
 0x267   :  { %v6003_v60 = vmul.f32 %v3127_v57, %v5760_v49  ;;  %v2169_v61 = vadd.f32 -1.4531521, %v2105_v62  ;;  %v6006_v8 = vsel %vm1726_vm11, 1.0, %v8113_v46  ;;  %v6009_v37 = vsel %vm1724_vm12, 1.0, %v8113_v46 }
 0x268   :  { %v2299_v40 = vadd.f32 1.4214138, %v2235_v59  ;;  %4254 = vrcp.f32 %v1983_v44  ;;  %v1853_v41 = vand.u32 2147483647, %v6000_v1  ;;  %v6014_v4 = vadd.f32 %v5791_v5, %v5683_v22 }
 0x269   :  { %8120 = vst [vmem:[#allocation21_spill] sm:$0xff] %v6003_v60  ;;  %v3002_v58 = vsub.f32 1.0, %v2938_v48  ;;  %v2233_v49 = vmul.f32 %v5990_v3, %v2169_v61  ;;  %v2828_v23 = vmul.f32 1.442695, %v2750_v63  ;;  %v2552_v57 = vadd.f32 0.2548296, %v2488_v51 }
 0x26a   :  { %v2363_v34 = vmul.f32 %v5974_v10, %v2299_v40  ;;  %v6018_v53 = vpop.eup %4248  ;;  %v2748_v24 = vmul.f32 %v2684_v47, %v1852_v28  ;;  %v2687_v59 = vsub.f32 0.0, %v5977_v27  ;;  %v1917_v62 = vmul.f32 0.3275911, %v1853_v41  ;;  %v6029_v40 = vpop.f32.mrb[28].mxu0 }
 0x26b   :  { %v2297_v60 = vadd.f32 1.4214138, %v2233_v49  ;;  %4256 = vpow2.f32 %v2818_v26  ;;  %v2110_v9 = vmul.f32 1.0614054, %v6018_v53  ;;  %v6023_v5 = vmul.f32 0.5, %v5955_v25  ;;  %8121 = vst [vmem:[#allocation2_spill] sm:$0xff] %v6029_v40 }
 0x26c   :  { %v2427_v44 = vadd.f32 -0.28449672, %v2363_v34  ;;  %vm1727_vm13 = vcmp.ge.f32.partialorder %v5966_v52, 0.0  ;;  %v1981_v48 = vadd.f32 1.0, %v1917_v62  ;;  %v6027_v63 = vmul.f32 0.70710677, %v6014_v4 }
 0x26d   :  { %v6031_v28 = vpop.eup %4250  ;;  %v2361_v47 = vmul.f32 %v5990_v3, %v2297_v60  ;;  %v2174_v26 = vadd.f32 -1.4531521, %v2110_v9  ;;  %4258 = vpow2.f32 %v2828_v23  ;;  %v3066_v25 = vmul.f32 %v3002_v58, %v5890_v39 }
 0x26e   :  { %v2491_v51 = vmul.f32 %v5974_v10, %v2427_v44  ;;  %v4253_v61 = vpop.eup %4252  ;;  %v2108_v34 = vmul.f32 1.0614054, %v6031_v28  ;;  %v2824_v49 = vmul.f32 1.442695, %v2748_v24  ;;  %4260 = vrcp.f32 %v1981_v48 }
 0x26f   :  { %v2616_v62 = vmul.f32 %v5926_v35, %v2552_v57  ;;  %v2425_v33 = vadd.f32 -0.28449672, %v2361_v47  ;;  %v2238_v40 = vmul.f32 %v6018_v53, %v2174_v26  ;;  %v2751_v20 = vmul.f32 %v2687_v59, %v5977_v27  ;;  %v6052_v57 = vpop.f32.mrb[29].mxu0 }
 0x270   :  { %v2172_v6 = vadd.f32 -1.4531521, %v2108_v34  ;;  %v6043_v9 = vsel %vm1727_vm13, 1.0, %v8113_v46  ;;  %v2685_v60 = vsub.f32 0.0, %v1853_v41  ;;  %v6046_v39 = vand.u32 2147483647, %v6027_v63 }
 0x271   :  { %v2555_v58 = vadd.f32 0.2548296, %v2491_v51  ;;  %v2489_v23 = vmul.f32 %v5990_v3, %v2425_v33  ;;  %v2302_v24 = vadd.f32 1.4214138, %v2238_v40  ;;  %v6050_v35 = vmul.f32 0.5, %v5986_v56  ;;  %8122 = vst [vmem:[#allocation3_spill] sm:$0xff] %v6052_v57 }
 0x272   :  { %v6054_v27 = vpop.eup %4254  ;;  %v3130_v59 = vadd.f32 1.0, %v3066_v25  ;;  %v2236_v52 = vmul.f32 %v6031_v28, %v2172_v6  ;;  %v1922_v44 = vmul.f32 0.3275911, %v6046_v39  ;;  %v6060_v48 = vadd.f32 %v5683_v22, %v5799_v19  ;;  %v6062_v51 = vpop.f32.mrb[30].mxu0 }
 0x273   :  { %v2936_v33 = vmul.f32 %v5994_v36, %v2616_v62  ;;  %v2366_v56 = vmul.f32 %v6018_v53, %v2302_v24  ;;  %v2830_v40 = vmul.f32 1.442695, %v2751_v20  ;;  %vm1725_vm14 = vcmp.ge.f32.partialorder %v6000_v1, 0.0  ;;  %v6067_v47 = vpop.f32.mrb[31].mxu0 }
 0x274   :  { %8123 = vst [vmem:[#allocation4_spill] sm:$0xff] %v6067_v47  ;;  %v2300_v26 = vadd.f32 1.4214138, %v2236_v52  ;;  %v2111_v6 = vmul.f32 1.0614054, %v6054_v27  ;;  %v2749_v25 = vmul.f32 %v2685_v60, %v1853_v41  ;;  %v1986_v34 = vadd.f32 1.0, %v1922_v44 }
 0x275   :  { %v4257_v57 = vpop.eup %4256  ;;  %v2619_v19 = vmul.f32 %v5974_v10, %v2555_v58  ;;  %v2553_v2 = vadd.f32 0.2548296, %v2489_v23  ;;  %v2430_v17 = vadd.f32 -0.28449672, %v2366_v56  ;;  %4262 = vpow2.f32 %v2824_v49  ;;  %v6087_v44 = vpop.f32.mrb[32].mxu0 }
 0x276   :  { %v2364_v36 = vmul.f32 %v6031_v28, %v2300_v26  ;;  %v2175_v62 = vadd.f32 -1.4531521, %v2111_v6  ;;  %4264 = vrcp.f32 %v1986_v34  ;;  %v6073_v20 = vmul.f32 0.70710677, %v6060_v48  ;;  %v6094_v34 = vpop.f32.mrb[33].mxu0 }
 0x277   :  { %v4259_v24 = vpop.eup %4258  ;;  %v6076_v52 = vmul.f32 %v3130_v59, %v5882_v18  ;;  %v3000_v47 = vsub.f32 1.0, %v2936_v33  ;;  %v2494_v41 = vmul.f32 %v6018_v53, %v2430_v17  ;;  %v6082_v10 = vsel %vm1725_vm14, 1.0, %v8113_v46  ;;  %8124 = vst [vmem:[#allocation5_spill] sm:$0xff] %v6094_v34 }
 0x278   :  { %v6084_v49 = vpop.eup %4260  ;;  %v2428_v60 = vadd.f32 -0.28449672, %v2364_v36  ;;  %v2239_v58 = vmul.f32 %v6054_v27, %v2175_v62  ;;  %4266 = vpow2.f32 %v2830_v40  ;;  %v2826_v23 = vmul.f32 1.442695, %v2749_v25 }
 0x279   :  { %v2617_v18 = vmul.f32 %v5990_v3, %v2553_v2  ;;  %v2558_v59 = vadd.f32 0.2548296, %v2494_v41  ;;  %v2109_v33 = vmul.f32 1.0614054, %v6084_v49  ;;  %v2690_v17 = vsub.f32 0.0, %v6046_v39  ;;  %v6099_v2 = vpop.f32.mrb[34].mxu0 }
 0x27a   :  { %v2939_v56 = vmul.f32 %v4253_v61, %v2619_v19  ;;  %v2492_v1 = vmul.f32 %v6031_v28, %v2428_v60  ;;  %v2303_v26 = vadd.f32 1.4214138, %v2239_v58  ;;  %v1856_v6 = vand.u32 2147483647, %v6073_v20  ;;  %8125 = vst [vmem:[#allocation6_spill] sm:$0xff] %v6099_v2  ;;  %v6106_v41 = vpop.f32.mrb[35].mxu0 }
 0x27b   :  { %v3064_v40 = vmul.f32 %v3000_v47, %v5913_v29  ;;  %v2622_v25 = vmul.f32 %v6018_v53, %v2558_v59  ;;  %v2173_v36 = vadd.f32 -1.4531521, %v2109_v33  ;;  %vm1730_vm15 = vcmp.ge.f32.partialorder %v6027_v63, 0.0 }
 0x27c   :  { %v2556_v3 = vadd.f32 0.2548296, %v2492_v1  ;;  %v2367_v62 = vmul.f32 %v6054_v27, %v2303_v26  ;;  %v1920_v61 = vmul.f32 0.3275911, %v1856_v6  ;;  %v6104_v19 = vadd.f32 %v5810_v21, %v5683_v22 }
 0x27d   :  { %v2937_v60 = vmul.f32 %v4257_v57, %v2617_v18  ;;  %v2237_v29 = vmul.f32 %v6084_v49, %v2173_v36  ;;  %v6110_v53 = vmul.f32 0.5, %v6014_v4  ;;  %v2754_v47 = vmul.f32 %v2690_v17, %v6046_v39 }
 0x27e   :  { %v3003_v58 = vsub.f32 1.0, %v2939_v56  ;;  %v2431_v59 = vadd.f32 -0.28449672, %v2367_v62  ;;  %4268 = vpow2.f32 %v2826_v23  ;;  %v1984_v33 = vadd.f32 1.0, %v1920_v61 }
 0x27f   :  { %v4263_v1 = vpop.eup %4262  ;;  %v3128_v26 = vadd.f32 1.0, %v3064_v40  ;;  %v2942_v2 = vmul.f32 %v4259_v24, %v2622_v25  ;;  %v2301_v34 = vadd.f32 1.4214138, %v2237_v29  ;;  %v6116_v21 = vsel %vm1730_vm15, 1.0, %v8113_v46 }
 0x280   :  { %v6118_v57 = vpop.eup %4264  ;;  %v2620_v4 = vmul.f32 %v6031_v28, %v2556_v3  ;;  %v2495_v18 = vmul.f32 %v6054_v27, %v2431_v59  ;;  %4270 = vrcp.f32 %v1984_v33  ;;  %v6123_v39 = vmul.f32 0.70710677, %v6104_v19 }
 0x281   :  { %v3001_v23 = vsub.f32 1.0, %v2937_v60  ;;  %v2365_v17 = vmul.f32 %v6084_v49, %v2301_v34  ;;  %v2114_v24 = vmul.f32 1.0614054, %v6118_v57  ;;  %v2836_v56 = vmul.f32 1.442695, %v2754_v47  ;;  %v6133_v60 = vpop.f32.mrb[36].mxu0 }
 0x282   :  { %v4267_v40 = vpop.eup %4266  ;;  %v3067_v63 = vmul.f32 %v3003_v58, %v5948_v38  ;;  %v2559_v25 = vadd.f32 0.2548296, %v2495_v18  ;;  %vm1728_vm1 = vcmp.ge.f32.partialorder %v6073_v20, 0.0  ;;  %v2688_v36 = vsub.f32 0.0, %v1856_v6  ;;  %v6140_v58 = vpop.f32.mrb[37].mxu0 }
 0x283   :  { %v3006_v28 = vsub.f32 1.0, %v2942_v2  ;;  %v2429_v3 = vadd.f32 -0.28449672, %v2365_v17  ;;  %v2178_v62 = vadd.f32 -1.4531521, %v2114_v24  ;;  %v6131_v61 = vadd.f32 %v5683_v22, %v5814_v0  ;;  %8126 = vst [vmem:[#allocation7_spill] sm:$0xff] %v6140_v58 }
 0x284   :  { %v2940_v34 = vmul.f32 %v4263_v1, %v2620_v4  ;;  %v2623_v29 = vmul.f32 %v6054_v27, %v2559_v25  ;;  %v6137_v47 = vmul.f32 0.5, %v6060_v48  ;;  %v1859_v38 = vand.u32 2147483647, %v6123_v39 }
 0x285   :  { %v6143_v2 = vmul.f32 %v3128_v26, %v5901_v14  ;;  %v3065_v59 = vmul.f32 %v3001_v23, %v5972_v16  ;;  %v2493_v0 = vmul.f32 %v6084_v49, %v2429_v3  ;;  %v2242_v33 = vmul.f32 %v6118_v57, %v2178_v62 }
 0x286   :  { %4272 = vpow2.f32 %v2836_v56  ;;  %v6151_v27 = vsel %vm1728_vm1, 1.0, %v8113_v46  ;;  %v2752_v48 = vmul.f32 %v2688_v36, %v1856_v6  ;;  %v1923_v1 = vmul.f32 0.3275911, %v1859_v38  ;;  %v6157_v56 = vpop.f32.mrb[38].mxu0 }
 0x287   :  { %v3131_v4 = vadd.f32 1.0, %v3067_v63  ;;  %v3070_v18 = vmul.f32 %v3006_v28, %v6006_v8  ;;  %v2306_v17 = vadd.f32 1.4214138, %v2242_v33  ;;  %v6155_v14 = vmul.f32 0.70710677, %v6131_v61  ;;  %8127 = vst [vmem:[#allocation8_spill] sm:$0xff] %v6157_v56 }
 0x288   :  { %v4269_v16 = vpop.eup %4268  ;;  %v3004_v26 = vsub.f32 1.0, %v2940_v34  ;;  %v2943_v23 = vmul.f32 %v4267_v40, %v2623_v29  ;;  %v2557_v24 = vadd.f32 0.2548296, %v2493_v0  ;;  %v1987_v25 = vadd.f32 1.0, %v1923_v1 }
 0x289   :  { %v3129_v3 = vadd.f32 1.0, %v3065_v59  ;;  %v2370_v20 = vmul.f32 %v6118_v57, %v2306_v17  ;;  %v2691_v62 = vsub.f32 0.0, %v1859_v38  ;;  %v1857_v6 = vand.u32 2147483647, %v6155_v14 }
 0x28a   :  { %v6161_v63 = vpop.eup %4270  ;;  %v2832_v8 = vmul.f32 1.442695, %v2752_v48  ;;  %vm1731_vm2 = vcmp.ge.f32.partialorder %v6123_v39, 0.0  ;;  %4274 = vrcp.f32 %v1987_v25  ;;  %v1418_v36 = vadd.f32 %v5852_v42, %v5683_v22 }
 0x28b   :  { %v6167_v40 = vmul.f32 %v3131_v4, %v5932_v55  ;;  %v2434_v28 = vadd.f32 -0.28449672, %v2370_v20  ;;  %v2112_v34 = vmul.f32 1.0614054, %v6161_v63  ;;  %v1921_v29 = vmul.f32 0.3275911, %v1857_v6 }
 0x28c   :  { %v3134_v59 = vadd.f32 1.0, %v3070_v18  ;;  %v3068_v0 = vmul.f32 %v3004_v26, %v6009_v37  ;;  %v3007_v33 = vsub.f32 1.0, %v2943_v23  ;;  %v2621_v1 = vmul.f32 %v6084_v49, %v2557_v24  ;;  %v6181_v55 = vld [vmem:[%s8007_s5] ss:$0 sm:$0xff]  ;;  %v6195_v20 = vpop.f32.mrb[39].mxu0 }
 0x28d   :  { %v2498_v48 = vmul.f32 %v6118_v57, %v2434_v28  ;;  %v2176_v17 = vadd.f32 -1.4531521, %v2112_v34  ;;  %v2755_v25 = vmul.f32 %v2691_v62, %v1859_v38  ;;  %v1985_v56 = vadd.f32 1.0, %v1921_v29  ;;  %8128 = vst [vmem:[#allocation9_spill] sm:$0xff] %v6195_v20 }
 0x28e   :  { %4276 = vpow2.f32 %v2832_v8  ;;  %v6174_v22 = vmul.f32 0.5, %v6104_v19  ;;  %v6176_v42 = vmul.f32 0.70710677, %v1418_v36  ;;  %v1410_v37 = vadd.f32 %v6181_v55, %v5858_v50 }
 0x28f   :  { %v6186_v49 = vmul.f32 %v3129_v3, %v5957_v7  ;;  %v2562_v4 = vadd.f32 0.2548296, %v2498_v48  ;;  %v2240_v38 = vmul.f32 %v6161_v63, %v2176_v17  ;;  %4278 = vrcp.f32 %v1985_v56 }
 0x290   :  { %v4273_v18 = vpop.eup %4272  ;;  %v3132_v19 = vadd.f32 1.0, %v3068_v0  ;;  %v2941_v26 = vmul.f32 %v4269_v16, %v2621_v1  ;;  %v6192_v23 = vsel %vm1731_vm2, 1.0, %v8113_v46  ;;  %v1862_v24 = vand.u32 2147483647, %v6176_v42 }
 0x291   :  { %v6198_v50 = vmul.f32 %v3134_v59, %v5960_v32  ;;  %v3071_v7 = vmul.f32 %v3007_v33, %v6043_v9  ;;  %v2304_v3 = vadd.f32 1.4214138, %v2240_v38  ;;  %v2838_v62 = vmul.f32 1.442695, %v2755_v25 }
 0x292   :  { %v6202_v56 = vmul.f32 0.5, %v6131_v61  ;;  %v2689_v16 = vsub.f32 0.0, %v1857_v6  ;;  %v1926_v8 = vmul.f32 0.3275911, %v1862_v24  ;;  %v6204_v28 = vmul.f32 0.70710677, %v1410_v37 }
 0x293   :  { %v2626_v39 = vmul.f32 %v6118_v57, %v2562_v4  ;;  %v2368_v34 = vmul.f32 %v6161_v63, %v2304_v3  ;;  %vm1729_vm3 = vcmp.ge.f32.partialorder %v6155_v14, 0.0  ;;  %v1421_v32 = vadd.f32 %v6181_v55, %v5861_v54 }
 0x294   :  { %v6211_v29 = vpop.eup %4274  ;;  %v6214_v9 = vmul.f32 %v3132_v19, %v5988_v30  ;;  %v3005_v61 = vsub.f32 1.0, %v2941_v26  ;;  %v1990_v59 = vadd.f32 1.0, %v1926_v8  ;;  %v1860_v0 = vand.u32 2147483647, %v6204_v28 }
 0x295   :  { %v3135_v33 = vadd.f32 1.0, %v3071_v7  ;;  %v2432_v1 = vadd.f32 -0.28449672, %v2368_v34  ;;  %v2115_v57 = vmul.f32 1.0614054, %v6211_v29  ;;  %4280 = vpow2.f32 %v2838_v62 }
 0x296   :  { %v6219_v48 = vsel %vm1729_vm3, 1.0, %v8113_v46  ;;  %v2753_v14 = vmul.f32 %v2689_v16, %v1857_v6  ;;  %4282 = vrcp.f32 %v1990_v59  ;;  %v1924_v54 = vmul.f32 0.3275911, %v1860_v0 }
 0x297   :  { %v2946_v17 = vmul.f32 %v4273_v18, %v2626_v39  ;;  %v2496_v25 = vmul.f32 %v6161_v63, %v2432_v1  ;;  %v2179_v30 = vadd.f32 -1.4531521, %v2115_v57  ;;  %v6222_v4 = vmul.f32 0.70710677, %v1421_v32 }
 0x298   :  { %v4277_v38 = vpop.eup %4276  ;;  %v3069_v19 = vmul.f32 %v3005_v61, %v6082_v10  ;;  %v6225_v26 = vmul.f32 0.5, %v1418_v36  ;;  %v1988_v7 = vadd.f32 1.0, %v1924_v54  ;;  %v6229_v3 = vadd.f32 %v6181_v55, %v5868_v12 }
 0x299   :  { %v6231_v62 = vpop.eup %4278  ;;  %v6234_v6 = vmul.f32 %v3135_v33, %v6023_v5  ;;  %v2243_v18 = vmul.f32 %v6211_v29, %v2179_v30  ;;  %vm1734_vm4 = vcmp.ge.f32.partialorder %v6176_v42, 0.0  ;;  %v2694_v16 = vsub.f32 0.0, %v1862_v24 }
 0x29a   :  { %v2560_v8 = vadd.f32 0.2548296, %v2496_v25  ;;  %v2113_v10 = vmul.f32 1.0614054, %v6231_v62  ;;  %v2834_v36 = vmul.f32 1.442695, %v2753_v14  ;;  %4284 = vrcp.f32 %v1988_v7 }
 0x29b   :  { %v3010_v39 = vsub.f32 1.0, %v2946_v17  ;;  %v2307_v34 = vadd.f32 1.4214138, %v2243_v18  ;;  %v6239_v61 = vmul.f32 0.5, %v1410_v37  ;;  %v6242_v12 = vand.u32 2147483647, %v6222_v4 }
 0x29c   :  { %v3133_v59 = vadd.f32 1.0, %v3069_v19  ;;  %v2177_v5 = vadd.f32 -1.4531521, %v2113_v10  ;;  %v6245_v33 = vsel %vm1734_vm4, 1.0, %v8113_v46  ;;  %v6248_v42 = vmul.f32 0.70710677, %v6229_v3 }
 0x29d   :  { %v2371_v1 = vmul.f32 %v6211_v29, %v2307_v34  ;;  %v2758_v57 = vmul.f32 %v2694_v16, %v1862_v24  ;;  %v2692_v14 = vsub.f32 0.0, %v1860_v0  ;;  %v1927_v54 = vmul.f32 0.3275911, %v6242_v12 }
 0x29e   :  { %v2624_v37 = vmul.f32 %v6161_v63, %v2560_v8  ;;  %v2241_v17 = vmul.f32 %v6231_v62, %v2177_v5  ;;  %v6255_v25 = vand.u32 2147483647, %v6248_v42  ;;  %v3248_v30 = vpack.c.bf16 %v5939_v45, %v5929_v15  ;;  %v6277_v5 = vpop.f32.mrb[40].mxu0 }
 0x29f   :  { %v6259_v19 = vpop.eup %4280  ;;  %v3074_v7 = vmul.f32 %v3010_v39, %v6116_v21  ;;  %v2435_v18 = vadd.f32 -0.28449672, %v2371_v1  ;;  %vm1732_vm5 = vcmp.ge.f32.partialorder %v6204_v28, 0.0  ;;  %v1991_v24 = vadd.f32 1.0, %v1927_v54  ;;  %8130 = vst [vmem:[#allocation22_spill] sm:$0xff] %v6277_v5 }
 0x2a0   :  { %v6263_v16 = vpop.eup %4282  ;;  %v2305_v10 = vadd.f32 1.4214138, %v2241_v17  ;;  %4286 = vpow2.f32 %v2834_v36  ;;  %v6265_v63 = vmul.f32 0.5, %v1421_v32  ;;  %v1925_v8 = vmul.f32 0.3275911, %v6255_v25  ;;  %3985 = vmatprep.mubr.bf16.mxu0 %v3248_v30 }
 0x2a1   :  { %v2499_v34 = vmul.f32 %v6211_v29, %v2435_v18  ;;  %v2118_v15 = vmul.f32 1.0614054, %v6263_v16  ;;  %v2756_v45 = vmul.f32 %v2692_v14, %v1860_v0  ;;  %4288 = vrcp.f32 %v1991_v24  ;;  %v6283_v14 = vpop.f32.mrb[41].mxu0 }
 0x2a2   :  { %v8129_v21 = vpack.c.bf16 %v5876_v11, %v5873_v13  ;;  %v2944_v28 = vmul.f32 %v4277_v38, %v2624_v37  ;;  %v2369_v39 = vmul.f32 %v6231_v62, %v2305_v10  ;;  %v6275_v36 = vsel %vm1732_vm5, 1.0, %v8113_v46  ;;  %8131 = vst [vmem:[#allocation23_spill] sm:$0xff] %v6283_v14  ;;  %v6291_v30 = vpop.f32.mrb[42].mxu0 }
 0x2a3   :  { %v1989_v32 = vadd.f32 1.0, %v1925_v8  ;;  %v3138_v1 = vadd.f32 1.0, %v3074_v7  ;;  %v2182_v54 = vadd.f32 -1.4531521, %v2118_v15  ;;  %v2844_v17 = vmul.f32 1.442695, %v2758_v57 }
 0x2a4   :  { %3986 = vmatmul.mubr.bf16.vlgmr.msra.gmra.mrb[64].mxu0 %v8129_v21  ;;  %v6281_v0 = vadd.f32 %v6181_v55, %v5909_v43  ;;  %v6285_v13 = vpop.eup %4284  ;;  %v6288_v11 = vmul.f32 %v3133_v59, %v6050_v35  ;;  %v2563_v38 = vadd.f32 0.2548296, %v2499_v34  ;;  %v2433_v37 = vadd.f32 -0.28449672, %v2369_v39  ;;  %8132 = vst [vmem:[#allocation24_spill] sm:$0xff] %v6291_v30 }
 0x2a5   :  { %vm1735_vm6 = vcmp.ge.f32.partialorder %v6222_v4, 0.0  ;;  %v2246_v7 = vmul.f32 %v6263_v16, %v2182_v54  ;;  %v2116_v57 = vmul.f32 1.0614054, %v6285_v13  ;;  %v2840_v18 = vmul.f32 1.442695, %v2756_v45 }
 0x2a6   :  { %v2695_v43 = vsub.f32 0.0, %v6242_v12  ;;  %v3008_v24 = vsub.f32 1.0, %v2944_v28  ;;  %v2497_v10 = vmul.f32 %v6231_v62, %v2433_v37  ;;  %4290 = vrcp.f32 %v1989_v32 }
 0x2a7   :  { %v6298_v35 = vmul.f32 0.70710677, %v6281_v0  ;;  %v2310_v59 = vadd.f32 1.4214138, %v2246_v7  ;;  %4292 = vpow2.f32 %v2844_v17  ;;  %v2180_v8 = vadd.f32 -1.4531521, %v2116_v57 }
 0x2a8   :  { %v6301_v4 = vsel %vm1735_vm6, 1.0, %v8113_v46  ;;  %v2627_v34 = vmul.f32 %v6211_v29, %v2563_v38  ;;  %v2561_v15 = vadd.f32 0.2548296, %v2497_v10  ;;  %v6307_v21 = vadd.f32 %v6181_v55, %v5917_v31  ;;  %v6315_v17 = vpop.f32.mrb[43].mxu0 }
 0x2a9   :  { %v1866_v45 = vand.u32 2147483647, %v6298_v35  ;;  %v6310_v28 = vmul.f32 %v3138_v1, %v6110_v53  ;;  %v2374_v39 = vmul.f32 %v6263_v16, %v2310_v59  ;;  %v2244_v32 = vmul.f32 %v6285_v13, %v2180_v8  ;;  %8134 = vst [vmem:[#allocation26_spill] sm:$0xff] %v6315_v17 }
 0x2aa   :  { %v2693_v54 = vsub.f32 0.0, %v6255_v25  ;;  %v4287_v37 = vpop.eup %4286  ;;  %v3072_v29 = vmul.f32 %v3008_v24, %v6151_v27  ;;  %4294 = vpow2.f32 %v2840_v18  ;;  %v2759_v38 = vmul.f32 %v2695_v43, %v6242_v12 }
 0x2ab   :  { %8133 = vst [vmem:[#allocation25_spill] sm:$0xff] %v6310_v28  ;;  %v1930_v7 = vmul.f32 0.3275911, %v1866_v45  ;;  %v6319_v31 = vpop.eup %4288  ;;  %v2625_v53 = vmul.f32 %v6231_v62, %v2561_v15  ;;  %v2438_v1 = vadd.f32 -0.28449672, %v2374_v39  ;;  %v6323_v10 = vmul.f32 0.5, %v6229_v3 }
 0x2ac   :  { %v2308_v57 = vadd.f32 1.4214138, %v2244_v32  ;;  %v2947_v59 = vmul.f32 %v6259_v19, %v2627_v34  ;;  %v2119_v8 = vmul.f32 1.0614054, %v6319_v31  ;;  %v6328_v27 = vmul.f32 0.70710677, %v6307_v21 }
 0x2ad   :  { %v1994_v17 = vadd.f32 1.0, %v1930_v7  ;;  %v2502_v12 = vmul.f32 %v6263_v16, %v2438_v1  ;;  %vm1733_vm7 = vcmp.ge.f32.partialorder %v6248_v42, 0.0  ;;  %v2757_v62 = vmul.f32 %v2693_v54, %v6255_v25  ;;  %v8135_v39 = vld [vmem:[#allocation15_spill] sm:$0xff]  ;;  %v6345_v54 = vpop.f32.mrb[44].mxu0 }
 0x2ae   :  { %v2372_v18 = vmul.f32 %v6285_v13, %v2308_v57  ;;  %v3136_v43 = vadd.f32 1.0, %v3072_v29  ;;  %v2183_v24 = vadd.f32 -1.4531521, %v2119_v8  ;;  %v2846_v3 = vmul.f32 1.442695, %v2759_v38  ;;  %8136 = vst [vmem:[#allocation15_spill] sm:$0xff] %v6345_v54 }
 0x2af   :  { %4296 = vrcp.f32 %v1994_v17  ;;  %v2945_v15 = vmul.f32 %v4287_v37, %v2625_v53  ;;  %v2566_v19 = vadd.f32 0.2548296, %v2502_v12  ;;  %v6336_v32 = vadd.f32 %v6181_v55, %v8135_v39 }
 0x2b0   :  { %v2436_v34 = vadd.f32 -0.28449672, %v2372_v18  ;;  %v6338_v7 = vpop.eup %4290  ;;  %v3011_v1 = vsub.f32 1.0, %v2947_v59  ;;  %v2247_v57 = vmul.f32 %v6319_v31, %v2183_v24  ;;  %v6342_v42 = vsel %vm1733_vm7, 1.0, %v8113_v46 }
 0x2b1   :  { %v1864_v25 = vand.u32 2147483647, %v6328_v27  ;;  %v4293_v17 = vpop.eup %4292  ;;  %v2117_v29 = vmul.f32 1.0614054, %v6338_v7  ;;  %v2842_v38 = vmul.f32 1.442695, %v2757_v62  ;;  %v2630_v8 = vmul.f32 %v6263_v16, %v2566_v19 }
 0x2b2   :  { %v2500_v37 = vmul.f32 %v6285_v13, %v2436_v34  ;;  %v2698_v53 = vsub.f32 0.0, %v1866_v45  ;;  %v2311_v12 = vadd.f32 1.4214138, %v2247_v57  ;;  %4298 = vpow2.f32 %v2846_v3 }
 0x2b3   :  { %v1928_v59 = vmul.f32 0.3275911, %v1864_v25  ;;  %v6351_v18 = vmul.f32 %v3136_v43, %v6137_v47  ;;  %v3009_v24 = vsub.f32 1.0, %v2945_v15  ;;  %v2181_v39 = vadd.f32 -1.4531521, %v2117_v29  ;;  %v6361_v43 = vpop.f32.mrb[45].mxu0 }
 0x2b4   :  { %v1675_v30 = vmul.f32 0.70710677, %v6336_v32  ;;  %v4295_v54 = vpop.eup %4294  ;;  %v3075_v14 = vmul.f32 %v3011_v1, %v6192_v23  ;;  %v2564_v34 = vadd.f32 0.2548296, %v2500_v37  ;;  %v2375_v5 = vmul.f32 %v6319_v31, %v2311_v12  ;;  %8138 = vst [vmem:[#allocation28_spill] sm:$0xff] %v6361_v43 }
 0x2b5   :  { %8137 = vst [vmem:[#allocation27_spill] sm:$0xff] %v6351_v18  ;;  %v1992_v62 = vadd.f32 1.0, %v1928_v59  ;;  %v2245_v28 = vmul.f32 %v6338_v7, %v2181_v39  ;;  %4300 = vpow2.f32 %v2842_v38  ;;  %v2762_v16 = vmul.f32 %v2698_v53, %v1866_v45  ;;  %v8140_v53 = vld [vmem:[#allocation10_spill] sm:$0xff] }
 0x2b6   :  { %v2696_v3 = vsub.f32 0.0, %v1864_v25  ;;  %v2950_v19 = vmul.f32 %v4293_v17, %v2630_v8  ;;  %v6358_v47 = vmul.f32 0.5, %v6281_v0  ;;  %vm1738_vm8 = vcmp.ge.f32.partialorder %v6298_v35, 0.0  ;;  %v8139_v0 = vld [vmem:[#allocation17_spill] sm:$0xff] }
 0x2b7   :  { %4302 = vrcp.f32 %v1992_v62  ;;  %v3073_v23 = vmul.f32 %v3009_v24, %v6219_v48  ;;  %v2439_v15 = vadd.f32 -0.28449672, %v2375_v5  ;;  %v2309_v1 = vadd.f32 1.4214138, %v2245_v28 }
 0x2b8   :  { %v6364_v57 = vand.u32 2147483647, %v1675_v30  ;;  %v3139_v29 = vadd.f32 1.0, %v3075_v14  ;;  %v2628_v45 = vmul.f32 %v6285_v13, %v2564_v34  ;;  %v6370_v17 = vmul.f32 0.5, %v6307_v21 }
 0x2b9   :  { %v6366_v37 = vpop.eup %4296  ;;  %v1429_v38 = vadd.f32 %v6181_v55, %v8139_v0  ;;  %vm1716_vm9 = vcmp.ge.f32.partialorder %v8140_v53, 0.0  ;;  %v2373_v8 = vmul.f32 %v6338_v7, %v2309_v1  ;;  %v2852_v5 = vmul.f32 1.442695, %v2762_v16  ;;  %v8142_v1 = vld [vmem:[#allocation11_spill] sm:$0xff] }
 0x2ba   :  { %v2122_v48 = vmul.f32 1.0614054, %v6366_v37  ;;  %v2760_v28 = vmul.f32 %v2696_v3, %v1864_v25  ;;  %v3014_v12 = vsub.f32 1.0, %v2950_v19  ;;  %v6380_v14 = vsel %vm1738_vm8, 1.0, %v8113_v46 }
 0x2bb   :  { %vm1736_vm10 = vcmp.ge.f32.partialorder %v6328_v27, 0.0  ;;  %v1931_v13 = vmul.f32 0.3275911, %v6364_v57  ;;  %v3137_v21 = vadd.f32 1.0, %v3073_v23  ;;  %v2503_v59 = vmul.f32 %v6319_v31, %v2439_v15 }
 0x2bc   :  { %v2437_v24 = vadd.f32 -0.28449672, %v2373_v8  ;;  %v2186_v39 = vadd.f32 -1.4531521, %v2122_v48  ;;  %v4299_v34 = vpop.eup %4298  ;;  %v6386_v62 = vmul.f32 %v3139_v29, %v6174_v22  ;;  %v2948_v25 = vmul.f32 %v4295_v54, %v2628_v45  ;;  %v6401_v54 = vpop.f32.mrb[46].mxu0 }
 0x2bd   :  { %v1995_v16 = vadd.f32 1.0, %v1931_v13  ;;  %v6388_v3 = vmul.f32 0.70710677, %v1429_v38  ;;  %4304 = vpow2.f32 %v2852_v5  ;;  %v2848_v19 = vmul.f32 1.442695, %v2760_v28  ;;  %8143 = vst [vmem:[#allocation10_spill] sm:$0xff] %v6401_v54 }
 0x2be   :  { %8141 = vst [vmem:[#allocation17_spill] sm:$0xff] %v6386_v62  ;;  %v2250_v35 = vmul.f32 %v6366_v37, %v2186_v39  ;;  %vm1739_vm11 = vcmp.ge.f32.partialorder %v1675_v30, 0.0  ;;  %vm1717_vm12 = vcmp.ge.f32.partialorder %v8142_v1, 0.0  ;;  %v3078_v23 = vmul.f32 %v3014_v12, %v6245_v33  ;;  %v8145_v5 = vld [vmem:[#allocation13_spill] sm:$0xff]  ;;  %v8146_v13 = vld [vmem:[#allocation18_spill] sm:$0xff] }
 0x2bf   :  { %v6396_v15 = vsel %vm1736_vm10, 1.0, %v8113_v46  ;;  %v6399_v22 = vmul.f32 0.5, %v6336_v32  ;;  %4306 = vrcp.f32 %v1995_v16  ;;  %v4301_v29 = vpop.eup %4300  ;;  %v6404_v45 = vmul.f32 %v3137_v21, %v6202_v56 }
 0x2c0   :  { %v2567_v30 = vadd.f32 0.2548296, %v2503_v59  ;;  %v2501_v0 = vmul.f32 %v6338_v7, %v2437_v24  ;;  %v2314_v8 = vadd.f32 1.4214138, %v2250_v35  ;;  %v3012_v48 = vsub.f32 1.0, %v2948_v25 }
 0x2c1   :  { %8144 = vst [vmem:[#allocation11_spill] sm:$0xff] %v6404_v45  ;;  %v6407_v33 = vpop.eup %4302  ;;  %v6410_v27 = vsel %vm1739_vm11, 1.0, %v8113_v46  ;;  %v6413_v32 = vand.u32 2147483647, %v6388_v3  ;;  %v2100_v28 = vmul.f32 1.0614054, %v8145_v5  ;;  %4308 = vpow2.f32 %v2848_v19 }
 0x2c2   :  { %v2378_v12 = vmul.f32 %v6366_v37, %v2314_v8  ;;  %v2120_v56 = vmul.f32 1.0614054, %v6407_v33  ;;  %v2101_v21 = vmul.f32 1.0614054, %v8146_v13  ;;  %v3142_v59 = vadd.f32 1.0, %v3078_v23  ;;  %v6429_v8 = vpop.f32.mrb[47].mxu0 }
 0x2c3   :  { %v2699_v24 = vsub.f32 0.0, %v6364_v57  ;;  %v1929_v39 = vmul.f32 0.3275911, %v6413_v32  ;;  %v2164_v25 = vadd.f32 -1.4531521, %v2100_v28  ;;  %v2631_v16 = vmul.f32 %v6319_v31, %v2567_v30  ;;  %8147 = vst [vmem:[#allocation13_spill] sm:$0xff] %v6429_v8 }
 0x2c4   :  { %v2565_v35 = vadd.f32 0.2548296, %v2501_v0  ;;  %v2184_v54 = vadd.f32 -1.4531521, %v2120_v56  ;;  %v2165_v43 = vadd.f32 -1.4531521, %v2101_v21  ;;  %v3076_v62 = vmul.f32 %v3012_v48, %v6275_v36 }
 0x2c5   :  { %v1993_v45 = vadd.f32 1.0, %v1929_v39  ;;  %v6426_v19 = vsel %vm1716_vm9, 1.0, %v8113_v46  ;;  %v2228_v23 = vmul.f32 %v8145_v5, %v2164_v25  ;;  %v2442_v18 = vadd.f32 -0.28449672, %v2378_v12  ;;  %v8149_v25 = vld [vmem:[#allocation20_spill] sm:$0xff] }
 0x2c6   :  { %v2248_v28 = vmul.f32 %v6407_v33, %v2184_v54  ;;  %v6432_v20 = vmul.f32 0.5, %v1429_v38  ;;  %v2229_v31 = vmul.f32 %v8146_v13, %v2165_v43  ;;  %v6436_v30 = vmul.f32 %v3142_v59, %v6225_v26  ;;  %v8150_v43 = vld [vmem:[#allocation21_spill] sm:$0xff]  ;;  %v8151_v26 = vld [vmem:[#allocation2_spill] sm:$0xff] }
 0x2c7   :  { %v2763_v36 = vmul.f32 %v2699_v24, %v6364_v57  ;;  %4310 = vrcp.f32 %v1993_v45  ;;  %v2292_v53 = vadd.f32 1.4214138, %v2228_v23  ;;  %v4305_v0 = vpop.eup %4304  ;;  %v2951_v48 = vmul.f32 %v4299_v34, %v2631_v16 }
 0x2c8   :  { %8148 = vst [vmem:[#allocation18_spill] sm:$0xff] %v6436_v30  ;;  %v2629_v56 = vmul.f32 %v6338_v7, %v2565_v35  ;;  %v2312_v21 = vadd.f32 1.4214138, %v2248_v28  ;;  %v2293_v39 = vadd.f32 1.4214138, %v2229_v31  ;;  %v3140_v54 = vadd.f32 1.0, %v3076_v62 }
 0x2c9   :  { %v6440_v12 = vpop.eup %4306  ;;  %v2356_v38 = vmul.f32 %v8145_v5, %v2292_v53  ;;  %v6447_v59 = vadd.f32 %v6181_v55, %v8151_v26  ;;  %v2506_v57 = vmul.f32 %v6366_v37, %v2442_v18  ;;  %v1781_v45 = vsel %vm1717_vm12, 1.0, %v8113_v46 }
 0x2ca   :  { %v2376_v34 = vmul.f32 %v6407_v33, %v2312_v21  ;;  %v2123_v7 = vmul.f32 1.0614054, %v6440_v12  ;;  %vm1737_vm13 = vcmp.ge.f32.partialorder %v6388_v3, 0.0  ;;  %v2357_v62 = vmul.f32 %v8146_v13, %v2293_v39 }
 0x2cb   :  { %v2420_v24 = vadd.f32 -0.28449672, %v2356_v38  ;;  %v6458_v16 = vmul.f32 0.70710677, %v6447_v59  ;;  %v6460_v35 = vpop.eup %4308  ;;  %v3015_v23 = vsub.f32 1.0, %v2951_v48  ;;  %v2949_v18 = vmul.f32 %v4301_v29, %v2629_v56 }
 0x2cc   :  { %v2440_v28 = vadd.f32 -0.28449672, %v2376_v34  ;;  %v2187_v31 = vadd.f32 -1.4531521, %v2123_v7  ;;  %v2697_v53 = vsub.f32 0.0, %v6413_v32  ;;  %v6466_v8 = vmul.f32 %v3140_v54, %v6239_v61 }
 0x2cd   :  { %v2421_v21 = vadd.f32 -0.28449672, %v2357_v62  ;;  %v2484_v1 = vmul.f32 %v8145_v5, %v2420_v24  ;;  %v1870_v26 = vand.u32 2147483647, %v6458_v16  ;;  %v2570_v39 = vadd.f32 0.2548296, %v2506_v57 }
 0x2ce   :  { %8152 = vst [vmem:[#allocation20_spill] sm:$0xff] %v6466_v8  ;;  %v2251_v38 = vmul.f32 %v6440_v12, %v2187_v31  ;;  %v2854_v30 = vmul.f32 1.442695, %v2763_v36  ;;  %v2504_v58 = vmul.f32 %v6407_v33, %v2440_v28  ;;  %v3079_v34 = vmul.f32 %v3015_v23, %v6301_v4  ;;  %v8153_v23 = vld [vmem:[#allocation3_spill] sm:$0xff] }
 0x2cf   :  { %v2485_v29 = vmul.f32 %v8146_v13, %v2421_v21  ;;  %v2548_v48 = vadd.f32 0.2548296, %v2484_v1  ;;  %v1934_v56 = vmul.f32 0.3275911, %v1870_v26  ;;  %v3013_v7 = vsub.f32 1.0, %v2949_v18 }
 0x2d0   :  { %v2315_v62 = vadd.f32 1.4214138, %v2251_v38  ;;  %v6475_v24 = vsel %vm1737_vm13, 1.0, %v8113_v46  ;;  %v2761_v54 = vmul.f32 %v2697_v53, %v6413_v32  ;;  %v2634_v31 = vmul.f32 %v6366_v37, %v2570_v39  ;;  %v8154_v38 = vld [vmem:[#allocation14_spill] sm:$0xff] }
 0x2d1   :  { %v6477_v61 = vpop.eup %4310  ;;  %v2549_v36 = vadd.f32 0.2548296, %v2485_v29  ;;  %v2612_v57 = vmul.f32 %v8145_v5, %v2548_v48  ;;  %v1998_v28 = vadd.f32 1.0, %v1934_v56  ;;  %v6486_v18 = vadd.f32 %v6181_v55, %v8153_v23  ;;  %v8155_v29 = vld [vmem:[#allocation19_spill] sm:$0xff] }
 0x2d2   :  { %v2379_v21 = vmul.f32 %v6440_v12, %v2315_v62  ;;  %v2121_v4 = vmul.f32 1.0614054, %v6477_v61  ;;  %v2568_v3 = vadd.f32 0.2548296, %v2504_v58  ;;  %v3077_v32 = vmul.f32 %v3013_v7, %v6342_v42  ;;  %v6499_v7 = vpop.f32.mrb[48].mxu0 }
 0x2d3   :  { %v2613_v1 = vmul.f32 %v8146_v13, %v2549_v36  ;;  %v2932_v8 = vmul.f32 %v8154_v38, %v2612_v57  ;;  %4312 = vrcp.f32 %v1998_v28  ;;  %v3143_v37 = vadd.f32 1.0, %v3079_v34 }
 0x2d4   :  { %v2443_v5 = vadd.f32 -0.28449672, %v2379_v21  ;;  %4314 = vpow2.f32 %v2854_v30  ;;  %v2185_v53 = vadd.f32 -1.4531521, %v2121_v4  ;;  %v2850_v39 = vmul.f32 1.442695, %v2761_v54 }
 0x2d5   :  { %v2933_v48 = vmul.f32 %v8155_v29, %v2613_v1  ;;  %v2996_v56 = vsub.f32 1.0, %v2932_v8  ;;  %v2954_v62 = vmul.f32 %v4305_v0, %v2634_v31  ;;  %v6495_v13 = vmul.f32 0.70710677, %v6486_v18  ;;  %v6505_v0 = vpop.f32.mrb[49].mxu0 }
 0x2d6   :  { %v2507_v23 = vmul.f32 %v6440_v12, %v2443_v5  ;;  %v2249_v58 = vmul.f32 %v6477_v61, %v2185_v53  ;;  %v2632_v36 = vmul.f32 %v6407_v33, %v2568_v3  ;;  %v2702_v30 = vsub.f32 0.0, %v1870_v26  ;;  %v6516_v53 = vpop.f32.mrb[50].mxu0 }
 0x2d7   :  { %v2997_v57 = vsub.f32 1.0, %v2933_v48  ;;  %v3060_v42 = vmul.f32 %v2996_v56, %v6426_v19  ;;  %v3141_v34 = vadd.f32 1.0, %v3077_v32  ;;  %v6503_v8 = vadd.f32 %v6181_v55, %v6062_v51  ;;  %v8157_v56 = vld [vmem:[#allocation12_spill] sm:$0xff] }
 0x2d8   :  { %v2571_v54 = vadd.f32 0.2548296, %v2507_v23  ;;  %v2313_v28 = vadd.f32 1.4214138, %v2249_v58  ;;  %v6508_v31 = vmul.f32 %v3143_v37, %v6265_v63  ;;  %v1868_v4 = vand.u32 2147483647, %v6495_v13 }
 0x2d9   :  { %v3061_v21 = vmul.f32 %v2997_v57, %v1781_v45  ;;  %v3124_v33 = vadd.f32 1.0, %v3060_v42  ;;  %v3018_v19 = vsub.f32 1.0, %v2954_v62  ;;  %4316 = vpow2.f32 %v2850_v39 }
 0x2da   :  { %v2377_v3 = vmul.f32 %v6477_v61, %v2313_v28  ;;  %v6513_v1 = vmul.f32 0.5, %v6447_v59  ;;  %v2952_v38 = vmul.f32 %v6460_v35, %v2632_v36  ;;  %v2766_v32 = vmul.f32 %v2702_v30, %v1870_v26  ;;  %v8156_v59 = vld [vmem:[#allocation16_spill] sm:$0xff] }
 0x2db   :  { %v3125_v51 = vadd.f32 1.0, %v3061_v21  ;;  %v1932_v5 = vmul.f32 0.3275911, %v1868_v4  ;;  %v6519_v63 = vmul.f32 %v3141_v34, %v6323_v10  ;;  %v2635_v45 = vmul.f32 %v6440_v12, %v2571_v54  ;;  %v8158_v26 = vld [vmem:[#allocation4_spill] sm:$0xff]  ;;  %v6535_v34 = vpop.f32.mrb[51].mxu0 }
 0x2dc   :  { %v2441_v37 = vadd.f32 -0.28449672, %v2377_v3  ;;  %v6523_v29 = vmul.f32 0.70710677, %v6503_v8  ;;  %v3188_v48 = vmul.f32 %v3124_v33, %v8156_v59  ;;  %v1445_v23 = vadd.f32 %v6181_v55, %v8158_v26 }
 0x2dd   :  { %v6525_v39 = vpop.eup %4312  ;;  %v3189_v35 = vmul.f32 %v3125_v51, %v8157_v56  ;;  %v1996_v62 = vadd.f32 1.0, %v1932_v5  ;;  %v3082_v10 = vmul.f32 %v3018_v19, %v6380_v14  ;;  %vm1742_vm14 = vcmp.ge.f32.partialorder %v6458_v16, 0.0 }
 0x2de   :  { %v4315_v58 = vpop.eup %4314  ;;  %v2505_v36 = vmul.f32 %v6477_v61, %v2441_v37  ;;  %v2126_v12 = vmul.f32 1.0614054, %v6525_v39  ;;  %v3016_v57 = vsub.f32 1.0, %v2952_v38  ;;  %v2860_v30 = vmul.f32 1.442695, %v2766_v32 }
 0x2df   :  { %v3250_v42 = vpack.c.bf16 %v3189_v35, %v3188_v48  ;;  %4318 = vrcp.f32 %v1996_v62  ;;  %v2955_v54 = vmul.f32 %v4315_v58, %v2635_v45  ;;  %v1871_v33 = vand.u32 2147483647, %v6523_v29 }
 0x2e0   :  { %v2569_v28 = vadd.f32 0.2548296, %v2505_v36  ;;  %v2190_v21 = vadd.f32 -1.4531521, %v2126_v12  ;;  %v2700_v3 = vsub.f32 0.0, %v1868_v4  ;;  %v3252_v19 = vpack.c.bf16 %v6186_v49, %v6143_v2 }
 0x2e1   :  { %3989 = vmatprep.mubr.bf16.mxu1 %v3250_v42  ;;  %v6538_v14 = vmul.f32 0.70710677, %v1445_v23  ;;  %v3253_v38 = vpack.c.bf16 %v6167_v40, %v6076_v52  ;;  %v3146_v51 = vadd.f32 1.0, %v3082_v10  ;;  %v8159_v32 = vpack.c.bf16 %v8150_v43, %v8149_v25 }
 0x2e2   :  { %v6550_v5 = vsel %vm1742_vm14, 1.0, %v8113_v46  ;;  %v2254_v45 = vmul.f32 %v6525_v39, %v2190_v21  ;;  %v1935_v37 = vmul.f32 0.3275911, %v1871_v33  ;;  %v3080_v59 = vmul.f32 %v3016_v57, %v6396_v15  ;;  %v8161_v21 = vld [vmem:[#allocation6_spill] sm:$0xff] }
 0x2e3   :  { %3990 = vmatmul.mubr.bf16.vlgmr.msra.gmra.mrb[0].mxu1 %v8159_v32  ;;  %vm1740_vm15 = vcmp.ge.f32.partialorder %v6495_v13, 0.0  ;;  %v1869_v2 = vand.u32 2147483647, %v6538_v14  ;;  %v1466_v52 = vadd.f32 %v6181_v55, %v6087_v44  ;;  %v4317_v40 = vpop.eup %4316  ;;  %v3019_v49 = vsub.f32 1.0, %v2955_v54  ;;  %v8160_v13 = vld [vmem:[#allocation5_spill] sm:$0xff] }
 0x2e4   :  { %3993 = vmatprep.mubr.bf16.mxu1 %v3252_v19  ;;  %v2633_v25 = vmul.f32 %v6477_v61, %v2569_v28  ;;  %v2318_v43 = vadd.f32 1.4214138, %v2254_v45  ;;  %v1999_v16 = vadd.f32 1.0, %v1935_v37  ;;  %4320 = vpow2.f32 %v2860_v30 }
 0x2e5   :  { %v2764_v48 = vmul.f32 %v2700_v3, %v1868_v4  ;;  %v2703_v56 = vsub.f32 0.0, %v1871_v33  ;;  %v1933_v35 = vmul.f32 0.3275911, %v1869_v2  ;;  %v6560_v15 = vmul.f32 %v3146_v51, %v6358_v47 }
 0x2e6   :  { %v2382_v62 = vmul.f32 %v6525_v39, %v2318_v43  ;;  %v6564_v26 = vmul.f32 0.5, %v6486_v18  ;;  %4322 = vrcp.f32 %v1999_v16  ;;  %v3144_v44 = vadd.f32 1.0, %v3080_v59 }
 0x2e7   :  { %v6569_v61 = vsel %vm1740_vm15, 1.0, %v8113_v46  ;;  %v1997_v58 = vadd.f32 1.0, %v1933_v35  ;;  %v6571_v10 = vmul.f32 0.70710677, %v1466_v52  ;;  %v3083_v4 = vmul.f32 %v3019_v49, %v6410_v27 }
 0x2e8   :  { %v2953_v36 = vmul.f32 %v4317_v40, %v2633_v25  ;;  %v2446_v47 = vadd.f32 -0.28449672, %v2382_v62  ;;  %v6575_v12 = vmul.f32 0.5, %v6503_v8  ;;  %v2856_v18 = vmul.f32 1.442695, %v2764_v48  ;;  %v6608_v48 = vpop.f32.mrb[52].mxu0 }
 0x2e9   :  { %v6577_v57 = vpop.eup %4318  ;;  %v2767_v42 = vmul.f32 %v2703_v56, %v1871_v33  ;;  %v6580_v30 = vand.u32 2147483647, %v6571_v10  ;;  %v6584_v54 = vadd.f32 %v6181_v55, %v8160_v13  ;;  %4324 = vrcp.f32 %v1997_v58 }
 0x2ea   :  { %v2510_v28 = vmul.f32 %v6525_v39, %v2446_v47  ;;  %v2124_v27 = vmul.f32 1.0614054, %v6577_v57  ;;  %v1469_v8 = vadd.f32 %v6181_v55, %v8161_v21  ;;  %v6591_v3 = vmul.f32 %v3144_v44, %v6370_v17 }
 0x2eb   :  { %3994 = vmatmul.mubr.bf16.gmra.mrb[4].mxu1 %v3253_v38  ;;  %v6593_v33 = vmul.f32 0.5, %v1445_v23  ;;  %v2701_v19 = vsub.f32 0.0, %v1869_v2  ;;  %v1938_v51 = vmul.f32 0.3275911, %v6580_v30  ;;  %v3147_v32 = vadd.f32 1.0, %v3083_v4 }
 0x2ec   :  { %v3017_v45 = vsub.f32 1.0, %v2953_v36  ;;  %v2188_v37 = vadd.f32 -1.4531521, %v2124_v27  ;;  %vm1743_vm1 = vcmp.ge.f32.partialorder %v6523_v29, 0.0  ;;  %v2862_v59 = vmul.f32 1.442695, %v2767_v42 }
 0x2ed   :  { %vm1741_vm2 = vcmp.ge.f32.partialorder %v6538_v14, 0.0  ;;  %v2002_v38 = vadd.f32 1.0, %v1938_v51  ;;  %v6599_v40 = vmul.f32 0.70710677, %v6584_v54  ;;  %v2574_v49 = vadd.f32 0.2548296, %v2510_v28 }
 0x2ee   :  { %v2252_v17 = vmul.f32 %v6577_v57, %v2188_v37  ;;  %4326 = vpow2.f32 %v2856_v18  ;;  %v6602_v23 = vmul.f32 0.70710677, %v1469_v8  ;;  %v4321_v25 = vpop.eup %4320  ;;  %v6605_v43 = vsel %vm1743_vm1, 1.0, %v8113_v46  ;;  %v6634_v28 = vpop.f32.mrb[53].mxu0 }
 0x2ef   :  { %v2765_v16 = vmul.f32 %v2701_v19, %v1869_v2  ;;  %4328 = vrcp.f32 %v2002_v38  ;;  %v1872_v29 = vand.u32 2147483647, %v6599_v40  ;;  %v6613_v35 = vmul.f32 %v3147_v32, %v6399_v22 }
 0x2f0   :  { %v6610_v56 = vpop.eup %4322  ;;  %v3081_v62 = vmul.f32 %v3017_v45, %v6475_v24  ;;  %v2316_v44 = vadd.f32 1.4214138, %v2252_v17  ;;  %v6619_v58 = vsel %vm1741_vm2, 1.0, %v8113_v46  ;;  %4330 = vpow2.f32 %v2862_v59 }
 0x2f1   :  { %v2127_v2 = vmul.f32 1.0614054, %v6610_v56  ;;  %v6622_v4 = vmul.f32 0.5, %v1466_v52  ;;  %v1936_v36 = vmul.f32 0.3275911, %v1872_v29  ;;  %v2638_v47 = vmul.f32 %v6525_v39, %v2574_v49 }
 0x2f2   :  { %v2380_v18 = vmul.f32 %v6577_v57, %v2316_v44  ;;  %vm1746_vm3 = vcmp.ge.f32.partialorder %v6571_v10, 0.0  ;;  %v6628_v22 = vand.u32 2147483647, %v6602_v23  ;;  %v2858_v42 = vmul.f32 1.442695, %v2765_v16 }
 0x2f3   :  { %v2191_v24 = vadd.f32 -1.4531521, %v2127_v2  ;;  %v2000_v14 = vadd.f32 1.0, %v1936_v36  ;;  %v6632_v13 = vadd.f32 %v6181_v55, %v6106_v41  ;;  %v6636_v52 = vpop.eup %4324  ;;  %v3145_v27 = vadd.f32 1.0, %v3081_v62  ;;  %v6645_v41 = vpop.f32.mrb[54].mxu0 }
 0x2f4   :  { %v2444_v39 = vadd.f32 -0.28449672, %v2380_v18  ;;  %v2706_v21 = vsub.f32 0.0, %v6580_v30  ;;  %v1939_v10 = vmul.f32 0.3275911, %v6628_v22  ;;  %v6643_v32 = vsel %vm1746_vm3, 1.0, %v8113_v46 }
 0x2f5   :  { %v2255_v19 = vmul.f32 %v6610_v56, %v2191_v24  ;;  %v2125_v51 = vmul.f32 1.0614054, %v6636_v52  ;;  %4332 = vrcp.f32 %v2000_v14  ;;  %v2958_v45 = vmul.f32 %v4321_v25, %v2638_v47 }
 0x2f6   :  { %v2508_v37 = vmul.f32 %v6577_v57, %v2444_v39  ;;  %v2704_v59 = vsub.f32 0.0, %v1872_v29  ;;  %v2003_v38 = vadd.f32 1.0, %v1939_v10  ;;  %4334 = vpow2.f32 %v2858_v42 }
 0x2f7   :  { %v2319_v49 = vadd.f32 1.4214138, %v2255_v19  ;;  %v2189_v17 = vadd.f32 -1.4531521, %v2125_v51  ;;  %v6649_v16 = vmul.f32 0.70710677, %v6632_v13  ;;  %v2770_v44 = vmul.f32 %v2706_v21, %v6580_v30 }
 0x2f8   :  { %v4327_v62 = vpop.eup %4326  ;;  %v6653_v2 = vmul.f32 0.5, %v6584_v54  ;;  %v6655_v36 = vmul.f32 0.5, %v1469_v8  ;;  %4336 = vrcp.f32 %v2003_v38  ;;  %vm1744_vm4 = vcmp.ge.f32.partialorder %v6599_v40, 0.0 }
 0x2f9   :  { %v6657_v25 = vpop.eup %4328  ;;  %v2383_v47 = vmul.f32 %v6610_v56, %v2319_v49  ;;  %v2253_v18 = vmul.f32 %v6636_v52, %v2189_v17  ;;  %v6663_v24 = vand.u32 2147483647, %v6649_v16  ;;  %v3022_v42 = vsub.f32 1.0, %v2958_v45  ;;  %v6672_v45 = vpop.f32.mrb[55].mxu0 }
 0x2fa   :  { %v2572_v14 = vadd.f32 0.2548296, %v2508_v37  ;;  %v2130_v30 = vmul.f32 1.0614054, %v6657_v25  ;;  %v2768_v54 = vmul.f32 %v2704_v59, %v1872_v29  ;;  %v4331_v39 = vpop.eup %4330  ;;  %v3254_v19 = vpack.c.bf16 %v6288_v11, %v6214_v9 }
 0x2fb   :  { %v2447_v8 = vadd.f32 -0.28449672, %v2383_v47  ;;  %v2317_v21 = vadd.f32 1.4214138, %v2253_v18  ;;  %v1937_v10 = vmul.f32 0.3275911, %v6663_v24  ;;  %v3255_v17 = vpack.c.bf16 %v6234_v6, %v6198_v50 }
 0x2fc   :  { %v2194_v51 = vadd.f32 -1.4531521, %v2130_v30  ;;  %v2868_v38 = vmul.f32 1.442695, %v2770_v44  ;;  %v2707_v49 = vsub.f32 0.0, %v6628_v22  ;;  %3997 = vmatprep.mubr.bf16.mxu1 %v3254_v19  ;;  %v6678_v47 = vadd.f32 %v6181_v55, %v6133_v60 }
 0x2fd   :  { %v2511_v37 = vmul.f32 %v6610_v56, %v2447_v8  ;;  %v2381_v29 = vmul.f32 %v6636_v52, %v2317_v21  ;;  %v2001_v59 = vadd.f32 1.0, %v1937_v10  ;;  %v3086_v9 = vmul.f32 %v3022_v42, %v6550_v5  ;;  %3998 = vmatmul.mubr.bf16.gmra.mrb[8].mxu1 %v3255_v17 }
 0x2fe   :  { %v2258_v11 = vmul.f32 %v6657_v25, %v2194_v51  ;;  %v6685_v50 = vsel %vm1744_vm4, 1.0, %v8113_v46  ;;  %vm1747_vm5 = vcmp.ge.f32.partialorder %v6602_v23, 0.0  ;;  %v2636_v44 = vmul.f32 %v6577_v57, %v2572_v14  ;;  %v6718_v23 = vld [vmem:[%s8007_s5] ss:$0 sm:$0xff] }
 0x2ff   :  { %v6688_v6 = vpop.eup %4332  ;;  %v2445_v18 = vadd.f32 -0.28449672, %v2381_v29  ;;  %v2864_v30 = vmul.f32 1.442695, %v2768_v54  ;;  %4338 = vrcp.f32 %v2001_v59  ;;  %v6692_v60 = vmul.f32 %v3145_v27, %v6432_v20 }
 0x300   :  { %v2575_v55 = vadd.f32 0.2548296, %v2511_v37  ;;  %v2322_v5 = vadd.f32 1.4214138, %v2258_v11  ;;  %v2128_v42 = vmul.f32 1.0614054, %v6688_v6  ;;  %v4335_v40 = vpop.eup %4334  ;;  %4340 = vpow2.f32 %v2868_v38 }
 0x301   :  { %v2509_v8 = vmul.f32 %v6636_v52, %v2445_v18  ;;  %v2771_v21 = vmul.f32 %v2707_v49, %v6628_v22  ;;  %v6698_v10 = vmul.f32 0.70710677, %v6678_v47  ;;  %v3150_v14 = vadd.f32 1.0, %v3086_v9 }
 0x302   :  { %v6700_v57 = vpop.eup %4336  ;;  %v2386_v54 = vmul.f32 %v6657_v25, %v2322_v5  ;;  %v2192_v20 = vadd.f32 -1.4531521, %v2128_v42  ;;  %v6706_v27 = vsel %vm1747_vm5, 1.0, %v8113_v46  ;;  %v2956_v19 = vmul.f32 %v4327_v62, %v2636_v44  ;;  %v8162_v62 = vld [vmem:[#allocation7_spill] sm:$0xff] }
 0x303   :  { %4342 = vpow2.f32 %v2864_v30  ;;  %v2131_v51 = vmul.f32 1.0614054, %v6700_v57  ;;  %v6710_v22 = vmul.f32 0.5, %v6632_v13  ;;  %v2639_v38 = vmul.f32 %v6610_v56, %v2575_v55 }
 0x304   :  { %v2573_v49 = vadd.f32 0.2548296, %v2509_v8  ;;  %v2450_v17 = vadd.f32 -0.28449672, %v2386_v54  ;;  %v2256_v37 = vmul.f32 %v6688_v6, %v2192_v20  ;;  %v2870_v59 = vmul.f32 1.442695, %v2771_v21 }
 0x305   :  { %v2195_v29 = vadd.f32 -1.4531521, %v2131_v51  ;;  %v1878_v9 = vand.u32 2147483647, %v6698_v10  ;;  %v1474_v11 = vadd.f32 %v6718_v23, %v8162_v62  ;;  %v6723_v13 = vmul.f32 %v3150_v14, %v6513_v1 }
 0x306   :  { %v2514_v56 = vmul.f32 %v6657_v25, %v2450_v17  ;;  %v2320_v44 = vadd.f32 1.4214138, %v2256_v37  ;;  %v2705_v18 = vsub.f32 0.0, %v6663_v24  ;;  %v3020_v30 = vsub.f32 1.0, %v2956_v19 }
 0x307   :  { %8163 = vst [vmem:[#allocation21_spill] sm:$0xff] %v6723_v13  ;;  %v2259_v55 = vmul.f32 %v6700_v57, %v2195_v29  ;;  %vm1745_vm6 = vcmp.ge.f32.partialorder %v6649_v16, 0.0  ;;  %v1942_v5 = vmul.f32 0.3275911, %v1878_v9  ;;  %v2959_v42 = vmul.f32 %v4331_v39, %v2639_v38 }
 0x308   :  { %v2637_v8 = vmul.f32 %v6636_v52, %v2573_v49  ;;  %v2578_v21 = vadd.f32 0.2548296, %v2514_v56  ;;  %v2384_v54 = vmul.f32 %v6688_v6, %v2320_v44  ;;  %4344 = vpow2.f32 %v2870_v59 }
 0x309   :  { %v6731_v20 = vpop.eup %4338  ;;  %v2323_v1 = vadd.f32 1.4214138, %v2259_v55  ;;  %v2006_v14 = vadd.f32 1.0, %v1942_v5  ;;  %v6733_v51 = vmul.f32 0.70710677, %v1474_v11  ;;  %v6736_v19 = vsel %vm1745_vm6, 1.0, %v8113_v46 }
 0x30a   :  { %v2448_v17 = vadd.f32 -0.28449672, %v2384_v54  ;;  %v2129_v16 = vmul.f32 1.0614054, %v6731_v20  ;;  %v2769_v39 = vmul.f32 %v2705_v18, %v6663_v24  ;;  %v4341_v38 = vpop.eup %4340  ;;  %v3084_v52 = vmul.f32 %v3020_v30, %v6569_v61  ;;  %v8164_v18 = vld [vmem:[#allocation8_spill] sm:$0xff] }
 0x30b   :  { %v2642_v49 = vmul.f32 %v6657_v25, %v2578_v21  ;;  %v2387_v37 = vmul.f32 %v6700_v57, %v2323_v1  ;;  %4346 = vrcp.f32 %v2006_v14  ;;  %v3023_v29 = vsub.f32 1.0, %v2959_v42 }
 0x30c   :  { %v2957_v59 = vmul.f32 %v4335_v40, %v2637_v8  ;;  %v2512_v62 = vmul.f32 %v6688_v6, %v2448_v17  ;;  %v2193_v56 = vadd.f32 -1.4531521, %v2129_v16  ;;  %v6745_v5 = vmul.f32 0.5, %v6678_v47 }
 0x30d   :  { %v4343_v44 = vpop.eup %4342  ;;  %v2451_v55 = vadd.f32 -0.28449672, %v2387_v37  ;;  %v1876_v24 = vand.u32 2147483647, %v6733_v51  ;;  %v6750_v61 = vadd.f32 %v6718_v23, %v8164_v18  ;;  %v2866_v21 = vmul.f32 1.442695, %v2769_v39 }
 0x30e   :  { %v2576_v25 = vadd.f32 0.2548296, %v2512_v62  ;;  %v2257_v30 = vmul.f32 %v6731_v20, %v2193_v56  ;;  %v2710_v42 = vsub.f32 0.0, %v1878_v9  ;;  %v2962_v40 = vmul.f32 %v4341_v38, %v2642_v49  ;;  %v8165_v49 = vld [vmem:[#allocation9_spill] sm:$0xff] }
 0x30f   :  { %v2515_v8 = vmul.f32 %v6700_v57, %v2451_v55  ;;  %v6754_v54 = vmul.f32 0.5, %v1474_v11  ;;  %v1940_v1 = vmul.f32 0.3275911, %v1876_v24  ;;  %v3148_v14 = vadd.f32 1.0, %v3084_v52 }
 0x310   :  { %v3087_v47 = vmul.f32 %v3023_v29, %v6605_v43  ;;  %v3021_v17 = vsub.f32 1.0, %v2957_v59  ;;  %v2321_v16 = vadd.f32 1.4214138, %v2257_v30  ;;  %v2640_v37 = vmul.f32 %v6688_v6, %v2576_v25 }
 0x311   :  { %v2579_v18 = vadd.f32 0.2548296, %v2515_v8  ;;  %v2004_v13 = vadd.f32 1.0, %v1940_v1  ;;  %v6759_v62 = vmul.f32 0.70710677, %v6750_v61  ;;  %4348 = vpow2.f32 %v2866_v21  ;;  %v8166_v1 = vld [vmem:[#allocation27_spill] sm:$0xff] }
 0x312   :  { %v2385_v39 = vmul.f32 %v6731_v20, %v2321_v16  ;;  %v2774_v38 = vmul.f32 %v2710_v42, %v1878_v9  ;;  %v6764_v11 = vadd.f32 %v6718_v23, %v8165_v49  ;;  %v4345_v52 = vpop.eup %4344  ;;  %v3026_v56 = vsub.f32 1.0, %v2962_v40 }
 0x313   :  { %vm1750_vm7 = vcmp.ge.f32.partialorder %v6698_v10, 0.0  ;;  %4350 = vrcp.f32 %v2004_v13  ;;  %v2708_v43 = vsub.f32 0.0, %v1876_v24  ;;  %v6768_v6 = vmul.f32 %v3148_v14, %v6564_v26  ;;  %v8167_v14 = vld [vmem:[#allocation11_spill] sm:$0xff] }
 0x314   :  { %v3085_v29 = vmul.f32 %v3021_v17, %v6619_v58  ;;  %v2643_v59 = vmul.f32 %v6700_v57, %v2579_v18  ;;  %v2449_v55 = vadd.f32 -0.28449672, %v2385_v39  ;;  %v3151_v9 = vadd.f32 1.0, %v3087_v47 }
 0x315   :  { %v6772_v25 = vpop.eup %4346  ;;  %v2960_v30 = vmul.f32 %v4343_v44, %v2640_v37  ;;  %vm1748_vm8 = vcmp.ge.f32.partialorder %v6733_v51, 0.0  ;;  %v1879_v21 = vand.u32 2147483647, %v6759_v62  ;;  %v2876_v40 = vmul.f32 1.442695, %v2774_v38 }
 0x316   :  { %v2513_v42 = vmul.f32 %v6731_v20, %v2449_v55  ;;  %v2134_v13 = vmul.f32 1.0614054, %v6772_v25  ;;  %v6779_v26 = vmul.f32 0.70710677, %v6764_v11  ;;  %v3090_v58 = vmul.f32 %v3026_v56, %v6643_v32 }
 0x317   :  { %v2772_v57 = vmul.f32 %v2708_v43, %v1876_v24  ;;  %v1943_v8 = vmul.f32 0.3275911, %v1879_v21  ;;  %v3256_v47 = vpack.c.bf16 %v8167_v14, %v8166_v1  ;;  %v3149_v44 = vadd.f32 1.0, %v3085_v29  ;;  %v8169_v43 = vld [vmem:[#allocation25_spill] sm:$0xff] }
 0x318   :  { %v2963_v17 = vmul.f32 %v4345_v52, %v2643_v59  ;;  %v6787_v16 = vsel %vm1750_vm7, 1.0, %v8113_v46  ;;  %v2198_v37 = vadd.f32 -1.4531521, %v2134_v13  ;;  %v6790_v18 = vmul.f32 %v3151_v9, %v6575_v12  ;;  %v8170_v12 = vld [vmem:[#allocation17_spill] sm:$0xff] }
 0x319   :  { %v3024_v39 = vsub.f32 1.0, %v2960_v30  ;;  %v2577_v38 = vadd.f32 0.2548296, %v2513_v42  ;;  %v2007_v49 = vadd.f32 1.0, %v1943_v8  ;;  %4001 = vmatprep.mubr.bf16.mxu1 %v3256_v47  ;;  %4352 = vpow2.f32 %v2876_v40 }
 0x31a   :  { %8168 = vst [vmem:[#allocation2_spill] sm:$0xff] %v6790_v18  ;;  %v2262_v32 = vmul.f32 %v6772_v25, %v2198_v37  ;;  %v6796_v24 = vsel %vm1748_vm8, 1.0, %v8113_v46  ;;  %v1877_v10 = vand.u32 2147483647, %v6779_v26  ;;  %v3154_v52 = vadd.f32 1.0, %v3090_v58  ;;  %v8172_v58 = vld [vmem:[#allocation22_spill] sm:$0xff] }
 0x31b   :  { %v2872_v56 = vmul.f32 1.442695, %v2772_v57  ;;  %4354 = vrcp.f32 %v2007_v49  ;;  %v3257_v29 = vpack.c.bf16 %v8170_v12, %v8169_v43  ;;  %v4349_v59 = vpop.eup %4348  ;;  %v6802_v55 = vmul.f32 %v3149_v44, %v6593_v33 }
 0x31c   :  { %v3027_v9 = vsub.f32 1.0, %v2963_v17  ;;  %v2326_v30 = vadd.f32 1.4214138, %v2262_v32  ;;  %v1941_v42 = vmul.f32 0.3275911, %v1877_v10  ;;  %v3088_v51 = vmul.f32 %v3024_v39, %v6685_v50 }
 0x31d   :  { %8171 = vst [vmem:[#allocation3_spill] sm:$0xff] %v6802_v55  ;;  %v6804_v13 = vpop.eup %4350  ;;  %v2641_v40 = vmul.f32 %v6731_v20, %v2577_v38  ;;  %vm1751_vm9 = vcmp.ge.f32.partialorder %v6759_v62, 0.0  ;;  %4002 = vmatmul.mubr.bf16.gmra.mrb[12].mxu1 %v3257_v29  ;;  %v1498_v57 = vadd.f32 %v6718_v23, %v8172_v58  ;;  %v2711_v1 = vsub.f32 0.0, %v1879_v21  ;;  %v8174_v20 = vld [vmem:[#allocation23_spill] sm:$0xff] }
 0x31e   :  { %v2390_v8 = vmul.f32 %v6772_v25, %v2326_v30  ;;  %v2132_v33 = vmul.f32 1.0614054, %v6804_v13  ;;  %v2005_v14 = vadd.f32 1.0, %v1941_v42  ;;  %v6814_v47 = vmul.f32 %v3154_v52, %v6622_v4  ;;  %v8175_v42 = vld [vmem:[#allocation24_spill] sm:$0xff] }
 0x31f   :  { %v6817_v44 = vmul.f32 0.5, %v6750_v61  ;;  %v6819_v50 = vmul.f32 0.70710677, %v1498_v57  ;;  %v6823_v17 = vadd.f32 %v6718_v23, %v8174_v20  ;;  %v3091_v37 = vmul.f32 %v3027_v9, %v6706_v27 }
 0x320   :  { %8173 = vst [vmem:[#allocation14_spill] sm:$0xff] %v6814_v47  ;;  %v2454_v39 = vadd.f32 -0.28449672, %v2390_v8  ;;  %v2196_v38 = vadd.f32 -1.4531521, %v2132_v33  ;;  %4356 = vrcp.f32 %v2005_v14  ;;  %v2961_v49 = vmul.f32 %v4349_v59, %v2641_v40  ;;  %v8178_v47 = vld [vmem:[#allocation26_spill] sm:$0xff] }
 0x321   :  { %4358 = vpow2.f32 %v2872_v56  ;;  %v6829_v4 = vsel %vm1751_vm9, 1.0, %v8113_v46  ;;  %v1882_v61 = vand.u32 2147483647, %v6819_v50  ;;  %v3152_v32 = vadd.f32 1.0, %v3088_v51 }
 0x322   :  { %v2260_v52 = vmul.f32 %v6804_v13, %v2196_v38  ;;  %v2775_v43 = vmul.f32 %v2711_v1, %v1879_v21  ;;  %vm1749_vm10 = vcmp.ge.f32.partialorder %v6779_v26, 0.0  ;;  %v2518_v27 = vmul.f32 %v6772_v25, %v2454_v39 }
 0x323   :  { %v2709_v12 = vsub.f32 0.0, %v1877_v10  ;;  %v1946_v29 = vmul.f32 0.3275911, %v1882_v61  ;;  %v6836_v59 = vmul.f32 0.70710677, %v6823_v17  ;;  %v4353_v56 = vpop.eup %4352  ;;  %v3155_v9 = vadd.f32 1.0, %v3091_v37 }
 0x324   :  { %v2324_v62 = vadd.f32 1.4214138, %v2260_v52  ;;  %v6839_v30 = vmul.f32 0.5, %v6764_v11  ;;  %v1501_v51 = vadd.f32 %v6718_v23, %v8175_v42  ;;  %v3025_v21 = vsub.f32 1.0, %v2961_v49 }
 0x325   :  { %v6843_v40 = vpop.eup %4354  ;;  %v6846_v26 = vsel %vm1749_vm10, 1.0, %v8113_v46  ;;  %v2010_v58 = vadd.f32 1.0, %v1946_v29  ;;  %v1880_v8 = vand.u32 2147483647, %v6836_v59  ;;  %v6850_v33 = vmul.f32 %v3152_v32, %v6653_v2 }
 0x326   :  { %v2388_v1 = vmul.f32 %v6804_v13, %v2324_v62  ;;  %v2135_v11 = vmul.f32 1.0614054, %v6843_v40  ;;  %v2878_v14 = vmul.f32 1.442695, %v2775_v43  ;;  %v2582_v20 = vadd.f32 0.2548296, %v2518_v27 }
 0x327   :  { %8176 = vst [vmem:[#allocation19_spill] sm:$0xff] %v6850_v33  ;;  %v2773_v37 = vmul.f32 %v2709_v12, %v1877_v10  ;;  %4360 = vrcp.f32 %v2010_v58  ;;  %v1944_v39 = vmul.f32 0.3275911, %v1880_v8  ;;  %v6855_v38 = vmul.f32 %v3155_v9, %v6655_v36 }
 0x328   :  { %v2452_v49 = vadd.f32 -0.28449672, %v2388_v1  ;;  %v2199_v52 = vadd.f32 -1.4531521, %v2135_v11  ;;  %v6857_v29 = vmul.f32 0.70710677, %v1501_v51  ;;  %v3089_v42 = vmul.f32 %v3025_v21, %v6736_v19 }
 0x329   :  { %8177 = vst [vmem:[#allocation16_spill] sm:$0xff] %v6855_v38  ;;  %v2714_v2 = vsub.f32 0.0, %v1882_v61  ;;  %v2008_v32 = vadd.f32 1.0, %v1944_v39  ;;  %v6862_v62 = vadd.f32 %v6718_v23, %v8178_v47  ;;  %4362 = vpow2.f32 %v2878_v14 }
 0x32a   :  { %v6864_v43 = vpop.eup %4356  ;;  %v2516_v10 = vmul.f32 %v6804_v13, %v2452_v49  ;;  %v2263_v27 = vmul.f32 %v6843_v40, %v2199_v52  ;;  %v6868_v36 = vmul.f32 0.5, %v1498_v57  ;;  %v2874_v58 = vmul.f32 1.442695, %v2773_v37 }
 0x32b   :  { %v4359_v12 = vpop.eup %4358  ;;  %v2133_v9 = vmul.f32 1.0614054, %v6864_v43  ;;  %vm1754_vm11 = vcmp.ge.f32.partialorder %v6819_v50, 0.0  ;;  %4364 = vrcp.f32 %v2008_v32  ;;  %v2646_v19 = vmul.f32 %v6772_v25, %v2582_v20 }
 0x32c   :  { %v2327_v47 = vadd.f32 1.4214138, %v2263_v27  ;;  %v2712_v21 = vsub.f32 0.0, %v1880_v8  ;;  %v1883_v1 = vand.u32 2147483647, %v6857_v29  ;;  %v3153_v11 = vadd.f32 1.0, %v3089_v42 }
 0x32d   :  { %v2197_v39 = vadd.f32 -1.4531521, %v2133_v9  ;;  %v2778_v49 = vmul.f32 %v2714_v2, %v1882_v61  ;;  %v6875_v14 = vmul.f32 0.70710677, %v6862_v62  ;;  %v2580_v57 = vadd.f32 0.2548296, %v2516_v10 }
 0x32e   :  { %v2391_v52 = vmul.f32 %v6843_v40, %v2327_v47  ;;  %v6879_v37 = vmul.f32 0.5, %v6823_v17  ;;  %v1947_v38 = vmul.f32 0.3275911, %v1883_v1  ;;  %4366 = vpow2.f32 %v2874_v58 }
 0x32f   :  { %v2261_v32 = vmul.f32 %v6864_v43, %v2197_v39  ;;  %v6885_v25 = vsel %vm1754_vm11, 1.0, %v8113_v46  ;;  %v1881_v61 = vand.u32 2147483647, %v6875_v14  ;;  %v2966_v20 = vmul.f32 %v4353_v56, %v2646_v19 }
 0x330   :  { %v2455_v42 = vadd.f32 -0.28449672, %v2391_v52  ;;  %v2776_v2 = vmul.f32 %v2712_v21, %v1880_v8  ;;  %v2011_v10 = vadd.f32 1.0, %v1947_v38  ;;  %v6891_v17 = vmul.f32 %v3153_v11, %v6710_v22 }
 0x331   :  { %v6888_v27 = vpop.eup %4360  ;;  %v2325_v9 = vadd.f32 1.4214138, %v2261_v32  ;;  %v2884_v47 = vmul.f32 1.442695, %v2778_v49  ;;  %v1945_v39 = vmul.f32 0.3275911, %v1881_v61  ;;  %v2644_v58 = vmul.f32 %v6804_v13, %v2580_v57 }
 0x332   :  { %8179 = vst [vmem:[#allocation12_spill] sm:$0xff] %v6891_v17  ;;  %v2519_v50 = vmul.f32 %v6843_v40, %v2455_v42  ;;  %v2138_v33 = vmul.f32 1.0614054, %v6888_v27  ;;  %4368 = vrcp.f32 %v2011_v10  ;;  %vm1752_vm12 = vcmp.ge.f32.partialorder %v6836_v59, 0.0  ;;  %v8180_v32 = vld [vmem:[#allocation15_spill] sm:$0xff] }
 0x333   :  { %v2389_v56 = vmul.f32 %v6864_v43, %v2325_v9  ;;  %v6898_v8 = vmul.f32 0.5, %v1501_v51  ;;  %v2009_v38 = vadd.f32 1.0, %v1945_v39  ;;  %v4363_v19 = vpop.eup %4362  ;;  %v3030_v22 = vsub.f32 1.0, %v2966_v20 }
 0x334   :  { %v2202_v21 = vadd.f32 -1.4531521, %v2138_v33  ;;  %v2880_v11 = vmul.f32 1.442695, %v2776_v2  ;;  %vm1755_vm13 = vcmp.ge.f32.partialorder %v6857_v29, 0.0  ;;  %v2715_v52 = vsub.f32 0.0, %v1883_v1 }
 0x335   :  { %v6901_v49 = vpop.eup %4364  ;;  %v2583_v13 = vadd.f32 0.2548296, %v2519_v50  ;;  %v2453_v57 = vadd.f32 -0.28449672, %v2389_v56  ;;  %v6905_v42 = vadd.f32 %v6718_v23, %v8180_v32  ;;  %v2964_v10 = vmul.f32 %v4359_v12, %v2644_v58 }
 0x336   :  { %v2266_v51 = vmul.f32 %v6888_v27, %v2202_v21  ;;  %4370 = vpow2.f32 %v2884_v47  ;;  %v2136_v9 = vmul.f32 1.0614054, %v6901_v49  ;;  %v6913_v20 = vsel %vm1752_vm12, 1.0, %v8113_v46 }
 0x337   :  { %v2517_v33 = vmul.f32 %v6864_v43, %v2453_v57  ;;  %4372 = vrcp.f32 %v2009_v38  ;;  %v2713_v2 = vsub.f32 0.0, %v1881_v61  ;;  %v3094_v39 = vmul.f32 %v3030_v22, %v6787_v16  ;;  %v8181_v22 = vld [vmem:[#allocation28_spill] sm:$0xff] }
 0x338   :  { %v2330_v50 = vadd.f32 1.4214138, %v2266_v51  ;;  %v2200_v56 = vadd.f32 -1.4531521, %v2136_v9  ;;  %v6919_v12 = vsel %vm1755_vm13, 1.0, %v8113_v46  ;;  %v4367_v47 = vpop.eup %4366  ;;  %v2647_v58 = vmul.f32 %v6843_v40, %v2583_v13 }
 0x339   :  { %4374 = vpow2.f32 %v2880_v11  ;;  %v2779_v21 = vmul.f32 %v2715_v52, %v1883_v1  ;;  %v6923_v59 = vmul.f32 0.70710677, %v6905_v42  ;;  %v3028_v57 = vsub.f32 1.0, %v2964_v10  ;;  %v6935_v1 = vpop.f32.mrb[56].mxu0 }
 0x33a   :  { %v2394_v38 = vmul.f32 %v6888_v27, %v2330_v50  ;;  %v2264_v16 = vmul.f32 %v6901_v49, %v2200_v56  ;;  %v6929_v32 = vadd.f32 %v6718_v23, %v8181_v22  ;;  %v2581_v29 = vadd.f32 0.2548296, %v2517_v33  ;;  %8182 = vst [vmem:[#allocation4_spill] sm:$0xff] %v6935_v1 }
 0x33b   :  { %v6932_v51 = vmul.f32 0.5, %v6862_v62  ;;  %v2777_v9 = vmul.f32 %v2713_v2, %v1881_v61  ;;  %v1886_v40 = vand.u32 2147483647, %v6923_v59  ;;  %v3158_v13 = vadd.f32 1.0, %v3094_v39 }
 0x33c   :  { %v6937_v11 = vpop.eup %4368  ;;  %v2458_v52 = vadd.f32 -0.28449672, %v2394_v38  ;;  %v2328_v10 = vadd.f32 1.4214138, %v2264_v16  ;;  %vm1753_vm14 = vcmp.ge.f32.partialorder %v6875_v14, 0.0  ;;  %v2967_v50 = vmul.f32 %v4363_v19, %v2647_v58 }
 0x33d   :  { %v2139_v56 = vmul.f32 1.0614054, %v6937_v11  ;;  %v2886_v22 = vmul.f32 1.442695, %v2779_v21  ;;  %v1950_v33 = vmul.f32 0.3275911, %v1886_v40  ;;  %v3092_v62 = vmul.f32 %v3028_v57, %v6796_v24 }
 0x33e   :  { %v2522_v61 = vmul.f32 %v6888_v27, %v2458_v52  ;;  %v2392_v2 = vmul.f32 %v6901_v49, %v2328_v10  ;;  %v6945_v1 = vmul.f32 0.70710677, %v6929_v32  ;;  %v2645_v39 = vmul.f32 %v6864_v43, %v2581_v29  ;;  %v6956_v57 = vpop.f32.mrb[57].mxu0  ;;  %v8185_v29 = vld [vmem:[#allocation10_spill] sm:$0xff] }
 0x33f   :  { %v2203_v38 = vadd.f32 -1.4531521, %v2139_v56  ;;  %v2882_v16 = vmul.f32 1.442695, %v2777_v9  ;;  %v2014_v17 = vadd.f32 1.0, %v1950_v33  ;;  %v6949_v19 = vmul.f32 %v3158_v13, %v6745_v5  ;;  %8184 = vst [vmem:[#allocation6_spill] sm:$0xff] %v6956_v57 }
 0x340   :  { %v4371_v18 = vpop.eup %4370  ;;  %v2586_v58 = vadd.f32 0.2548296, %v2522_v61  ;;  %v2456_v21 = vadd.f32 -0.28449672, %v2392_v2  ;;  %v6954_v24 = vsel %vm1753_vm14, 1.0, %v8113_v46  ;;  %v3031_v10 = vsub.f32 1.0, %v2967_v50 }
 0x341   :  { %8183 = vst [vmem:[#allocation5_spill] sm:$0xff] %v6949_v19  ;;  %v6958_v52 = vpop.eup %4372  ;;  %v2267_v43 = vmul.f32 %v6937_v11, %v2203_v38  ;;  %4376 = vrcp.f32 %v2014_v17  ;;  %v6963_v9 = vadd.f32 %v6718_v23, %v8185_v29  ;;  %v1884_v14 = vand.u32 2147483647, %v6945_v1  ;;  %v6977_v55 = vpop.f32.mrb[58].mxu0 }
 0x342   :  { %v2520_v5 = vmul.f32 %v6901_v49, %v2456_v21  ;;  %4378 = vpow2.f32 %v2886_v22  ;;  %v2137_v13 = vmul.f32 1.0614054, %v6958_v52  ;;  %v3156_v33 = vadd.f32 1.0, %v3092_v62 }
 0x343   :  { %v4375_v56 = vpop.eup %4374  ;;  %v2965_v61 = vmul.f32 %v4367_v47, %v2645_v39  ;;  %v2331_v2 = vadd.f32 1.4214138, %v2267_v43  ;;  %v2718_v57 = vsub.f32 0.0, %v1886_v40  ;;  %v2650_v50 = vmul.f32 %v6888_v27, %v2586_v58 }
 0x344   :  { %v2201_v38 = vadd.f32 -1.4531521, %v2137_v13  ;;  %v6970_v17 = vmul.f32 0.5, %v6905_v42  ;;  %v1948_v29 = vmul.f32 0.3275911, %v1884_v14  ;;  %v3095_v19 = vmul.f32 %v3031_v10, %v6829_v4 }
 0x345   :  { %v2395_v22 = vmul.f32 %v6937_v11, %v2331_v2  ;;  %4380 = vpow2.f32 %v2882_v16  ;;  %v6975_v21 = vmul.f32 0.70710677, %v6963_v9  ;;  %v2584_v47 = vadd.f32 0.2548296, %v2520_v5 }
 0x346   :  { %v2265_v62 = vmul.f32 %v6958_v52, %v2201_v38  ;;  %vm1758_vm15 = vcmp.ge.f32.partialorder %v6923_v59, 0.0  ;;  %v2012_v27 = vadd.f32 1.0, %v1948_v29  ;;  %v3029_v39 = vsub.f32 1.0, %v2965_v61 }
 0x347   :  { %v2459_v42 = vadd.f32 -0.28449672, %v2395_v22  ;;  %v2782_v58 = vmul.f32 %v2718_v57, %v1886_v40  ;;  %v6982_v43 = vand.u32 2147483647, %v6975_v21  ;;  %v6985_v4 = vmul.f32 %v3156_v33, %v6754_v54  ;;  %v8187_v22 = vld [vmem:[#allocation13_spill] sm:$0xff] }
 0x348   :  { %v2970_v16 = vmul.f32 %v4371_v18, %v2650_v50  ;;  %v2329_v10 = vadd.f32 1.4214138, %v2265_v62  ;;  %4382 = vrcp.f32 %v2012_v27  ;;  %v3159_v13 = vadd.f32 1.0, %v3095_v19  ;;  %v6999_v18 = vpop.f32.mrb[59].mxu0 }
 0x349   :  { %v2523_v5 = vmul.f32 %v6937_v11, %v2459_v42  ;;  %v2716_v2 = vsub.f32 0.0, %v1884_v14  ;;  %v1951_v38 = vmul.f32 0.3275911, %v6982_v43  ;;  %v2648_v29 = vmul.f32 %v6901_v49, %v2584_v47  ;;  %8186 = vst [vmem:[#allocation7_spill] sm:$0xff] %v6999_v18 }
 0x34a   :  { %v2393_v61 = vmul.f32 %v6958_v52, %v2329_v10  ;;  %v6994_v40 = vsel %vm1758_vm15, 1.0, %v8113_v46  ;;  %v6997_v54 = vmul.f32 0.5, %v6929_v32  ;;  %v3093_v57 = vmul.f32 %v3029_v39, %v6846_v26  ;;  %v7013_v26 = vpop.f32.mrb[60].mxu0 }
 0x34b   :  { %v7001_v19 = vpop.eup %4376  ;;  %v2892_v33 = vmul.f32 1.442695, %v2782_v58  ;;  %v2015_v50 = vadd.f32 1.0, %v1951_v38  ;;  %v7006_v49 = vadd.f32 %v6718_v23, %v8187_v22  ;;  %v3034_v62 = vsub.f32 1.0, %v2970_v16 }
 0x34c   :  { %v4379_v47 = vpop.eup %4378  ;;  %v2457_v59 = vadd.f32 -0.28449672, %v2393_v61  ;;  %v2142_v27 = vmul.f32 1.0614054, %v7001_v19  ;;  %vm1756_vm1 = vcmp.ge.f32.partialorder %v6945_v1, 0.0  ;;  %v7011_v32 = vmul.f32 %v3159_v13, %v6817_v44  ;;  %v8188_v1 = vld [vmem:[#allocation20_spill] sm:$0xff] }
 0x34d   :  { %v2587_v42 = vadd.f32 0.2548296, %v2523_v5  ;;  %v2780_v10 = vmul.f32 %v2716_v2, %v1884_v14  ;;  %4384 = vrcp.f32 %v2015_v50  ;;  %v2968_v39 = vmul.f32 %v4375_v56, %v2648_v29  ;;  %v8189_v13 = vld [vmem:[#allocation18_spill] sm:$0xff] }
 0x34e   :  { %v2521_v58 = vmul.f32 %v6958_v52, %v2457_v59  ;;  %v2206_v38 = vadd.f32 -1.4531521, %v2142_v27  ;;  %v7017_v22 = vmul.f32 0.70710677, %v7006_v49  ;;  %v3157_v61 = vadd.f32 1.0, %v3093_v57 }
 0x34f   :  { %v4381_v16 = vpop.eup %4380  ;;  %v7020_v18 = vsel %vm1756_vm1, 1.0, %v8113_v46  ;;  %v3258_v44 = vpack.c.bf16 %v6519_v63, %v8188_v1  ;;  %v3259_v14 = vpack.c.bf16 %v6508_v31, %v8189_v13  ;;  %v3098_v5 = vmul.f32 %v3034_v62, %v6885_v25 }
 0x350   :  { %v2585_v56 = vadd.f32 0.2548296, %v2521_v58  ;;  %v2270_v2 = vmul.f32 %v7001_v19, %v2206_v38  ;;  %4386 = vpow2.f32 %v2892_v33  ;;  %v2651_v29 = vmul.f32 %v6937_v11, %v2587_v42 }
 0x351   :  { %v7030_v50 = vmul.f32 0.5, %v6963_v9  ;;  %vm1759_vm2 = vcmp.ge.f32.partialorder %v6975_v21, 0.0  ;;  %v7034_v57 = vand.u32 2147483647, %v7017_v22  ;;  %4005 = vmatprep.mubr.bf16.mxu1 %v3258_v44  ;;  %v3032_v31 = vsub.f32 1.0, %v2968_v39  ;;  %v7067_v21 = vpop.f32.mrb[61].mxu0 }
 0x352   :  { %v7036_v63 = vpop.eup %4382  ;;  %v2334_v59 = vadd.f32 1.4214138, %v2270_v2  ;;  %v2888_v25 = vmul.f32 1.442695, %v2780_v10  ;;  %4006 = vmatmul.mubr.bf16.gmra.mrb[16].mxu1 %v3259_v14  ;;  %v7040_v33 = vadd.f32 %v6718_v23, %v6499_v7  ;;  %v7043_v11 = vmul.f32 %v3157_v61, %v6839_v30 }
 0x353   :  { %v2649_v9 = vmul.f32 %v6958_v52, %v2585_v56  ;;  %v2140_v62 = vmul.f32 1.0614054, %v7036_v63  ;;  %v1949_v27 = vmul.f32 0.3275911, %v7034_v57  ;;  %v3162_v42 = vadd.f32 1.0, %v3098_v5 }
 0x354   :  { %v2398_v58 = vmul.f32 %v7001_v19, %v2334_v59  ;;  %v2719_v39 = vsub.f32 0.0, %v6982_v43  ;;  %v7051_v10 = vmul.f32 0.70710677, %v7040_v33  ;;  %v2971_v38 = vmul.f32 %v4379_v47, %v2651_v29 }
 0x355   :  { %v2204_v7 = vadd.f32 -1.4531521, %v2140_v62  ;;  %v7056_v30 = vsel %vm1759_vm2, 1.0, %v8113_v46  ;;  %v2013_v52 = vadd.f32 1.0, %v1949_v27  ;;  %v3096_v61 = vmul.f32 %v3032_v31, %v6913_v20  ;;  %v7075_v31 = vpop.f32.mrb[62].mxu0 }
 0x356   :  { %v2462_v1 = vadd.f32 -0.28449672, %v2398_v58  ;;  %4388 = vpow2.f32 %v2888_v25  ;;  %v1890_v44 = vand.u32 2147483647, %v7051_v10  ;;  %v2969_v14 = vmul.f32 %v4381_v16, %v2649_v9  ;;  %8190 = vst [vmem:[#allocation8_spill] sm:$0xff] %v7075_v31 }
 0x357   :  { %v7060_v13 = vpop.eup %4384  ;;  %v2268_v5 = vmul.f32 %v7036_v63, %v2204_v7  ;;  %4390 = vrcp.f32 %v2013_v52  ;;  %v7065_v47 = vadd.f32 %v6718_v23, %v6505_v0  ;;  %v7070_v56 = vmul.f32 %v3162_v42, %v6868_v36 }
 0x358   :  { %v2526_v20 = vmul.f32 %v7001_v19, %v2462_v1  ;;  %v2143_v2 = vmul.f32 1.0614054, %v7060_v13  ;;  %v2783_v29 = vmul.f32 %v2719_v39, %v6982_v43  ;;  %v3035_v16 = vsub.f32 1.0, %v2971_v38 }
 0x359   :  { %v2332_v59 = vadd.f32 1.4214138, %v2268_v5  ;;  %v7078_v25 = vmul.f32 0.5, %v7006_v49  ;;  %v1954_v0 = vmul.f32 0.3275911, %v1890_v44  ;;  %v3160_v62 = vadd.f32 1.0, %v3096_v61 }
 0x35a   :  { %v4387_v9 = vpop.eup %4386  ;;  %v2590_v27 = vadd.f32 0.2548296, %v2526_v20  ;;  %v2207_v58 = vadd.f32 -1.4531521, %v2143_v2  ;;  %v2717_v36 = vsub.f32 0.0, %v7034_v57  ;;  %v3033_v42 = vsub.f32 1.0, %v2969_v14 }
 0x35b   :  { %v2396_v7 = vmul.f32 %v7036_v63, %v2332_v59  ;;  %v2018_v52 = vadd.f32 1.0, %v1954_v0  ;;  %v1696_v43 = vmul.f32 0.70710677, %v7065_v47  ;;  %v2894_v38 = vmul.f32 1.442695, %v2783_v29  ;;  %v7089_v14 = vpop.f32.mrb[63].mxu0 }
 0x35c   :  { %v2271_v39 = vmul.f32 %v7060_v13, %v2207_v58  ;;  %vm1757_vm3 = vcmp.ge.f32.partialorder %v7017_v22, 0.0  ;;  %v1533_v49 = vadd.f32 %v6718_v23, %v6516_v53  ;;  %v3099_v61 = vmul.f32 %v3035_v16, %v6919_v12  ;;  %8191 = vst [vmem:[#allocation9_spill] sm:$0xff] %v7089_v14 }
 0x35d   :  { %v2654_v1 = vmul.f32 %v7001_v19, %v2590_v27  ;;  %v2460_v5 = vadd.f32 -0.28449672, %v2396_v7  ;;  %4392 = vrcp.f32 %v2018_v52  ;;  %v7092_v20 = vmul.f32 %v3160_v62, %v6879_v37 }
 0x35e   :  { %v2335_v2 = vadd.f32 1.4214138, %v2271_v39  ;;  %v2722_v59 = vsub.f32 0.0, %v1890_v44  ;;  %v1888_v0 = vand.u32 2147483647, %v1696_v43  ;;  %v3097_v29 = vmul.f32 %v3033_v42, %v6954_v24 }
 0x35f   :  { %v2524_v58 = vmul.f32 %v7036_v63, %v2460_v5  ;;  %v2781_v53 = vmul.f32 %v2717_v36, %v7034_v57  ;;  %v7097_v31 = vmul.f32 0.70710677, %v1533_v49  ;;  %4394 = vpow2.f32 %v2894_v38 }
 0x360   :  { %v4389_v12 = vpop.eup %4388  ;;  %v2399_v19 = vmul.f32 %v7060_v13, %v2335_v2  ;;  %v7103_v37 = vsel %vm1757_vm3, 1.0, %v8113_v46  ;;  %v1952_v16 = vmul.f32 0.3275911, %v1888_v0  ;;  %v3163_v27 = vadd.f32 1.0, %v3099_v61 }
 0x361   :  { %v7105_v62 = vpop.eup %4390  ;;  %v2974_v24 = vmul.f32 %v4387_v9, %v2654_v1  ;;  %vm1762_vm4 = vcmp.ge.f32.partialorder %v7051_v10, 0.0  ;;  %v1891_v57 = vand.u32 2147483647, %v7097_v31  ;;  %v2588_v36 = vadd.f32 0.2548296, %v2524_v58 }
 0x362   :  { %v2141_v42 = vmul.f32 1.0614054, %v7105_v62  ;;  %v2786_v7 = vmul.f32 %v2722_v59, %v1890_v44  ;;  %v2016_v52 = vadd.f32 1.0, %v1952_v16  ;;  %v3161_v39 = vadd.f32 1.0, %v3097_v29 }
 0x363   :  { %v2890_v38 = vmul.f32 1.442695, %v2781_v53  ;;  %v1955_v5 = vmul.f32 0.3275911, %v1891_v57  ;;  %v7112_v22 = vadd.f32 %v6718_v23, %v6535_v34  ;;  %v2463_v2 = vadd.f32 -0.28449672, %v2399_v19 }
 0x364   :  { %v2205_v14 = vadd.f32 -1.4531521, %v2141_v42  ;;  %v7115_v9 = vmul.f32 0.5, %v7040_v33  ;;  %4396 = vrcp.f32 %v2016_v52  ;;  %v7118_v61 = vmul.f32 %v3163_v27, %v6898_v8 }
 0x365   :  { %v3038_v1 = vsub.f32 1.0, %v2974_v24  ;;  %v7123_v44 = vsel %vm1762_vm4, 1.0, %v8113_v46  ;;  %v2019_v59 = vadd.f32 1.0, %v1955_v5  ;;  %v2652_v29 = vmul.f32 %v7036_v63, %v2588_v36 }
 0x366   :  { %v2269_v34 = vmul.f32 %v7105_v62, %v2205_v14  ;;  %v2900_v58 = vmul.f32 1.442695, %v2786_v7  ;;  %vm1760_vm5 = vcmp.ge.f32.partialorder %v1696_v43, 0.0  ;;  %v7130_v33 = vmul.f32 %v3161_v39, %v6932_v51 }
 0x367   :  { %v7127_v53 = vpop.eup %4392  ;;  %4398 = vpow2.f32 %v2890_v38  ;;  %v7133_v8 = vmul.f32 0.5, %v7065_v47  ;;  %v7136_v10 = vmul.f32 0.70710677, %v7112_v22  ;;  %v2527_v19 = vmul.f32 %v7060_v13, %v2463_v2 }
 0x368   :  { %v2333_v16 = vadd.f32 1.4214138, %v2269_v34  ;;  %v2146_v63 = vmul.f32 1.0614054, %v7127_v53  ;;  %4400 = vrcp.f32 %v2019_v59  ;;  %v3102_v43 = vmul.f32 %v3038_v1, %v6994_v40 }
 0x369   :  { %v7142_v14 = vsel %vm1760_vm5, 1.0, %v8113_v46  ;;  %v2720_v51 = vsub.f32 0.0, %v1888_v0  ;;  %v7145_v27 = vand.u32 2147483647, %v7136_v10  ;;  %v4395_v47 = vpop.eup %4394  ;;  %v2972_v24 = vmul.f32 %v4389_v12, %v2652_v29 }
 0x36a   :  { %v2397_v36 = vmul.f32 %v7105_v62, %v2333_v16  ;;  %v2210_v42 = vadd.f32 -1.4531521, %v2146_v63  ;;  %4402 = vpow2.f32 %v2900_v58  ;;  %v7148_v7 = vmul.f32 0.5, %v1533_v49 }
 0x36b   :  { %vm1763_vm6 = vcmp.ge.f32.partialorder %v7097_v31, 0.0  ;;  %v2723_v52 = vsub.f32 0.0, %v1891_v57  ;;  %v1953_v40 = vmul.f32 0.3275911, %v7145_v27  ;;  %v2591_v39 = vadd.f32 0.2548296, %v2527_v19 }
 0x36c   :  { %v2461_v38 = vadd.f32 -0.28449672, %v2397_v36  ;;  %v2274_v5 = vmul.f32 %v7127_v53, %v2210_v42  ;;  %v3260_v2 = vpack.c.bf16 %v6692_v60, %v6591_v3  ;;  %v3166_v1 = vadd.f32 1.0, %v3102_v43 }
 0x36d   :  { %v2784_v12 = vmul.f32 %v2720_v51, %v1888_v0  ;;  %v2017_v59 = vadd.f32 1.0, %v1953_v40  ;;  %v7157_v29 = vadd.f32 %v6718_v23, %v6608_v48  ;;  %v3036_v34 = vsub.f32 1.0, %v2972_v24 }
 0x36e   :  { %v7159_v49 = vpop.eup %4396  ;;  %v2525_v58 = vmul.f32 %v7105_v62, %v2461_v38  ;;  %v2338_v16 = vadd.f32 1.4214138, %v2274_v5  ;;  %4009 = vmatprep.mubr.bf16.mxu1 %v3260_v2  ;;  %v3261_v19 = vpack.c.bf16 %v6613_v35, %v6560_v15  ;;  %v7168_v3 = vsel %vm1763_vm6, 1.0, %v8113_v46 }
 0x36f   :  { %v2144_v63 = vmul.f32 1.0614054, %v7159_v49  ;;  %v2787_v60 = vmul.f32 %v2723_v52, %v1891_v57  ;;  %4404 = vrcp.f32 %v2017_v59  ;;  %v2655_v48 = vmul.f32 %v7060_v13, %v2591_v39 }
 0x370   :  { %v2589_v0 = vadd.f32 0.2548296, %v2525_v58  ;;  %v2402_v43 = vmul.f32 %v7127_v53, %v2338_v16  ;;  %v7173_v51 = vmul.f32 0.70710677, %v7157_v29  ;;  %4010 = vmatmul.mubr.bf16.gmra.mrb[20].mxu1 %v3261_v19  ;;  %v7176_v15 = vmul.f32 %v3166_v1, %v6970_v17 }
 0x371   :  { %v4399_v24 = vpop.eup %4398  ;;  %v2208_v35 = vadd.f32 -1.4531521, %v2144_v63  ;;  %v2896_v36 = vmul.f32 1.442695, %v2784_v12  ;;  %v7180_v31 = vadd.f32 %v6718_v23, %v6634_v28  ;;  %v3100_v13 = vmul.f32 %v3036_v34, %v7020_v18 }
 0x372   :  { %v7182_v57 = vpop.eup %4400  ;;  %v2653_v42 = vmul.f32 %v7105_v62, %v2589_v0  ;;  %v2466_v52 = vadd.f32 -0.28449672, %v2402_v43  ;;  %v7187_v40 = vmul.f32 0.5, %v7112_v22  ;;  %v2902_v38 = vmul.f32 1.442695, %v2787_v60 }
 0x373   :  { %v2272_v39 = vmul.f32 %v7159_v49, %v2208_v35  ;;  %v2147_v17 = vmul.f32 1.0614054, %v7182_v57  ;;  %v1894_v5 = vand.u32 2147483647, %v7173_v51  ;;  %v2975_v28 = vmul.f32 %v4395_v47, %v2655_v48 }
 0x374   :  { %v4403_v2 = vpop.eup %4402  ;;  %v2530_v23 = vmul.f32 %v7127_v53, %v2466_v52  ;;  %v2721_v1 = vsub.f32 0.0, %v7145_v27  ;;  %v7195_v18 = vmul.f32 0.70710677, %v7180_v31  ;;  %4406 = vpow2.f32 %v2896_v36 }
 0x375   :  { %v2336_v62 = vadd.f32 1.4214138, %v2272_v39  ;;  %v2211_v22 = vadd.f32 -1.4531521, %v2147_v17  ;;  %v1958_v12 = vmul.f32 0.3275911, %v1894_v5  ;;  %v2973_v34 = vmul.f32 %v4399_v24, %v2653_v42 }
 0x376   :  { %v3164_v59 = vadd.f32 1.0, %v3100_v13  ;;  %v2594_v58 = vadd.f32 0.2548296, %v2530_v23  ;;  %vm1761_vm7 = vcmp.ge.f32.partialorder %v7136_v10, 0.0  ;;  %4408 = vpow2.f32 %v2902_v38 }
 0x377   :  { %v7198_v16 = vpop.f32.mrb[64].mxu0  ;;  %v2400_v47 = vmul.f32 %v7159_v49, %v2336_v62  ;;  %v2275_v19 = vmul.f32 %v7182_v57, %v2211_v22  ;;  %v2022_v63 = vadd.f32 1.0, %v1958_v12  ;;  %v3039_v48 = vsub.f32 1.0, %v2975_v28 }
 0x378   :  { %v7202_v60 = vpop.f32.mrb[65].mxu0  ;;  %v2658_v0 = vmul.f32 %v7127_v53, %v2594_v58  ;;  %v2785_v43 = vmul.f32 %v2721_v1, %v7145_v27  ;;  %v1892_v24 = vand.u32 2147483647, %v7195_v18  ;;  %v7212_v42 = vsel %vm1761_vm7, 1.0, %v8113_v46  ;;  %v7220_v27 = vld [vmem:[%s8007_s5] ss:$0 sm:$0xff] }
 0x379   :  { %v7207_v35 = vpop.f32.mrb[66].mxu0  ;;  %v7209_v10 = vpop.eup %4404  ;;  %v2464_v36 = vadd.f32 -0.28449672, %v2400_v47  ;;  %v2339_v13 = vadd.f32 1.4214138, %v2275_v19  ;;  %4410 = vrcp.f32 %v2022_v63  ;;  %v3037_v39 = vsub.f32 1.0, %v2973_v34 }
 0x37a   :  { %v7214_v52 = vpop.f32.mrb[67].mxu0  ;;  %v2978_v17 = vmul.f32 %v4403_v2, %v2658_v0  ;;  %v2145_v53 = vmul.f32 1.0614054, %v7209_v10  ;;  %v7224_v38 = vadd.f32 %v7220_v27, %v6645_v41  ;;  %v2726_v1 = vsub.f32 0.0, %v1894_v5 }
 0x37b   :  { %v2528_v28 = vmul.f32 %v7159_v49, %v2464_v36  ;;  %v2403_v23 = vmul.f32 %v7182_v57, %v2339_v13  ;;  %v1956_v62 = vmul.f32 0.3275911, %v1892_v24  ;;  %v7229_v22 = vmul.f32 %v3164_v59, %v6997_v54 }
 0x37c   :  { %v3103_v2 = vmul.f32 %v3039_v48, %v7056_v30  ;;  %v2209_v12 = vadd.f32 -1.4531521, %v2145_v53  ;;  %v2898_v34 = vmul.f32 1.442695, %v2785_v43  ;;  %v3042_v58 = vsub.f32 1.0, %v2978_v17 }
 0x37d   :  { %v2592_v47 = vadd.f32 0.2548296, %v2528_v28  ;;  %v2467_v19 = vadd.f32 -0.28449672, %v2403_v23  ;;  %v2020_v63 = vadd.f32 1.0, %v1956_v62  ;;  %v3101_v41 = vmul.f32 %v3037_v39, %v7103_v37 }
 0x37e   :  { %v2273_v0 = vmul.f32 %v7209_v10, %v2209_v12  ;;  %v7235_v36 = vmul.f32 0.70710677, %v7224_v38  ;;  %v7239_v13 = vadd.f32 %v7220_v27, %v6672_v45  ;;  %v4407_v54 = vpop.eup %4406  ;;  %v2790_v48 = vmul.f32 %v2726_v1, %v1894_v5 }
 0x37f   :  { %v2656_v30 = vmul.f32 %v7159_v49, %v2592_v47  ;;  %v2531_v59 = vmul.f32 %v7182_v57, %v2467_v19  ;;  %4412 = vrcp.f32 %v2020_v63  ;;  %v7244_v17 = vmul.f32 0.5, %v7157_v29  ;;  %v8192_v63 = vld [vmem:[#allocation3_spill] sm:$0xff] }
 0x380   :  { %v2337_v43 = vadd.f32 1.4214138, %v2273_v0  ;;  %v2724_v37 = vsub.f32 0.0, %v1892_v24  ;;  %v1895_v39 = vand.u32 2147483647, %v7235_v36  ;;  %v4409_v53 = vpop.eup %4408  ;;  %v3167_v28 = vadd.f32 1.0, %v3103_v2 }
 0x381   :  { %v3106_v23 = vmul.f32 %v3042_v58, %v7123_v44  ;;  %v2595_v45 = vadd.f32 0.2548296, %v2531_v59  ;;  %4414 = vpow2.f32 %v2898_v34  ;;  %v3165_v62 = vadd.f32 1.0, %v3101_v41 }
 0x382   :  { %v2976_v12 = vmul.f32 %v4407_v54, %v2656_v30  ;;  %v2401_v49 = vmul.f32 %v7209_v10, %v2337_v43  ;;  %v1959_v47 = vmul.f32 0.3275911, %v1895_v39  ;;  %v2908_v29 = vmul.f32 1.442695, %v2790_v48 }
 0x383   :  { %v7249_v5 = vpop.eup %4410  ;;  %v2659_v1 = vmul.f32 %v7182_v57, %v2595_v45  ;;  %v7253_v19 = vmul.f32 0.70710677, %v7239_v13  ;;  %v3262_v2 = vpack.c.bf16 %v8192_v63, %v6768_v6  ;;  %v2788_v34 = vmul.f32 %v2724_v37, %v1892_v24 }
 0x384   :  { %v2465_v0 = vadd.f32 -0.28449672, %v2401_v49  ;;  %v2150_v44 = vmul.f32 1.0614054, %v7249_v5  ;;  %v2023_v58 = vadd.f32 1.0, %v1959_v47  ;;  %v7259_v41 = vmul.f32 %v3167_v28, %v7030_v50  ;;  %v8194_v47 = vld [vmem:[#allocation2_spill] sm:$0xff] }
 0x385   :  { %v3170_v54 = vadd.f32 1.0, %v3106_v23  ;;  %v2979_v30 = vmul.f32 %v4409_v53, %v2659_v1  ;;  %v7262_v59 = vand.u32 2147483647, %v7253_v19  ;;  %4013 = vmatprep.mubr.bf16.mxu1 %v3262_v2  ;;  %v3040_v57 = vsub.f32 1.0, %v2976_v12 }
 0x386   :  { %v2529_v48 = vmul.f32 %v7209_v10, %v2465_v0  ;;  %vm1766_vm8 = vcmp.ge.f32.partialorder %v7173_v51, 0.0  ;;  %v2214_v6 = vadd.f32 -1.4531521, %v2150_v44  ;;  %4416 = vrcp.f32 %v2023_v58  ;;  %v8195_v58 = vld [vmem:[#allocation19_spill] sm:$0xff] }
 0x387   :  { %v7267_v43 = vmul.f32 %v3165_v62, %v7078_v25  ;;  %v3043_v24 = vsub.f32 1.0, %v2979_v30  ;;  %4418 = vpow2.f32 %v2908_v29  ;;  %v1957_v50 = vmul.f32 0.3275911, %v7262_v59  ;;  %v8193_v62 = vld [vmem:[#allocation21_spill] sm:$0xff]  ;;  %v8197_v30 = vld [vmem:[#allocation14_spill] sm:$0xff] }
 0x388   :  { %v2593_v37 = vadd.f32 0.2548296, %v2529_v48  ;;  %v2278_v53 = vmul.f32 %v7249_v5, %v2214_v6  ;;  %vm1764_vm9 = vcmp.ge.f32.partialorder %v7195_v18, 0.0  ;;  %v2904_v28 = vmul.f32 1.442695, %v2788_v34 }
 0x389   :  { %v2727_v23 = vsub.f32 0.0, %v1895_v39  ;;  %v7272_v45 = vpop.eup %4412  ;;  %v7275_v12 = vmul.f32 %v3170_v54, %v7115_v9  ;;  %v3107_v49 = vmul.f32 %v3043_v24, %v7168_v3  ;;  %v2021_v25 = vadd.f32 1.0, %v1957_v50  ;;  %v8196_v9 = vld [vmem:[#allocation12_spill] sm:$0xff] }
 0x38a   :  { %v3263_v1 = vpack.c.bf16 %v8194_v47, %v8193_v62  ;;  %v3104_v29 = vmul.f32 %v3040_v57, %v7142_v14  ;;  %v2657_v63 = vmul.f32 %v7209_v10, %v2593_v37  ;;  %v2342_v2 = vadd.f32 1.4214138, %v2278_v53  ;;  %v8198_v3 = vld [vmem:[#allocation16_spill] sm:$0xff]  ;;  %v8199_v37 = vld [vmem:[#allocation5_spill] sm:$0xff] }
 0x38b   :  { %v2148_v0 = vmul.f32 1.0614054, %v7272_v45  ;;  %v4415_v44 = vpop.eup %4414  ;;  %v3171_v34 = vadd.f32 1.0, %v3107_v49  ;;  %4420 = vrcp.f32 %v2021_v25  ;;  %v3264_v54 = vpack.c.bf16 %v8196_v9, %v8195_v58 }
 0x38c   :  { %4014 = vmatmul.mubr.bf16.gmra.mrb[24].mxu1 %v3263_v1  ;;  %v3265_v48 = vpack.c.bf16 %v8198_v3, %v8197_v30  ;;  %v2977_v6 = vmul.f32 %v4415_v44, %v2657_v63  ;;  %v2406_v24 = vmul.f32 %v7249_v5, %v2342_v2  ;;  %v2791_v14 = vmul.f32 %v2727_v23, %v1895_v39  ;;  %v8200_v2 = vld [vmem:[#allocation4_spill] sm:$0xff] }
 0x38d   :  { %v2212_v50 = vadd.f32 -1.4531521, %v2148_v0  ;;  %v7289_v10 = vmul.f32 %v3171_v34, %v7148_v7  ;;  %4017 = vmatprep.mubr.bf16.mxu1 %v3264_v54  ;;  %v3266_v57 = vpack.c.bf16 %v7043_v11, %v6985_v4  ;;  %v3267_v53 = vpack.c.bf16 %v7011_v32, %v8199_v37 }
 0x38e   :  { %v3268_v49 = vpack.c.bf16 %v7130_v33, %v7092_v20  ;;  %v3168_v25 = vadd.f32 1.0, %v3104_v29  ;;  %v3041_v62 = vsub.f32 1.0, %v2977_v6  ;;  %v2470_v47 = vadd.f32 -0.28449672, %v2406_v24  ;;  %v8201_v6 = vld [vmem:[#allocation6_spill] sm:$0xff] }
 0x38f   :  { %v2276_v1 = vmul.f32 %v7272_v45, %v2212_v50  ;;  %v3269_v39 = vpack.c.bf16 %v7118_v61, %v7070_v56  ;;  %v3270_v7 = vpack.c.bf16 %v7267_v43, %v7229_v22  ;;  %v3271_v4 = vpack.c.bf16 %v7259_v41, %v7176_v15 }
 0x390   :  { %v3273_v32 = vpack.c.bf16 %v7289_v10, %v7275_v12  ;;  %v7306_v11 = vpop.eup %4416  ;;  %v3105_v23 = vmul.f32 %v3041_v62, %v7212_v42  ;;  %v2534_v29 = vmul.f32 %v7249_v5, %v2470_v47  ;;  %v1562_v0 = vadd.f32 %v7220_v27, %v8200_v2  ;;  %v7497_v12 = vld [vmem:[%s8008_s7] ss:$0 sm:$0xff] }
 0x391   :  { %v2340_v63 = vadd.f32 1.4214138, %v2276_v1  ;;  %v4419_v44 = vpop.eup %4418  ;;  %v7315_v34 = vsel %vm1766_vm8, 1.0, %v8113_v46  ;;  %v7318_v58 = vmul.f32 0.5, %v7180_v31  ;;  %v2151_v9 = vmul.f32 1.0614054, %v7306_v11 }
 0x392   :  { %v2725_v54 = vsub.f32 0.0, %v7262_v59  ;;  %v3169_v42 = vadd.f32 1.0, %v3105_v23  ;;  %v2598_v30 = vadd.f32 0.2548296, %v2534_v29  ;;  %v7325_v24 = vadd.f32 %v7220_v27, %v8201_v6 }
 0x393   :  { %v2404_v3 = vmul.f32 %v7272_v45, %v2340_v63  ;;  %v7330_v51 = vsel %vm1764_vm9, 1.0, %v8113_v46  ;;  %4422 = vpow2.f32 %v2904_v28  ;;  %v2215_v31 = vadd.f32 -1.4531521, %v2151_v9 }
 0x394   :  { %4018 = vmatmul.mubr.bf16.gmra.mrb[28].mxu1 %v3265_v48  ;;  %v7332_v50 = vmul.f32 0.70710677, %v1562_v0  ;;  %v7335_v37 = vmul.f32 %v3168_v25, %v7133_v8  ;;  %v7338_v62 = vmul.f32 %v3169_v42, %v7187_v40  ;;  %v2910_v1 = vmul.f32 1.442695, %v2791_v14 }
 0x395   :  { %v2468_v47 = vadd.f32 -0.28449672, %v2404_v3  ;;  %4021 = vmatprep.mubr.bf16.mxu1 %v3266_v57  ;;  %v7340_v23 = vpop.eup %4420  ;;  %v2662_v18 = vmul.f32 %v7249_v5, %v2598_v30  ;;  %v2279_v29 = vmul.f32 %v7306_v11, %v2215_v31  ;;  %v2789_v28 = vmul.f32 %v2725_v54, %v7262_v59 }
 0x396   :  { %v7346_v48 = vand.u32 2147483647, %v7332_v50  ;;  %v2149_v25 = vmul.f32 1.0614054, %v7340_v23  ;;  %v3272_v40 = vpack.c.bf16 %v7338_v62, %v7335_v37  ;;  %v1704_v14 = vmul.f32 0.70710677, %v7325_v24 }
 0x397   :  { %v2532_v8 = vmul.f32 %v7272_v45, %v2468_v47  ;;  %v7354_v57 = vmul.f32 0.5, %v7224_v38  ;;  %v2343_v5 = vadd.f32 1.4214138, %v2279_v29  ;;  %v1565_v59 = vadd.f32 %v7220_v27, %v6977_v55  ;;  %v8202_v29 = vld [vmem:[#allocation7_spill] sm:$0xff] }
 0x398   :  { %v1962_v63 = vmul.f32 0.3275911, %v7346_v48  ;;  %vm1767_vm10 = vcmp.ge.f32.partialorder %v7235_v36, 0.0  ;;  %4424 = vpow2.f32 %v2910_v1  ;;  %v2213_v9 = vadd.f32 -1.4531521, %v2149_v25 }
 0x399   :  { %v2596_v2 = vadd.f32 0.2548296, %v2532_v8  ;;  %v2982_v54 = vmul.f32 %v4419_v44, %v2662_v18  ;;  %v2407_v42 = vmul.f32 %v7306_v11, %v2343_v5  ;;  %v2906_v30 = vmul.f32 1.442695, %v2789_v28 }
 0x39a   :  { %v2026_v3 = vadd.f32 1.0, %v1962_v63  ;;  %v7362_v6 = vmul.f32 0.5, %v7239_v13  ;;  %vm1765_vm11 = vcmp.ge.f32.partialorder %v7253_v19, 0.0  ;;  %v2277_v38 = vmul.f32 %v7340_v23, %v2213_v9 }
 0x39b   :  { %v1896_v31 = vand.u32 2147483647, %v1704_v14  ;;  %v2660_v55 = vmul.f32 %v7272_v45, %v2596_v2  ;;  %v2471_v47 = vadd.f32 -0.28449672, %v2407_v42  ;;  %v7367_v1 = vmul.f32 0.70710677, %v1565_v59 }
 0x39c   :  { %4022 = vmatmul.mubr.bf16.gmra.mrb[32].mxu1 %v3267_v53  ;;  %4426 = vrcp.f32 %v2026_v3  ;;  %v1831_v44 = vsel %vm1767_vm10, 1.0, %v8113_v46  ;;  %v2341_v18 = vadd.f32 1.4214138, %v2277_v38  ;;  %v7377_v28 = vadd.f32 %v7220_v27, %v8202_v29 }
 0x39d   :  { %4025 = vmatprep.mubr.bf16.mxu1 %v3268_v49  ;;  %v1960_v13 = vmul.f32 0.3275911, %v1896_v31  ;;  %v4423_v45 = vpop.eup %4422  ;;  %v3046_v8 = vsub.f32 1.0, %v2982_v54  ;;  %v2535_v53 = vmul.f32 %v7306_v11, %v2471_v47  ;;  %v7383_v25 = vsel %vm1765_vm11, 1.0, %v8113_v46 }
 0x39e   :  { %4428 = vpow2.f32 %v2906_v30  ;;  %v2405_v36 = vmul.f32 %v7340_v23, %v2341_v18  ;;  %v7386_v5 = vmul.f32 0.5, %v1562_v0  ;;  %vm1770_vm12 = vcmp.ge.f32.partialorder %v7332_v50, 0.0 }
 0x39f   :  { %v2024_v20 = vadd.f32 1.0, %v1960_v13  ;;  %v2980_v33 = vmul.f32 %v4423_v45, %v2660_v55  ;;  %v2599_v49 = vadd.f32 0.2548296, %v2535_v53  ;;  %v2730_v63 = vsub.f32 0.0, %v7346_v48 }
 0x3a0   :  { %v1899_v2 = vand.u32 2147483647, %v7367_v1  ;;  %v2469_v9 = vadd.f32 -0.28449672, %v2405_v36  ;;  %vm1768_vm13 = vcmp.ge.f32.partialorder %v1704_v14, 0.0  ;;  %v3110_v54 = vmul.f32 %v3046_v8, %v7315_v34 }
 0x3a1   :  { %4430 = vrcp.f32 %v2024_v20  ;;  %v7392_v19 = vmul.f32 0.70710677, %v7377_v28  ;;  %v2663_v0 = vmul.f32 %v7306_v11, %v2599_v49  ;;  %v2728_v42 = vsub.f32 0.0, %v1896_v31 }
 0x3a2   :  { %v1963_v30 = vmul.f32 0.3275911, %v1899_v2  ;;  %v4425_v3 = vpop.eup %4424  ;;  %v2533_v38 = vmul.f32 %v7340_v23, %v2469_v9  ;;  %v7398_v55 = vmul.f32 0.5, %v7325_v24  ;;  %v7400_v47 = vmul.f32 0.5, %v1565_v59 }
 0x3a3   :  { %v7403_v18 = vand.u32 2147483647, %v7392_v19  ;;  %v3044_v13 = vsub.f32 1.0, %v2980_v33  ;;  %v2983_v29 = vmul.f32 %v4425_v3, %v2663_v0  ;;  %v7411_v11 = vsel %vm1770_vm12, 1.0, %v8113_v46 }
 0x3a4   :  { %4026 = vmatmul.mubr.bf16.gmra.mrb[36].mxu1 %v3269_v39  ;;  %v2027_v34 = vadd.f32 1.0, %v1963_v30  ;;  %v2597_v45 = vadd.f32 0.2548296, %v2533_v38  ;;  %v2794_v24 = vmul.f32 %v2730_v63, %v7346_v48  ;;  %v7419_v59 = vsel %vm1768_vm13, 1.0, %v8113_v46 }
 0x3a5   :  { %4029 = vmatprep.mubr.bf16.mxu1 %v3270_v7  ;;  %v1961_v56 = vmul.f32 0.3275911, %v7403_v18  ;;  %v3174_v39 = vadd.f32 1.0, %v3110_v54  ;;  %v3047_v50 = vsub.f32 1.0, %v2983_v29  ;;  %v2792_v8 = vmul.f32 %v2728_v42, %v1896_v31 }
 0x3a6   :  { %v7422_v61 = vpop.eup %4426  ;;  %4432 = vrcp.f32 %v2027_v34  ;;  %v2661_v53 = vmul.f32 %v7340_v23, %v2597_v45  ;;  %v7428_v43 = vadd.f32 %v7220_v27, %v7013_v26  ;;  %v3108_v48 = vmul.f32 %v3044_v13, %v7330_v51 }
 0x3a7   :  { %v2154_v36 = vmul.f32 1.0614054, %v7422_v61  ;;  %v2025_v22 = vadd.f32 1.0, %v1961_v56  ;;  %v3111_v14 = vmul.f32 %v3047_v50, %v1831_v44  ;;  %v2731_v20 = vsub.f32 0.0, %v1899_v2 }
 0x3a8   :  { %v4429_v7 = vpop.eup %4428  ;;  %v7433_v33 = vadd.f32 %v7220_v27, %v7067_v21  ;;  %v2916_v63 = vmul.f32 1.442695, %v2794_v24  ;;  %v7436_v23 = vmul.f32 %v3174_v39, %v7244_v17  ;;  %vm1771_vm14 = vcmp.ge.f32.partialorder %v7367_v1, 0.0 }
 0x3a9   :  { %v2981_v31 = vmul.f32 %v4429_v7, %v2661_v53  ;;  %v2218_v49 = vadd.f32 -1.4531521, %v2154_v36  ;;  %4434 = vrcp.f32 %v2025_v22  ;;  %v3175_v9 = vadd.f32 1.0, %v3111_v14  ;;  %v8203_v7 = vld [vmem:[#allocation8_spill] sm:$0xff] }
 0x3aa   :  { %v7440_v26 = vmul.f32 0.70710677, %v7428_v43  ;;  %v2912_v21 = vmul.f32 1.442695, %v2792_v8  ;;  %v7446_v0 = vmul.f32 0.70710677, %v7433_v33  ;;  %v2795_v3 = vmul.f32 %v2731_v20, %v1899_v2 }
 0x3ab   :  { %v7442_v51 = vpop.eup %4430  ;;  %v3045_v44 = vsub.f32 1.0, %v2981_v31  ;;  %v2282_v54 = vmul.f32 %v7422_v61, %v2218_v49  ;;  %v3172_v42 = vadd.f32 1.0, %v3108_v48  ;;  %v7449_v30 = vmul.f32 %v3175_v9, %v7354_v57 }
 0x3ac   :  { %4030 = vmatmul.mubr.bf16.gmra.mrb[40].mxu1 %v3271_v4  ;;  %v2152_v17 = vmul.f32 1.0614054, %v7442_v51  ;;  %4436 = vpow2.f32 %v2916_v63  ;;  %v1902_v29 = vand.u32 2147483647, %v7440_v26  ;;  %v2729_v15 = vsub.f32 0.0, %v7403_v18 }
 0x3ad   :  { %v3109_v38 = vmul.f32 %v3045_v44, %v7383_v25  ;;  %4033 = vmatprep.mubr.bf16.mxu1 %v3272_v40  ;;  %v2346_v13 = vadd.f32 1.4214138, %v2282_v54  ;;  %v3275_v57 = vpack.c.bf16 %v7449_v30, %v7436_v23  ;;  %v7464_v41 = vand.u32 2147483647, %v7446_v0 }
 0x3ae   :  { %v2216_v34 = vadd.f32 -1.4531521, %v2152_v17  ;;  %4438 = vpow2.f32 %v2912_v21  ;;  %v1966_v2 = vmul.f32 0.3275911, %v1902_v29  ;;  %v3236_v62 = vmul.f32 %v3172_v42, %v7318_v58 }
 0x3af   :  { %v3173_v4 = vadd.f32 1.0, %v3109_v38  ;;  %v2410_v25 = vmul.f32 %v7422_v61, %v2346_v13  ;;  %v2918_v45 = vmul.f32 1.442695, %v2795_v3  ;;  %v1964_v24 = vmul.f32 0.3275911, %v7464_v41 }
 0x3b0   :  { %v7467_v37 = vpop.eup %4432  ;;  %v2280_v40 = vmul.f32 %v7442_v51, %v2216_v34  ;;  %v2030_v8 = vadd.f32 1.0, %v1966_v2  ;;  %v2793_v36 = vmul.f32 %v2729_v15, %v7403_v18  ;;  %v7477_v48 = vadd.f32 %v7220_v27, %v8203_v7 }
 0x3b1   :  { %v3237_v56 = vmul.f32 %v3173_v4, %v7362_v6  ;;  %v2474_v39 = vadd.f32 -0.28449672, %v2410_v25  ;;  %v2155_v50 = vmul.f32 1.0614054, %v7467_v37  ;;  %v2028_v22 = vadd.f32 1.0, %v1964_v24 }
 0x3b2   :  { %v2344_v53 = vadd.f32 1.4214138, %v2280_v40  ;;  %4440 = vrcp.f32 %v2030_v8  ;;  %v7489_v18 = vsel %vm1771_vm14, 1.0, %v8113_v46  ;;  %vm1769_vm15 = vcmp.ge.f32.partialorder %v7392_v19, 0.0  ;;  %v8204_v40 = vld [vmem:[#allocation9_spill] sm:$0xff] }
 0x3b3   :  { %v7479_v58 = vpop.eup %4434  ;;  %v3274_v14 = vpack.c.bf16 %v3237_v56, %v3236_v62  ;;  %v2538_v20 = vmul.f32 %v7422_v61, %v2474_v39  ;;  %v2219_v31 = vadd.f32 -1.4531521, %v2155_v50  ;;  %4442 = vrcp.f32 %v2028_v22  ;;  %v7519_v24 = vld [vmem:[%s8009_s8] ss:$0 sm:$0xff] }
 0x3b4   :  { %4034 = vmatmul.mubr.bf16.gmra.mrb[44].mxu1 %v3273_v32  ;;  %v2408_v6 = vmul.f32 %v7442_v51, %v2344_v53  ;;  %v2153_v49 = vmul.f32 1.0614054, %v7479_v58  ;;  %v2734_v44 = vsub.f32 0.0, %v1902_v29  ;;  %v7500_v1 = vmul.f32 0.70710677, %v7477_v48 }
 0x3b5   :  { %4037 = vmatprep.mubr.bf16.mxu1 %v3274_v14  ;;  %v2602_v63 = vadd.f32 0.2548296, %v2538_v20  ;;  %v2283_v9 = vmul.f32 %v7467_v37, %v2219_v31  ;;  %4444 = vpow2.f32 %v2918_v45  ;;  %v2914_v17 = vmul.f32 1.442695, %v2793_v36 }
 0x3b6   :  { %v2472_v10 = vadd.f32 -0.28449672, %v2408_v6  ;;  %v2217_v32 = vadd.f32 -1.4531521, %v2153_v49  ;;  %v4437_v54 = vpop.eup %4436  ;;  %v7503_v3 = vpop.f32.mrb[0].mxu1  ;;  %v2732_v34 = vsub.f32 0.0, %v7464_v41  ;;  %v7514_v45 = vadd.f32 %v7220_v27, %v8204_v40 }
 0x3b7   :  { %v2666_v21 = vmul.f32 %v7422_v61, %v2602_v63  ;;  %v2347_v42 = vadd.f32 1.4214138, %v2283_v9  ;;  %v1903_v15 = vand.u32 2147483647, %v7500_v1  ;;  %v7509_v4 = vpop.f32.mrb[1].mxu1  ;;  %v2798_v61 = vmul.f32 %v2734_v44, %v1902_v29 }
 0x3b8   :  { %v2536_v38 = vmul.f32 %v7442_v51, %v2472_v10  ;;  %v2281_v13 = vmul.f32 %v7479_v58, %v2217_v32  ;;  %v4439_v25 = vpop.eup %4438  ;;  %v7521_v56 = vpop.f32.mrb[2].mxu1  ;;  %v3395_v53 = vadd.f32 %v7198_v16, %v7497_v12  ;;  %4446 = vpow2.f32 %v2914_v17 }
 0x3b9   :  { %v2986_v2 = vmul.f32 %v4437_v54, %v2666_v21  ;;  %v2411_v62 = vmul.f32 %v7467_v37, %v2347_v42  ;;  %v1967_v8 = vmul.f32 0.3275911, %v1903_v15  ;;  %v2735_v29 = vsub.f32 0.0, %v1903_v15  ;;  %v7531_v31 = vpop.f32.mrb[3].mxu1 }
 0x3ba   :  { %v2600_v39 = vadd.f32 0.2548296, %v2536_v38  ;;  %v2345_v50 = vadd.f32 1.4214138, %v2281_v13  ;;  %v3649_v20 = vmul.f32 %v7519_v24, %v3395_v53  ;;  %v2924_v49 = vmul.f32 1.442695, %v2798_v61 }
 0x3bb   :  { %v3050_v36 = vsub.f32 1.0, %v2986_v2  ;;  %v2475_v22 = vadd.f32 -0.28449672, %v2411_v62  ;;  %v2031_v14 = vadd.f32 1.0, %v1967_v8  ;;  %v2796_v63 = vmul.f32 %v2732_v34, %v7464_v41 }
 0x3bc   :  { %4038 = vmatmul.mubr.bf16.gmra.mrb[48].mxu1 %v3275_v57  ;;  %v2664_v27 = vmul.f32 %v7442_v51, %v2600_v39  ;;  %v2409_v7 = vmul.f32 %v7479_v58, %v2345_v50  ;;  %v7533_v6 = vpop.eup %4440  ;;  %v7538_v9 = vmul.f32 0.70710677, %v7514_v45  ;;  %3713 = vst.msk [vmem:[%s8010_s9 + $0x10] sm:$0xff] %vm168_vm0, %v3649_v20  ;;  %v7551_v32 = vmul.f32 0.5, %v7377_v28 }
 0x3bd   :  { %v2539_v16 = vmul.f32 %v7467_v37, %v2475_v22  ;;  %v7540_v23 = vpop.eup %4442  ;;  %v2158_v57 = vmul.f32 1.0614054, %v7533_v6  ;;  %4448 = vrcp.f32 %v2031_v14  ;;  %v3114_v10 = vmul.f32 %v3050_v36, %v7411_v11 }
 0x3be   :  { %v2984_v51 = vmul.f32 %v4439_v25, %v2664_v27  ;;  %v2473_v30 = vadd.f32 -0.28449672, %v2409_v7  ;;  %v7547_v44 = vpop.f32.mrb[4].mxu1  ;;  %v2156_v54 = vmul.f32 1.0614054, %v7540_v23  ;;  %v1833_v21 = vsel %vm1769_vm15, 1.0, %v8113_v46 }
 0x3bf   :  { %v2603_v41 = vadd.f32 0.2548296, %v2539_v16  ;;  %v2222_v17 = vadd.f32 -1.4531521, %v2158_v57  ;;  %v2799_v38 = vmul.f32 %v2735_v29, %v1903_v15  ;;  %v7558_v13 = vpop.f32.mrb[5].mxu1  ;;  %v4445_v34 = vpop.eup %4444  ;;  %4450 = vpow2.f32 %v2924_v49 }
 0x3c0   :  { %v2537_v42 = vmul.f32 %v7479_v58, %v2473_v30  ;;  %v3048_v25 = vsub.f32 1.0, %v2984_v51  ;;  %v2220_v2 = vadd.f32 -1.4531521, %v2156_v54  ;;  %v7562_v28 = vand.u32 2147483647, %v7538_v9  ;;  %v7564_v62 = vpop.f32.mrb[6].mxu1 }
 0x3c1   :  { %v2667_v11 = vmul.f32 %v7467_v37, %v2603_v41  ;;  %v2286_v19 = vmul.f32 %v7533_v6, %v2222_v17  ;;  %v2920_v40 = vmul.f32 1.442695, %v2796_v63  ;;  %v7567_v39 = vpop.f32.mrb[7].mxu1  ;;  %v3178_v15 = vadd.f32 1.0, %v3114_v10 }
 0x3c2   :  { %v2601_v61 = vadd.f32 0.2548296, %v2537_v42  ;;  %v2284_v8 = vmul.f32 %v7540_v23, %v2220_v2  ;;  %v1965_v53 = vmul.f32 0.3275911, %v7562_v28  ;;  %v2926_v22 = vmul.f32 1.442695, %v2799_v38  ;;  %v4447_v27 = vpop.eup %4446 }
 0x3c3   :  { %v2987_v50 = vmul.f32 %v4445_v34, %v2667_v11  ;;  %v2350_v36 = vadd.f32 1.4214138, %v2286_v19  ;;  %v3387_v29 = vadd.f32 %v7497_v12, %v7202_v60  ;;  %v3112_v7 = vmul.f32 %v3048_v25, %v7419_v59 }
 0x3c4   :  { %v2665_v37 = vmul.f32 %v7479_v58, %v2601_v61  ;;  %v2348_v20 = vadd.f32 1.4214138, %v2284_v8  ;;  %v2029_v16 = vadd.f32 1.0, %v1965_v53  ;;  %4452 = vpow2.f32 %v2920_v40 }
 0x3c5   :  { %v3051_v14 = vsub.f32 1.0, %v2987_v50  ;;  %v2414_v63 = vmul.f32 %v7533_v6, %v2350_v36  ;;  %v3647_v51 = vmul.f32 %v7519_v24, %v3387_v29  ;;  %v3242_v30 = vmul.f32 %v3178_v15, %v7386_v5 }
 0x3c6   :  { %v2985_v49 = vmul.f32 %v4447_v27, %v2665_v37  ;;  %v2412_v57 = vmul.f32 %v7540_v23, %v2348_v20  ;;  %4454 = vrcp.f32 %v2029_v16  ;;  %v3398_v41 = vadd.f32 %v7207_v35, %v7497_v12 }
 0x3c7   :  { %v3115_v58 = vmul.f32 %v3051_v14, %v7489_v18  ;;  %v7580_v60 = vpop.eup %4448  ;;  %v2478_v59 = vadd.f32 -0.28449672, %v2414_v63  ;;  %3711 = vst.msk [vmem:[%s8010_s9] sm:$0xff] %vm168_vm0, %v3647_v51  ;;  %v3390_v5 = vadd.f32 %v7497_v12, %v7214_v52  ;;  %v3176_v54 = vadd.f32 1.0, %v3112_v7 }
 0x3c8   :  { %v3049_v10 = vsub.f32 1.0, %v2985_v49  ;;  %v2159_v42 = vmul.f32 1.0614054, %v7580_v60  ;;  %4456 = vpow2.f32 %v2926_v22  ;;  %v3650_v34 = vmul.f32 %v7519_v24, %v3398_v41 }
 0x3c9   :  { %v3179_v18 = vadd.f32 1.0, %v3115_v58  ;;  %v2542_v38 = vmul.f32 %v7533_v6, %v2478_v59  ;;  %v3648_v25 = vmul.f32 %v7519_v24, %v3390_v5  ;;  %v2476_v2 = vadd.f32 -0.28449672, %v2412_v57  ;;  %v4451_v52 = vpop.eup %4450 }
 0x3ca   :  { %v3113_v17 = vmul.f32 %v3049_v10, %v1833_v21  ;;  %v2223_v61 = vadd.f32 -1.4531521, %v2159_v42  ;;  %v3411_v35 = vadd.f32 %v7503_v3, %v7497_v12  ;;  %3714 = vst.msk [vmem:[%s8010_s9 + $0x18] sm:$0xff] %vm168_vm0, %v3650_v34  ;;  %v3414_v21 = vadd.f32 %v7521_v56, %v7497_v12 }
 0x3cb   :  { %v3243_v11 = vmul.f32 %v3179_v18, %v7400_v47  ;;  %v2606_v40 = vadd.f32 0.2548296, %v2542_v38  ;;  %3712 = vst.msk [vmem:[%s8010_s9 + $0x8] sm:$0xff] %vm168_vm0, %v3648_v25  ;;  %v3403_v47 = vadd.f32 %v7497_v12, %v7509_v4  ;;  %v2733_v15 = vsub.f32 0.0, %v7562_v28 }
 0x3cc   :  { %v3177_v19 = vadd.f32 1.0, %v3113_v17  ;;  %v2287_v3 = vmul.f32 %v7580_v60, %v2223_v61  ;;  %v3653_v8 = vmul.f32 %v7519_v24, %v3411_v35  ;;  %v3240_v53 = vmul.f32 %v3176_v54, %v7398_v55 }
 0x3cd   :  { %v3277_v50 = vpack.c.bf16 %v3243_v11, %v3242_v30  ;;  %v3651_v36 = vmul.f32 %v7519_v24, %v3403_v47  ;;  %v3654_v22 = vmul.f32 %v7519_v24, %v3414_v21  ;;  %v2670_v4 = vmul.f32 %v7533_v6, %v2606_v40 }
 0x3ce   :  { %v3241_v37 = vmul.f32 %v3177_v19, %v7551_v32  ;;  %v2351_v29 = vadd.f32 1.4214138, %v2287_v3  ;;  %3717 = vst.msk [vmem:[%s8010_s9 + $0x30] sm:$0xff] %vm168_vm0, %v3653_v8  ;;  %v3406_v56 = vadd.f32 %v7497_v12, %v7531_v31  ;;  %v3427_v55 = vadd.f32 %v7547_v44, %v7497_v12  ;;  %v4453_v27 = vpop.eup %4452 }
 0x3cf   :  { %v2540_v32 = vmul.f32 %v7540_v23, %v2476_v2  ;;  %3715 = vst.msk [vmem:[%s8010_s9 + $0x20] sm:$0xff] %vm168_vm0, %v3651_v36  ;;  %3718 = vst.msk [vmem:[%s8010_s9 + $0x38] sm:$0xff] %vm168_vm0, %v3654_v22  ;;  %v3419_v31 = vadd.f32 %v7497_v12, %v7558_v13  ;;  %v3430_v6 = vadd.f32 %v7564_v62, %v7497_v12  ;;  %vm1774_vm1 = vcmp.ge.f32.partialorder %v7440_v26, 0.0 }
 0x3d0   :  { %v3276_v7 = vpack.c.bf16 %v3241_v37, %v3240_v53  ;;  %v7638_v44 = vpop.eup %4454  ;;  %v2415_v14 = vmul.f32 %v7580_v60, %v2351_v29  ;;  %v2797_v20 = vmul.f32 %v2733_v15, %v7562_v28  ;;  %v3652_v16 = vmul.f32 %v7519_v24, %v3406_v56  ;;  %v3999_v30 = vpop.f32.mrb[8].mxu1 }
 0x3d1   :  { %v3657_v49 = vmul.f32 %v7519_v24, %v3427_v55  ;;  %v2157_v63 = vmul.f32 1.0614054, %v7638_v44  ;;  %v3655_v51 = vmul.f32 %v7519_v24, %v3419_v31  ;;  %v3658_v13 = vmul.f32 %v7519_v24, %v3430_v6  ;;  %v3434_v59 = vpop.f32.mrb[9].mxu1 }
 0x3d2   :  { %4041 = vmatprep.mubr.bf16.mxu1 %v3276_v7  ;;  %v4457_v58 = vpop.eup %4456  ;;  %v2990_v62 = vmul.f32 %v4451_v52, %v2670_v4  ;;  %v2479_v57 = vadd.f32 -0.28449672, %v2415_v14  ;;  %3716 = vst.msk [vmem:[%s8010_s9 + $0x28] sm:$0xff] %vm168_vm0, %v3652_v16  ;;  %v3422_v28 = vadd.f32 %v7497_v12, %v7567_v39  ;;  %v3443_v10 = vadd.f32 %v3999_v30, %v7497_v12  ;;  %v4000_v18 = vpop.f32.mrb[10].mxu1 }
 0x3d3   :  { %4042 = vmatmul.mubr.bf16.gmra.mrb[52].mxu1 %v3277_v50  ;;  %3721 = vst.msk [vmem:[%s8010_s9 + $0x50] sm:$0xff] %vm168_vm0, %v3657_v49  ;;  %v2604_v41 = vadd.f32 0.2548296, %v2540_v32  ;;  %v2221_v5 = vadd.f32 -1.4531521, %v2157_v63  ;;  %3719 = vst.msk [vmem:[%s8010_s9 + $0x40] sm:$0xff] %vm168_vm0, %v3655_v51  ;;  %v3435_v54 = vadd.f32 %v7497_v12, %v3434_v59  ;;  %v3446_v2 = vadd.f32 %v4000_v18, %v7497_v12 }
 0x3d4   :  { %3722 = vst.msk [vmem:[%s8010_s9 + $0x58] sm:$0xff] %vm168_vm0, %v3658_v13  ;;  %v2543_v39 = vmul.f32 %v7580_v60, %v2479_v57  ;;  %v2922_v42 = vmul.f32 1.442695, %v2797_v20  ;;  %v3656_v17 = vmul.f32 %v7519_v24, %v3422_v28  ;;  %v3661_v38 = vmul.f32 %v7519_v24, %v3443_v10  ;;  %v3437_v34 = vpop.f32.mrb[11].mxu1 }
 0x3d5   :  { %v2285_v25 = vmul.f32 %v7638_v44, %v2221_v5  ;;  %v3659_v11 = vmul.f32 %v7519_v24, %v3435_v54  ;;  %v3054_v61 = vsub.f32 1.0, %v2990_v62  ;;  %v3438_v52 = vadd.f32 %v7497_v12, %v3437_v34 }
 0x3d6   :  { %v2607_v35 = vadd.f32 0.2548296, %v2543_v39  ;;  %3720 = vst.msk [vmem:[%s8010_s9 + $0x48] sm:$0xff] %vm168_vm0, %v3656_v17  ;;  %3725 = vst.msk [vmem:[%s8010_s9 + $0x70] sm:$0xff] %vm168_vm0, %v3661_v38  ;;  %v2668_v19 = vmul.f32 %v7540_v23, %v2604_v41  ;;  %v3662_v26 = vmul.f32 %v7519_v24, %v3446_v2  ;;  %4458 = vpow2.f32 %v2922_v42 }
 0x3d7   :  { %v2349_v40 = vadd.f32 1.4214138, %v2285_v25  ;;  %3723 = vst.msk [vmem:[%s8010_s9 + $0x60] sm:$0xff] %vm168_vm0, %v3659_v11  ;;  %v3660_v21 = vmul.f32 %v7519_v24, %v3438_v52  ;;  %v1838_v3 = vsel %vm1774_vm1, 1.0, %v8113_v46  ;;  %vm1775_vm2 = vcmp.ge.f32.partialorder %v7500_v1, 0.0 }
 0x3d8   :  { %v2671_v47 = vmul.f32 %v7580_v60, %v2607_v35  ;;  %3726 = vst.msk [vmem:[%s8010_s9 + $0x78] sm:$0xff] %vm168_vm0, %v3662_v26  ;;  %v3118_v23 = vmul.f32 %v3054_v61, %v1838_v3  ;;  %v2988_v60 = vmul.f32 %v4453_v27, %v2668_v19  ;;  %v1839_v37 = vsel %vm1775_vm2, 1.0, %v8113_v46 }
 0x3d9   :  { %v2413_v15 = vmul.f32 %v7638_v44, %v2349_v40  ;;  %3724 = vst.msk [vmem:[%s8010_s9 + $0x68] sm:$0xff] %vm168_vm0, %v3660_v21  ;;  %vm1772_vm3 = vcmp.ge.f32.partialorder %v7446_v0, 0.0  ;;  %v1646_v1 = vmul.f32 0.5, %v7428_v43  ;;  %v1647_v55 = vmul.f32 0.5, %v7477_v48 }
 0x3da   :  { %v2991_v50 = vmul.f32 %v4457_v58, %v2671_v47  ;;  %v3182_v22 = vadd.f32 1.0, %v3118_v23  ;;  %v3052_v29 = vsub.f32 1.0, %v2988_v60  ;;  %v1836_v6 = vsel %vm1772_vm3, 1.0, %v8113_v46 }
 0x3db   :  { %v2477_v8 = vadd.f32 -0.28449672, %v2413_v15  ;;  %vm1773_vm4 = vcmp.ge.f32.partialorder %v7538_v9, 0.0  ;;  %v1644_v48 = vmul.f32 0.5, %v7433_v33  ;;  %v1645_v13 = vmul.f32 0.5, %v7514_v45 }
 0x3dc   :  { %v3055_v53 = vsub.f32 1.0, %v2991_v50  ;;  %v3246_v31 = vmul.f32 %v3182_v22, %v1646_v1  ;;  %v3116_v20 = vmul.f32 %v3052_v29, %v1836_v6  ;;  %v1837_v63 = vsel %vm1773_vm4, 1.0, %v8113_v46 }
 0x3dd   :  { %v2541_v36 = vmul.f32 %v7638_v44, %v2477_v8 }
 0x3de   :  { %v3119_v4 = vmul.f32 %v3055_v53, %v1839_v37  ;;  %v3180_v51 = vadd.f32 1.0, %v3116_v20 }
 0x3df   :  { %v2605_v56 = vadd.f32 0.2548296, %v2541_v36 }
 0x3e0   :  { %v3183_v32 = vadd.f32 1.0, %v3119_v4  ;;  %v4459_v27 = vpop.eup %4458  ;;  %v3244_v30 = vmul.f32 %v3180_v51, %v1644_v48 }
 0x3e1   :  { %v2669_v7 = vmul.f32 %v7638_v44, %v2605_v56 }
 0x3e2   :  { %v3247_v14 = vmul.f32 %v3183_v32, %v1647_v55 }
 0x3e3   :  { %v2989_v16 = vmul.f32 %v4459_v27, %v2669_v7 }
 0x3e4   :  { %v3279_v49 = vpack.c.bf16 %v3247_v14, %v3246_v31 }
 0x3e5   :  { %v3053_v0 = vsub.f32 1.0, %v2989_v16 }
 0x3e7   :  { %v3117_v43 = vmul.f32 %v3053_v0, %v1837_v63 }
 0x3e9   :  { %v3181_v44 = vadd.f32 1.0, %v3117_v43 }
 0x3eb   :  { %v3245_v58 = vmul.f32 %v3181_v44, %v1645_v13 }
 0x3ed   :  { %v3278_v62 = vpack.c.bf16 %v3245_v58, %v3244_v30 }
 0x3ef   :  { %4045 = vmatprep.mubr.bf16.mxu1 %v3278_v62 }
 0x3f0   :  { %4046 = vmatmul.mubr.bf16.gmra.mrb[56].mxu1 %v3279_v49  ;;  %v4003_v57 = vpop.f32.mrb[12].mxu1 }
 0x3f1   :  { %v3459_v9 = vadd.f32 %v4003_v57, %v7497_v12  ;;  %v3450_v28 = vpop.f32.mrb[13].mxu1 }
 0x3f2   :  { %v3451_v10 = vadd.f32 %v7497_v12, %v3450_v28  ;;  %v4004_v59 = vpop.f32.mrb[14].mxu1 }
 0x3f3   :  { %v3665_v46 = vmul.f32 %v7519_v24, %v3459_v9  ;;  %v3462_v41 = vadd.f32 %v4004_v59, %v7497_v12  ;;  %v3453_v33 = vpop.f32.mrb[15].mxu1 }
 0x3f4   :  { %v3663_v45 = vmul.f32 %v7519_v24, %v3451_v10  ;;  %v3454_v5 = vadd.f32 %v7497_v12, %v3453_v33 }
 0x3f5   :  { %3729 = vst.msk [vmem:[%s8010_s9 + $0x90] sm:$0xff] %vm168_vm0, %v3665_v46  ;;  %v3666_v54 = vmul.f32 %v7519_v24, %v3462_v41 }
 0x3f6   :  { %3727 = vst.msk [vmem:[%s8010_s9 + $0x80] sm:$0xff] %vm168_vm0, %v3663_v45  ;;  %v3664_v18 = vmul.f32 %v7519_v24, %v3454_v5 }
 0x3f7   :  { %3730 = vst.msk [vmem:[%s8010_s9 + $0x98] sm:$0xff] %vm168_vm0, %v3666_v54 }
 0x3f8   :  { %3728 = vst.msk [vmem:[%s8010_s9 + $0x88] sm:$0xff] %vm168_vm0, %v3664_v18 }
 0x425   :  { %v4007_v39 = vpop.f32.mrb[16].mxu1 }
 0x426   :  { %v3475_v42 = vadd.f32 %v4007_v39, %v7497_v12  ;;  %v3466_v17 = vpop.f32.mrb[17].mxu1 }
 0x427   :  { %v3467_v38 = vadd.f32 %v7497_v12, %v3466_v17  ;;  %v4008_v34 = vpop.f32.mrb[18].mxu1 }
 0x428   :  { %v3669_v25 = vmul.f32 %v7519_v24, %v3475_v42  ;;  %v3478_v11 = vadd.f32 %v4008_v34, %v7497_v12  ;;  %v3469_v2 = vpop.f32.mrb[19].mxu1 }
 0x429   :  { %v3667_v61 = vmul.f32 %v7519_v24, %v3467_v38  ;;  %v3470_v35 = vadd.f32 %v7497_v12, %v3469_v2 }
 0x42a   :  { %3733 = vst.msk [vmem:[%s8010_s9 + $0xb0] sm:$0xff] %vm168_vm0, %v3669_v25  ;;  %v3670_v52 = vmul.f32 %v7519_v24, %v3478_v11 }
 0x42b   :  { %3731 = vst.msk [vmem:[%s8010_s9 + $0xa0] sm:$0xff] %vm168_vm0, %v3667_v61  ;;  %v3668_v19 = vmul.f32 %v7519_v24, %v3470_v35 }
 0x42c   :  { %3734 = vst.msk [vmem:[%s8010_s9 + $0xb8] sm:$0xff] %vm168_vm0, %v3670_v52 }
 0x42d   :  { %3732 = vst.msk [vmem:[%s8010_s9 + $0xa8] sm:$0xff] %vm168_vm0, %v3668_v19 }
 0x443   :  { %v4011_v40 = vpop.f32.mrb[20].mxu1 }
 0x444   :  { %v3491_v26 = vadd.f32 %v4011_v40, %v7497_v12  ;;  %v3482_v47 = vpop.f32.mrb[21].mxu1 }
 0x445   :  { %v3483_v21 = vadd.f32 %v7497_v12, %v3482_v47  ;;  %v4012_v3 = vpop.f32.mrb[22].mxu1 }
 0x446   :  { %v3673_v15 = vmul.f32 %v7519_v24, %v3491_v26  ;;  %v3494_v23 = vadd.f32 %v4012_v3, %v7497_v12  ;;  %v3485_v50 = vpop.f32.mrb[23].mxu1 }
 0x447   :  { %v3671_v60 = vmul.f32 %v7519_v24, %v3483_v21  ;;  %v3486_v8 = vadd.f32 %v7497_v12, %v3485_v50 }
 0x448   :  { %3737 = vst.msk [vmem:[%s8010_s9 + $0xd0] sm:$0xff] %vm168_vm0, %v3673_v15  ;;  %v3674_v53 = vmul.f32 %v7519_v24, %v3494_v23 }
 0x449   :  { %3735 = vst.msk [vmem:[%s8010_s9 + $0xc0] sm:$0xff] %vm168_vm0, %v3671_v60  ;;  %v3672_v37 = vmul.f32 %v7519_v24, %v3486_v8 }
 0x44a   :  { %3738 = vst.msk [vmem:[%s8010_s9 + $0xd8] sm:$0xff] %vm168_vm0, %v3674_v53 }
 0x44b   :  { %3736 = vst.msk [vmem:[%s8010_s9 + $0xc8] sm:$0xff] %vm168_vm0, %v3672_v37 }
 0x45f   :  { %v4015_v36 = vpop.f32.mrb[24].mxu1 }
 0x460   :  { %v3507_v22 = vadd.f32 %v4015_v36, %v7497_v12  ;;  %v3498_v4 = vpop.f32.mrb[25].mxu1 }
 0x461   :  { %v3499_v29 = vadd.f32 %v7497_v12, %v3498_v4  ;;  %v4016_v56 = vpop.f32.mrb[26].mxu1 }
 0x462   :  { %v3677_v1 = vmul.f32 %v7519_v24, %v3507_v22  ;;  %v3510_v55 = vadd.f32 %v4016_v56, %v7497_v12  ;;  %v3501_v32 = vpop.f32.mrb[27].mxu1 }
 0x463   :  { %v3675_v7 = vmul.f32 %v7519_v24, %v3499_v29  ;;  %v3502_v27 = vadd.f32 %v7497_v12, %v3501_v32 }
 0x464   :  { %3741 = vst.msk [vmem:[%s8010_s9 + $0xf0] sm:$0xff] %vm168_vm0, %v3677_v1  ;;  %v3678_v31 = vmul.f32 %v7519_v24, %v3510_v55 }
 0x465   :  { %3739 = vst.msk [vmem:[%s8010_s9 + $0xe0] sm:$0xff] %vm168_vm0, %v3675_v7  ;;  %v3676_v6 = vmul.f32 %v7519_v24, %v3502_v27 }
 0x466   :  { %3742 = vst.msk [vmem:[%s8010_s9 + $0xf8] sm:$0xff] %vm168_vm0, %v3678_v31 }
 0x467   :  { %3740 = vst.msk [vmem:[%s8010_s9 + $0xe8] sm:$0xff] %vm168_vm0, %v3676_v6  ;;  %v4019_v14 = vpop.f32.mrb[28].mxu1 }
 0x468   :  { %v3523_v20 = vadd.f32 %v4019_v14, %v7497_v12  ;;  %v3514_v16 = vpop.f32.mrb[29].mxu1 }
 0x469   :  { %v3515_v49 = vadd.f32 %v7497_v12, %v3514_v16  ;;  %v4020_v0 = vpop.f32.mrb[30].mxu1 }
 0x46a   :  { %v3681_v63 = vmul.f32 %v7519_v24, %v3523_v20  ;;  %v3526_v51 = vadd.f32 %v4020_v0, %v7497_v12  ;;  %v3517_v43 = vpop.f32.mrb[31].mxu1 }
 0x46b   :  { %v3679_v48 = vmul.f32 %v7519_v24, %v3515_v49  ;;  %v3518_v13 = vadd.f32 %v7497_v12, %v3517_v43 }
 0x46c   :  { %3745 = vst.msk [vmem:[%s8010_s9 + $0x110] sm:$0xff] %vm168_vm0, %v3681_v63  ;;  %v3682_v44 = vmul.f32 %v7519_v24, %v3526_v51 }
 0x46d   :  { %3743 = vst.msk [vmem:[%s8010_s9 + $0x100] sm:$0xff] %vm168_vm0, %v3679_v48  ;;  %v3680_v30 = vmul.f32 %v7519_v24, %v3518_v13 }
 0x46e   :  { %3746 = vst.msk [vmem:[%s8010_s9 + $0x118] sm:$0xff] %vm168_vm0, %v3682_v44 }
 0x46f   :  { %3744 = vst.msk [vmem:[%s8010_s9 + $0x108] sm:$0xff] %vm168_vm0, %v3680_v30  ;;  %v4023_v58 = vpop.f32.mrb[32].mxu1 }
 0x470   :  { %v3539_v62 = vadd.f32 %v4023_v58, %v7497_v12  ;;  %v3530_v57 = vpop.f32.mrb[33].mxu1 }
 0x471   :  { %v3531_v9 = vadd.f32 %v7497_v12, %v3530_v57  ;;  %v4024_v28 = vpop.f32.mrb[34].mxu1 }
 0x472   :  { %v3685_v10 = vmul.f32 %v7519_v24, %v3539_v62  ;;  %v3542_v59 = vadd.f32 %v4024_v28, %v7497_v12  ;;  %v3533_v46 = vpop.f32.mrb[35].mxu1 }
 0x473   :  { %v3683_v41 = vmul.f32 %v7519_v24, %v3531_v9  ;;  %v3534_v33 = vadd.f32 %v7497_v12, %v3533_v46 }
 0x474   :  { %3749 = vst.msk [vmem:[%s8010_s9 + $0x130] sm:$0xff] %vm168_vm0, %v3685_v10  ;;  %v3686_v45 = vmul.f32 %v7519_v24, %v3542_v59 }
 0x475   :  { %3747 = vst.msk [vmem:[%s8010_s9 + $0x120] sm:$0xff] %vm168_vm0, %v3683_v41  ;;  %v3684_v5 = vmul.f32 %v7519_v24, %v3534_v33 }
 0x476   :  { %3750 = vst.msk [vmem:[%s8010_s9 + $0x138] sm:$0xff] %vm168_vm0, %v3686_v45 }
 0x477   :  { %3748 = vst.msk [vmem:[%s8010_s9 + $0x128] sm:$0xff] %vm168_vm0, %v3684_v5  ;;  %v4027_v54 = vpop.f32.mrb[36].mxu1 }
 0x478   :  { %v3555_v18 = vadd.f32 %v4027_v54, %v7497_v12  ;;  %v3546_v39 = vpop.f32.mrb[37].mxu1 }
 0x479   :  { %v3547_v42 = vadd.f32 %v7497_v12, %v3546_v39  ;;  %v4028_v17 = vpop.f32.mrb[38].mxu1 }
 0x47a   :  { %v3689_v38 = vmul.f32 %v7519_v24, %v3555_v18  ;;  %v3558_v34 = vadd.f32 %v4028_v17, %v7497_v12  ;;  %v3549_v25 = vpop.f32.mrb[39].mxu1 }
 0x47b   :  { %v3687_v11 = vmul.f32 %v7519_v24, %v3547_v42  ;;  %v3550_v2 = vadd.f32 %v7497_v12, %v3549_v25 }
 0x47c   :  { %3753 = vst.msk [vmem:[%s8010_s9 + $0x150] sm:$0xff] %vm168_vm0, %v3689_v38  ;;  %v3690_v61 = vmul.f32 %v7519_v24, %v3558_v34 }
 0x47d   :  { %3751 = vst.msk [vmem:[%s8010_s9 + $0x140] sm:$0xff] %vm168_vm0, %v3687_v11  ;;  %v3688_v35 = vmul.f32 %v7519_v24, %v3550_v2 }
 0x47e   :  { %3754 = vst.msk [vmem:[%s8010_s9 + $0x158] sm:$0xff] %vm168_vm0, %v3690_v61 }
 0x47f   :  { %3752 = vst.msk [vmem:[%s8010_s9 + $0x148] sm:$0xff] %vm168_vm0, %v3688_v35  ;;  %v4031_v52 = vpop.f32.mrb[40].mxu1 }
 0x480   :  { %v3571_v19 = vadd.f32 %v4031_v52, %v7497_v12  ;;  %v3562_v40 = vpop.f32.mrb[41].mxu1 }
 0x481   :  { %v3563_v26 = vadd.f32 %v7497_v12, %v3562_v40  ;;  %v4032_v47 = vpop.f32.mrb[42].mxu1 }
 0x482   :  { %v3693_v21 = vmul.f32 %v7519_v24, %v3571_v19  ;;  %v3574_v3 = vadd.f32 %v4032_v47, %v7497_v12  ;;  %v3565_v15 = vpop.f32.mrb[43].mxu1 }
 0x483   :  { %v3691_v23 = vmul.f32 %v7519_v24, %v3563_v26  ;;  %v3566_v50 = vadd.f32 %v7497_v12, %v3565_v15 }
 0x484   :  { %3757 = vst.msk [vmem:[%s8010_s9 + $0x170] sm:$0xff] %vm168_vm0, %v3693_v21  ;;  %v3694_v60 = vmul.f32 %v7519_v24, %v3574_v3 }
 0x485   :  { %3755 = vst.msk [vmem:[%s8010_s9 + $0x160] sm:$0xff] %vm168_vm0, %v3691_v23  ;;  %v3692_v8 = vmul.f32 %v7519_v24, %v3566_v50 }
 0x486   :  { %3758 = vst.msk [vmem:[%s8010_s9 + $0x178] sm:$0xff] %vm168_vm0, %v3694_v60 }
 0x487   :  { %3756 = vst.msk [vmem:[%s8010_s9 + $0x168] sm:$0xff] %vm168_vm0, %v3692_v8  ;;  %v4035_v53 = vpop.f32.mrb[44].mxu1 }
 0x488   :  { %v3587_v37 = vadd.f32 %v4035_v53, %v7497_v12  ;;  %v3578_v36 = vpop.f32.mrb[45].mxu1 }
 0x489   :  { %v3579_v22 = vadd.f32 %v7497_v12, %v3578_v36  ;;  %v4036_v4 = vpop.f32.mrb[46].mxu1 }
 0x48a   :  { %v3697_v29 = vmul.f32 %v7519_v24, %v3587_v37  ;;  %v3590_v56 = vadd.f32 %v4036_v4, %v7497_v12  ;;  %v3581_v1 = vpop.f32.mrb[47].mxu1 }
 0x48b   :  { %v3695_v55 = vmul.f32 %v7519_v24, %v3579_v22  ;;  %v3582_v32 = vadd.f32 %v7497_v12, %v3581_v1 }
 0x48c   :  { %3761 = vst.msk [vmem:[%s8010_s9 + $0x190] sm:$0xff] %vm168_vm0, %v3697_v29  ;;  %v3698_v7 = vmul.f32 %v7519_v24, %v3590_v56 }
 0x48d   :  { %3759 = vst.msk [vmem:[%s8010_s9 + $0x180] sm:$0xff] %vm168_vm0, %v3695_v55  ;;  %v3696_v27 = vmul.f32 %v7519_v24, %v3582_v32 }
 0x48e   :  { %3762 = vst.msk [vmem:[%s8010_s9 + $0x198] sm:$0xff] %vm168_vm0, %v3698_v7 }
 0x48f   :  { %3760 = vst.msk [vmem:[%s8010_s9 + $0x188] sm:$0xff] %vm168_vm0, %v3696_v27  ;;  %v4039_v31 = vpop.f32.mrb[48].mxu1 }
 0x490   :  { %v3603_v6 = vadd.f32 %v4039_v31, %v7497_v12  ;;  %v3594_v14 = vpop.f32.mrb[49].mxu1 }
 0x491   :  { %v3595_v20 = vadd.f32 %v7497_v12, %v3594_v14  ;;  %v4040_v16 = vpop.f32.mrb[50].mxu1 }
 0x492   :  { %v3701_v49 = vmul.f32 %v7519_v24, %v3603_v6  ;;  %v3606_v0 = vadd.f32 %v4040_v16, %v7497_v12  ;;  %v3597_v63 = vpop.f32.mrb[51].mxu1 }
 0x493   :  { %v3699_v51 = vmul.f32 %v7519_v24, %v3595_v20  ;;  %v3598_v43 = vadd.f32 %v7497_v12, %v3597_v63 }
 0x494   :  { %3765 = vst.msk [vmem:[%s8010_s9 + $0x1b0] sm:$0xff] %vm168_vm0, %v3701_v49  ;;  %v3702_v48 = vmul.f32 %v7519_v24, %v3606_v0 }
 0x495   :  { %3763 = vst.msk [vmem:[%s8010_s9 + $0x1a0] sm:$0xff] %vm168_vm0, %v3699_v51  ;;  %v3700_v13 = vmul.f32 %v7519_v24, %v3598_v43 }
 0x496   :  { %3766 = vst.msk [vmem:[%s8010_s9 + $0x1b8] sm:$0xff] %vm168_vm0, %v3702_v48 }
 0x497   :  { %3764 = vst.msk [vmem:[%s8010_s9 + $0x1a8] sm:$0xff] %vm168_vm0, %v3700_v13 }
 0x4a6   :  { %v4043_v44 = vpop.f32.mrb[52].mxu1 }
 0x4a7   :  { %v3619_v30 = vadd.f32 %v4043_v44, %v7497_v12  ;;  %v3610_v58 = vpop.f32.mrb[53].mxu1 }
 0x4a8   :  { %v3611_v62 = vadd.f32 %v7497_v12, %v3610_v58  ;;  %v4044_v57 = vpop.f32.mrb[54].mxu1 }
 0x4a9   :  { %v3705_v9 = vmul.f32 %v7519_v24, %v3619_v30  ;;  %v3622_v28 = vadd.f32 %v4044_v57, %v7497_v12  ;;  %v3613_v10 = vpop.f32.mrb[55].mxu1 }
 0x4aa   :  { %v3703_v59 = vmul.f32 %v7519_v24, %v3611_v62  ;;  %v3614_v46 = vadd.f32 %v7497_v12, %v3613_v10 }
 0x4ab   :  { %3769 = vst.msk [vmem:[%s8010_s9 + $0x1d0] sm:$0xff] %vm168_vm0, %v3705_v9  ;;  %v3706_v41 = vmul.f32 %v7519_v24, %v3622_v28 }
 0x4ac   :  { %3767 = vst.msk [vmem:[%s8010_s9 + $0x1c0] sm:$0xff] %vm168_vm0, %v3703_v59  ;;  %v3704_v33 = vmul.f32 %v7519_v24, %v3614_v46 }
 0x4ad   :  { %3770 = vst.msk [vmem:[%s8010_s9 + $0x1d8] sm:$0xff] %vm168_vm0, %v3706_v41 }
 0x4ae   :  { %3768 = vst.msk [vmem:[%s8010_s9 + $0x1c8] sm:$0xff] %vm168_vm0, %v3704_v33 }
 0x4c3   :  { %v4047_v45 = vpop.f32.mrb[56].mxu1 }
 0x4c4   :  { %v3635_v5 = vadd.f32 %v4047_v45, %v7497_v12  ;;  %v3626_v54 = vpop.f32.mrb[57].mxu1 }
 0x4c5   :  { %v3627_v18 = vadd.f32 %v7497_v12, %v3626_v54  ;;  %v4048_v39 = vpop.f32.mrb[58].mxu1 }
 0x4c6   :  { %v3709_v42 = vmul.f32 %v7519_v24, %v3635_v5  ;;  %v3638_v17 = vadd.f32 %v4048_v39, %v7497_v12  ;;  %v3629_v38 = vpop.f32.mrb[59].mxu1 }
 0x4c7   :  { %v3707_v34 = vmul.f32 %v7519_v24, %v3627_v18  ;;  %v3630_v25 = vadd.f32 %v7497_v12, %v3629_v38 }
 0x4c8   :  { %3773 = vst.msk [vmem:[%s8010_s9 + $0x1f0] sm:$0xff] %vm168_vm0, %v3709_v42  ;;  %v3710_v11 = vmul.f32 %v7519_v24, %v3638_v17 }
 0x4c9   :  { %3771 = vst.msk [vmem:[%s8010_s9 + $0x1e0] sm:$0xff] %vm168_vm0, %v3707_v34  ;;  %v3708_v2 = vmul.f32 %v7519_v24, %v3630_v25 }
 0x4ca   :  { %3774 = vst.msk [vmem:[%s8010_s9 + $0x1f8] sm:$0xff] %vm168_vm0, %v3710_v11 }
 0x4cb   :  { %3772 = vst.msk [vmem:[%s8010_s9 + $0x1e8] sm:$0xff] %vm168_vm0, %v3708_v2 }

</bundles_post_ra>
